<compile_context>
chip_gen: v5e
topology: v5e:2x2
jax: 0.10.0
libtpu: 0.0.40
codegen_flags: <defaults>
</compile_context>

<pallas_src>
import functools

import numpy as np
import jax
import jax.numpy as jnp
from jax import lax
from jax.experimental import pallas as pl
from jax.experimental.pallas import tpu as pltpu

LN_EPS = 1e-5
BN_EPS = 1e-5


# ----------------------------- shared math helpers -----------------------------
def _layer_norm(v, g, b):
    mu = jnp.mean(v, axis=-1, keepdims=True)
    var = jnp.mean((v - mu) ** 2, axis=-1, keepdims=True)
    return (v - mu) * lax.rsqrt(var + LN_EPS) * g + b


def _sigmoid(v):
    # Exact sigmoid: the approx EUP reciprocal is reserved for the softmax denominator
    # so its error does not compound across the four sub-blocks.
    return 1.0 / (1.0 + jnp.exp(-v))


def _swish(v):
    return v * _sigmoid(v)


# ----------------------------------- kernel ----------------------------------------
def conformer_kernel(*refs, n_head, ksize):
    (x_ref,
     n1g, n1b, f1w1, f1b1, f1w2, f1b2,
     n2g, n2b, wq, bq, wk, bk, wv, bv, wo, bo,
     n3g, n3b, pw1wa, pw1ba, pw1wg, pw1bg, dww, dwb,
     bng, bnb, bnm, bnv, pw2w, pw2b,
     n4g, n4b, f2w1, f2b1, f2w2, f2b2,
     out_ref, gpad_ref) = refs

    x = x_ref[0]                       # (T, D) slab for this batch element, f32
    T, D = x.shape
    hd = D // n_head
    pad = (ksize - 1) // 2

    def mm(a, w_ref, b_ref):
        """bf16 MXU matmul with f32 accumulation + f32 bias."""
        return (jnp.dot(a.astype(jnp.bfloat16), w_ref[...],
                        preferred_element_type=jnp.float32) + b_ref[...])

    # ---------------- FFN1 (half-step residual) ----------------
    res = x
    h = _layer_norm(x, n1g[...], n1b[...])
    h = _swish(mm(h, f1w1, f1b1))
    x = 0.5 * mm(h, f1w2, f1b2) + res

    # ---------------- Multi-head self-attention ----------------
    # Heads are sliced from the weight refs (static slices -> free views); the output
    # projection is accumulated per head, so no (T, hd) activation lane slices and no
    # final concat. wq / bq already carry the 1/sqrt(hd) scale (folded in the wrapper).
    res = x
    h = _layer_norm(x, n2g[...], n2b[...])
    h16 = h.astype(jnp.bfloat16)
    attn = jnp.zeros((T, D), jnp.float32)
    for head in range(n_head):
        lo = head * hd
        qh = jnp.dot(h16, wq[:, lo:lo + hd],
                     preferred_element_type=jnp.float32) + bq[:, lo:lo + hd]
        kh = jnp.dot(h16, wk[:, lo:lo + hd],
                     preferred_element_type=jnp.float32) + bk[:, lo:lo + hd]
        vh = jnp.dot(h16, wv[:, lo:lo + hd],
                     preferred_element_type=jnp.float32) + bv[:, lo:lo + hd]
        s = lax.dot_general(qh.astype(jnp.bfloat16), kh.astype(jnp.bfloat16),
                            (((1,), (1,)), ((), ())),
                            preferred_element_type=jnp.float32)        # (T, T)
        s = s - jnp.max(s, axis=-1, keepdims=True)
        e = jnp.exp(s)
        p = e * pl.reciprocal(jnp.sum(e, axis=-1, keepdims=True), approx=True)
        oh = jnp.dot(p.astype(jnp.bfloat16), vh.astype(jnp.bfloat16),
                     preferred_element_type=jnp.float32)                # (T, hd)
        attn = attn + jnp.dot(oh.astype(jnp.bfloat16), wo[lo:lo + hd, :],
                              preferred_element_type=jnp.float32)       # (T, D)
    x = attn + bo[...] + res

    # ---------------- Convolution module ----------------
    res = x
    h = _layer_norm(x, n3g[...], n3b[...])
    h16 = h.astype(jnp.bfloat16)
    act = jnp.dot(h16, pw1wa[...], preferred_element_type=jnp.float32) + pw1ba[...]
    gate = jnp.dot(h16, pw1wg[...], preferred_element_type=jnp.float32) + pw1bg[...]
    g = act * _sigmoid(gate)                                            # GLU, (T, D)

    # Depthwise conv with zero "same" padding: write g once into a zero-padded VMEM
    # scratch, read tap j as a static sublane slice, FMA with dww[j].
    if pad > 0:
        zeros_pad = jnp.zeros((pad, D), jnp.float32)
        gpad_ref[pl.ds(0, pad), :] = zeros_pad
        gpad_ref[pl.ds(pad + T, pad), :] = zeros_pad
    gpad_ref[pl.ds(pad, T), :] = g
    taps = dww[...]                                                     # (ksize, 1, D)
    dconv = jnp.zeros((T, D), jnp.float32)
    for j in range(ksize):
        dconv = dconv + gpad_ref[pl.ds(j, T), :] * taps[j]
    h = dconv + dwb[...]
    # BatchNorm1d (eval: running stats), per-channel on the lane axis.
    h = (h - bnm[...]) * lax.rsqrt(bnv[...] + BN_EPS) * bng[...] + bnb[...]
    h = _swish(h)
    x = mm(h, pw2w, pw2b) + res

    # ---------------- FFN2 (half-step residual) ----------------
    res = x
    h = _layer_norm(x, n4g[...], n4b[...])
    h = _swish(mm(h, f2w1, f2b1))
    x = 0.5 * mm(h, f2w2, f2b2) + res

    out_ref[0] = x


# ----------------------------------- wrapper ----------------------------------------
def _build_call(B, T, D, d_ff, ksize, n_head, param_list, single_buffer_weights):
    pad = (ksize - 1) // 2

    def const_spec(arr):
        zeros = (0,) * arr.ndim
        if single_buffer_weights:
            # Constant index_map -> double-buffering buys nothing; halve weight VMEM.
            return pl.BlockSpec(arr.shape, lambda b: zeros,
                                pipeline_mode=pl.Buffered(1))
        return pl.BlockSpec(arr.shape, lambda b: zeros)

    in_specs = [pl.BlockSpec((1, T, D), lambda b: (b, 0, 0))]
    in_specs += [const_spec(p) for p in param_list]
    out_specs = pl.BlockSpec((1, T, D), lambda b: (b, 0, 0))

    # Explicit, generation-aware VMEM budget.
    param_bytes = sum(int(p.size) * p.dtype.itemsize for p in param_list)
    weight_bufs = 1 if single_buffer_weights else 2
    est = (weight_bufs * param_bytes
           + 2 * 2 * T * D * 4                   # x / out double buffers
           + 10 * T * max(D, d_ff) * 4           # activation temporaries
           + 3 * T * T * 4                       # score / exp / prob buffers
           + (T + 2 * pad) * D * 4               # depthwise pad scratch
           + (4 << 20))                          # Mosaic internal headroom
    try:
        vmem_cap = int(pltpu.get_tpu_info().vmem_capacity_bytes)
    except Exception:
        vmem_cap = 128 << 20
    # ~78% of physical VMEM: ~50 MiB on v7x (64 MiB), ~100 MiB on v5e/v6e (128 MiB).
    cap = (vmem_cap * 25) // 32
    vmem_limit_bytes = int(min(max(est, 16 << 20), cap))

    kernel = functools.partial(conformer_kernel, n_head=n_head, ksize=ksize)
    return pl.pallas_call(
        kernel,
        out_shape=jax.ShapeDtypeStruct((B, T, D), jnp.float32),
        grid_spec=pltpu.PrefetchScalarGridSpec(
            num_scalar_prefetch=0,
            grid=(B,),
            in_specs=in_specs,
            out_specs=out_specs,
            scratch_shapes=[pltpu.VMEM((T + 2 * pad, D), jnp.float32)],
        ),
        compiler_params=pltpu.CompilerParams(
            dimension_semantics=("parallel",),
            vmem_limit_bytes=vmem_limit_bytes,
        ),
    )


def conformer_block(x, params, *, n_head, ksize):
    B, T, D = x.shape
    (n1g, n1b, f1w1, f1b1, f1w2, f1b2,
     n2g, n2b, wq, bq, wk, bk, wv, bv, wo, bo,
     n3g, n3b, pw1wa, pw1ba, pw1wg, pw1bg, dww, dwb,
     bng, bnb, bnm, bnv, pw2w, pw2b,
     n4g, n4b, f2w1, f2b1, f2w2, f2b2) = params

    assert D % n_head == 0, "d_model must be divisible by n_head"
    assert ksize % 2 == 1, "conv_kernel_size must be odd for symmetric 'same' padding"
    hd = D // n_head
    scale = 1.0 / float(np.sqrt(hd))

    def bf16(w):
        return w.astype(jnp.bfloat16)

    # Fold the attention scale into Wq / bq at trace time; matmul weights go to bf16.
    kernel_params = (
        n1g, n1b, bf16(f1w1), f1b1, bf16(f1w2), f1b2,
        n2g, n2b, bf16(wq * scale), (bq * scale).astype(jnp.float32),
        bf16(wk), bk, bf16(wv), bv, bf16(wo), bo,
        n3g, n3b, bf16(pw1wa), pw1ba, bf16(pw1wg), pw1bg, dww, dwb,
        bng, bnb, bnm, bnv, bf16(pw2w), pw2b,
        n4g, n4b, bf16(f2w1), f2b1, bf16(f2w2), f2b2,
    )
    param_list = list(kernel_params)
    d_ff = f1w1.shape[1]

    def run(single_buffer_weights):
        call = _build_call(B, T, D, d_ff, ksize, n_head, param_list,
                           single_buffer_weights)
        return call(x, *param_list)

    # Prefer single-buffered weights; fall back to default pipelining if this build
    # does not accept pl.Buffered(1) for pallas_call block specs.
    try:
        out = run(True)
        jax.block_until_ready(out)
        return out
    except Exception:
        return run(False)


# ----------------------------------- reference ----------------------------------------
def reference_forward(x, params, *, n_head, ksize):
    """Pure-JAX f32 reference mirroring the PyTorch forward (eval mode)."""
    (n1g, n1b, f1w1, f1b1, f1w2, f1b2,
     n2g, n2b, wq, bq, wk, bk, wv, bv, wo, bo,
     n3g, n3b, pw1wa, pw1ba, pw1wg, pw1bg, dww, dwb,
     bng, bnb, bnm, bnv, pw2w, pw2b,
     n4g, n4b, f2w1, f2b1, f2w2, f2b2) = params

    def sigmoid(v):
        return 1.0 / (1.0 + jnp.exp(-v))

    def swish(v):
        return v * sigmoid(v)

    def one(x2d):
        T, D = x2d.shape
        hd = D // n_head
        scale = 1.0 / np.sqrt(hd)

        res = x2d
        h = _layer_norm(x2d, n1g, n1b)
        h = swish(h @ f1w1 + f1b1) @ f1w2 + f1b2
        y = 0.5 * h + res

        res = y
        h = _layer_norm(y, n2g, n2b)
        q = (h @ wq + bq).reshape(T, n_head, hd).transpose(1, 0, 2)
        k = (h @ wk + bk).reshape(T, n_head, hd).transpose(1, 0, 2)
        v = (h @ wv + bv).reshape(T, n_head, hd).transpose(1, 0, 2)
        s = jnp.einsum("htd,hsd->hts", q, k) * scale
        p = jax.nn.softmax(s, axis=-1)
        o = jnp.einsum("hts,hsd->htd", p, v).transpose(1, 0, 2).reshape(T, D)
        y = o @ wo + bo + res

        res = y
        h = _layer_norm(y, n3g, n3b)
        act = h @ pw1wa + pw1ba
        gate = h @ pw1wg + pw1bg
        g = act * sigmoid(gate)
        pad = (ksize - 1) // 2
        gp = jnp.pad(g, ((pad, pad), (0, 0)))
        dconv = sum(gp[j:j + T, :] * dww[j] for j in range(ksize)) + dwb
        h = (dconv - bnm) * lax.rsqrt(bnv + BN_EPS) * bng + bnb
        h = swish(h)
        y = h @ pw2w + pw2b + res

        res = y
        h = _layer_norm(y, n4g, n4b)
        h = swish(h @ f2w1 + f2b1) @ f2w2 + f2b2
        return 0.5 * h + res

    return jax.vmap(one)(x)


if __name__ == "__main__":
    B, T, D = 2, 8, 32
    n_head, d_ff, ksize = 4, 64, 3

    keys = iter(jax.random.split(jax.random.PRNGKey(0), 64))

    def rnd(shape, scale=0.05):
        return (scale * jax.random.normal(next(keys), shape)).astype(jnp.float32)

    def affine_params():  # gamma ~ 1, beta ~ 0 (perturbed to exercise the math)
        return 1.0 + rnd((1, D), 0.1), rnd((1, D), 0.1)

    n1g, n1b = affine_params()
    f1w1, f1b1 = rnd((D, d_ff)), rnd((1, d_ff))
    f1w2, f1b2 = rnd((d_ff, D)), rnd((1, D))
    n2g, n2b = affine_params()
    wq, bq = rnd((D, D)), rnd((1, D))
    wk, bk = rnd((D, D)), rnd((1, D))
    wv, bv = rnd((D, D)), rnd((1, D))
    wo, bo = rnd((D, D)), rnd((1, D))
    n3g, n3b = affine_params()
    pw1wa, pw1ba = rnd((D, D)), rnd((1, D))     # pointwise_conv1 "act" half
    pw1wg, pw1bg = rnd((D, D)), rnd((1, D))     # pointwise_conv1 "gate" half
    dww, dwb = rnd((ksize, 1, D)), rnd((1, D))  # depthwise taps per channel
    bng, bnb = affine_params()
    bnm = rnd((1, D), 0.1)                      # BN running_mean
    bnv = 1.0 + jnp.abs(rnd((1, D), 0.1))       # BN running_var
    pw2w, pw2b = rnd((D, D)), rnd((1, D))
    n4g, n4b = affine_params()
    f2w1, f2b1 = rnd((D, d_ff)), rnd((1, d_ff))
    f2w2, f2b2 = rnd((d_ff, D)), rnd((1, D))

    params = (n1g, n1b, f1w1, f1b1, f1w2, f1b2,
              n2g, n2b, wq, bq, wk, bk, wv, bv, wo, bo,
              n3g, n3b, pw1wa, pw1ba, pw1wg, pw1bg, dww, dwb,
              bng, bnb, bnm, bnv, pw2w, pw2b,
              n4g, n4b, f2w1, f2b1, f2w2, f2b2)

    x = jax.random.normal(next(keys), (B, T, D), dtype=jnp.float32)

    out = jax.block_until_ready(conformer_block(x, params, n_head=n_head, ksize=ksize))
    ref = jax.block_until_ready(reference_forward(x, params, n_head=n_head, ksize=ksize))

    assert out.shape == (B, T, D)
    err = float(np.max(np.abs(np.asarray(out) - np.asarray(ref))))
    # bf16 MXU operands + approx softmax reciprocal vs. the f32 reference.
    assert np.allclose(np.asarray(out), np.asarray(ref), rtol=2e-2, atol=2e-2), err
    print("KERNEL_OK")
</pallas_src>

<mosaic_0001>
module attributes {stable_mosaic.version = 11 : i64} {
  func.func @conformer_kernel(%arg0: i32, %arg1: memref<1x8x32xf32, #tpu.memory_space<vmem>>, %arg2: memref<1x32xf32, #tpu.memory_space<vmem>>, %arg3: memref<1x32xf32, #tpu.memory_space<vmem>>, %arg4: memref<32x64xbf16, #tpu.memory_space<vmem>>, %arg5: memref<1x64xf32, #tpu.memory_space<vmem>>, %arg6: memref<64x32xbf16, #tpu.memory_space<vmem>>, %arg7: memref<1x32xf32, #tpu.memory_space<vmem>>, %arg8: memref<1x32xf32, #tpu.memory_space<vmem>>, %arg9: memref<1x32xf32, #tpu.memory_space<vmem>>, %arg10: memref<32x32xbf16, #tpu.memory_space<vmem>>, %arg11: memref<1x32xf32, #tpu.memory_space<vmem>>, %arg12: memref<32x32xbf16, #tpu.memory_space<vmem>>, %arg13: memref<1x32xf32, #tpu.memory_space<vmem>>, %arg14: memref<32x32xbf16, #tpu.memory_space<vmem>>, %arg15: memref<1x32xf32, #tpu.memory_space<vmem>>, %arg16: memref<32x32xbf16, #tpu.memory_space<vmem>>, %arg17: memref<1x32xf32, #tpu.memory_space<vmem>>, %arg18: memref<1x32xf32, #tpu.memory_space<vmem>>, %arg19: memref<1x32xf32, #tpu.memory_space<vmem>>, %arg20: memref<32x32xbf16, #tpu.memory_space<vmem>>, %arg21: memref<1x32xf32, #tpu.memory_space<vmem>>, %arg22: memref<32x32xbf16, #tpu.memory_space<vmem>>, %arg23: memref<1x32xf32, #tpu.memory_space<vmem>>, %arg24: memref<3x1x32xf32, #tpu.memory_space<vmem>>, %arg25: memref<1x32xf32, #tpu.memory_space<vmem>>, %arg26: memref<1x32xf32, #tpu.memory_space<vmem>>, %arg27: memref<1x32xf32, #tpu.memory_space<vmem>>, %arg28: memref<1x32xf32, #tpu.memory_space<vmem>>, %arg29: memref<1x32xf32, #tpu.memory_space<vmem>>, %arg30: memref<32x32xbf16, #tpu.memory_space<vmem>>, %arg31: memref<1x32xf32, #tpu.memory_space<vmem>>, %arg32: memref<1x32xf32, #tpu.memory_space<vmem>>, %arg33: memref<1x32xf32, #tpu.memory_space<vmem>>, %arg34: memref<32x64xbf16, #tpu.memory_space<vmem>>, %arg35: memref<1x64xf32, #tpu.memory_space<vmem>>, %arg36: memref<64x32xbf16, #tpu.memory_space<vmem>>, %arg37: memref<1x32xf32, #tpu.memory_space<vmem>>, %arg38: memref<1x8x32xf32, #tpu.memory_space<vmem>>, %arg39: memref<10x32xf32, #tpu.memory_space<vmem>>) attributes {dimension_semantics = [#tpu.dimension_semantics<parallel>], iteration_bounds = array<i64: 2>, scalar_prefetch = 0 : i64, scratch_operands = 1 : i64, tpu.core_type = #tpu.core_type<tc>, window_params = [{transform_indices = @transform_0, window_bounds = array<i64: 1, 8, 32>}, {pipeline_mode = #tpu.pipeline_mode<synchronous>, transform_indices = @transform_1, window_bounds = array<i64: 1, 32>}, {pipeline_mode = #tpu.pipeline_mode<synchronous>, transform_indices = @transform_2, window_bounds = array<i64: 1, 32>}, {pipeline_mode = #tpu.pipeline_mode<synchronous>, transform_indices = @transform_3, window_bounds = array<i64: 32, 64>}, {pipeline_mode = #tpu.pipeline_mode<synchronous>, transform_indices = @transform_4, window_bounds = array<i64: 1, 64>}, {pipeline_mode = #tpu.pipeline_mode<synchronous>, transform_indices = @transform_5, window_bounds = array<i64: 64, 32>}, {pipeline_mode = #tpu.pipeline_mode<synchronous>, transform_indices = @transform_6, window_bounds = array<i64: 1, 32>}, {pipeline_mode = #tpu.pipeline_mode<synchronous>, transform_indices = @transform_7, window_bounds = array<i64: 1, 32>}, {pipeline_mode = #tpu.pipeline_mode<synchronous>, transform_indices = @transform_8, window_bounds = array<i64: 1, 32>}, {pipeline_mode = #tpu.pipeline_mode<synchronous>, transform_indices = @transform_9, window_bounds = array<i64: 32, 32>}, {pipeline_mode = #tpu.pipeline_mode<synchronous>, transform_indices = @transform_10, window_bounds = array<i64: 1, 32>}, {pipeline_mode = #tpu.pipeline_mode<synchronous>, transform_indices = @transform_11, window_bounds = array<i64: 32, 32>}, {pipeline_mode = #tpu.pipeline_mode<synchronous>, transform_indices = @transform_12, window_bounds = array<i64: 1, 32>}, {pipeline_mode = #tpu.pipeline_mode<synchronous>, transform_indices = @transform_13, window_bounds = array<i64: 32, 32>}, {pipeline_mode = #tpu.pipeline_mode<synchronous>, transform_indices = @transform_14, window_bounds = array<i64: 1, 32>}, {pipeline_mode = #tpu.pipeline_mode<synchronous>, transform_indices = @transform_15, window_bounds = array<i64: 32, 32>}, {pipeline_mode = #tpu.pipeline_mode<synchronous>, transform_indices = @transform_16, window_bounds = array<i64: 1, 32>}, {pipeline_mode = #tpu.pipeline_mode<synchronous>, transform_indices = @transform_17, window_bounds = array<i64: 1, 32>}, {pipeline_mode = #tpu.pipeline_mode<synchronous>, transform_indices = @transform_18, window_bounds = array<i64: 1, 32>}, {pipeline_mode = #tpu.pipeline_mode<synchronous>, transform_indices = @transform_19, window_bounds = array<i64: 32, 32>}, {pipeline_mode = #tpu.pipeline_mode<synchronous>, transform_indices = @transform_20, window_bounds = array<i64: 1, 32>}, {pipeline_mode = #tpu.pipeline_mode<synchronous>, transform_indices = @transform_21, window_bounds = array<i64: 32, 32>}, {pipeline_mode = #tpu.pipeline_mode<synchronous>, transform_indices = @transform_22, window_bounds = array<i64: 1, 32>}, {pipeline_mode = #tpu.pipeline_mode<synchronous>, transform_indices = @transform_23, window_bounds = array<i64: 3, 1, 32>}, {pipeline_mode = #tpu.pipeline_mode<synchronous>, transform_indices = @transform_24, window_bounds = array<i64: 1, 32>}, {pipeline_mode = #tpu.pipeline_mode<synchronous>, transform_indices = @transform_25, window_bounds = array<i64: 1, 32>}, {pipeline_mode = #tpu.pipeline_mode<synchronous>, transform_indices = @transform_26, window_bounds = array<i64: 1, 32>}, {pipeline_mode = #tpu.pipeline_mode<synchronous>, transform_indices = @transform_27, window_bounds = array<i64: 1, 32>}, {pipeline_mode = #tpu.pipeline_mode<synchronous>, transform_indices = @transform_28, window_bounds = array<i64: 1, 32>}, {pipeline_mode = #tpu.pipeline_mode<synchronous>, transform_indices = @transform_29, window_bounds = array<i64: 32, 32>}, {pipeline_mode = #tpu.pipeline_mode<synchronous>, transform_indices = @transform_30, window_bounds = array<i64: 1, 32>}, {pipeline_mode = #tpu.pipeline_mode<synchronous>, transform_indices = @transform_31, window_bounds = array<i64: 1, 32>}, {pipeline_mode = #tpu.pipeline_mode<synchronous>, transform_indices = @transform_32, window_bounds = array<i64: 1, 32>}, {pipeline_mode = #tpu.pipeline_mode<synchronous>, transform_indices = @transform_33, window_bounds = array<i64: 32, 64>}, {pipeline_mode = #tpu.pipeline_mode<synchronous>, transform_indices = @transform_34, window_bounds = array<i64: 1, 64>}, {pipeline_mode = #tpu.pipeline_mode<synchronous>, transform_indices = @transform_35, window_bounds = array<i64: 64, 32>}, {pipeline_mode = #tpu.pipeline_mode<synchronous>, transform_indices = @transform_36, window_bounds = array<i64: 1, 32>}, {transform_indices = @transform_37, window_bounds = array<i64: 1, 8, 32>}]} {
    %c0 = arith.constant 0 : index
    %c0_0 = arith.constant 0 : index
    %c0_1 = arith.constant 0 : index
    %0 = vector.load %arg1[%c0, %c0_0, %c0_1] : memref<1x8x32xf32, #tpu.memory_space<vmem>>, vector<1x8x32xf32>
    %1 = vector.shape_cast %0 : vector<1x8x32xf32> to vector<8x32xf32>
    %c0_2 = arith.constant 0 : index
    %c0_3 = arith.constant 0 : index
    %2 = vector.load %arg2[%c0_2, %c0_3] : memref<1x32xf32, #tpu.memory_space<vmem>>, vector<1x32xf32>
    %c0_4 = arith.constant 0 : index
    %c0_5 = arith.constant 0 : index
    %3 = vector.load %arg3[%c0_4, %c0_5] : memref<1x32xf32, #tpu.memory_space<vmem>>, vector<1x32xf32>
    %cst = arith.constant dense<0.000000e+00> : vector<8xf32>
    %4 = vector.multi_reduction <add>, %1, %cst [1] : vector<8x32xf32> to vector<8xf32>
    %5 = vector.shape_cast %4 : vector<8xf32> to vector<8x1xf32>
    %cst_6 = arith.constant 3.200000e+01 : f32
    %6 = vector.broadcast %cst_6 : f32 to vector<8x1xf32>
    %7 = arith.divf %5, %6 : vector<8x1xf32>
    %8 = vector.broadcast %7 : vector<8x1xf32> to vector<8x32xf32>
    %9 = arith.subf %1, %8 : vector<8x32xf32>
    %10 = arith.mulf %9, %9 : vector<8x32xf32>
    %cst_7 = arith.constant dense<0.000000e+00> : vector<8xf32>
    %11 = vector.multi_reduction <add>, %10, %cst_7 [1] : vector<8x32xf32> to vector<8xf32>
    %12 = vector.shape_cast %11 : vector<8xf32> to vector<8x1xf32>
    %cst_8 = arith.constant 3.200000e+01 : f32
    %13 = vector.broadcast %cst_8 : f32 to vector<8x1xf32>
    %14 = arith.divf %12, %13 : vector<8x1xf32>
    %15 = vector.broadcast %7 : vector<8x1xf32> to vector<8x32xf32>
    %16 = arith.subf %1, %15 : vector<8x32xf32>
    %cst_9 = arith.constant 9.99999974E-6 : f32
    %17 = vector.broadcast %cst_9 : f32 to vector<8x1xf32>
    %18 = arith.addf %14, %17 : vector<8x1xf32>
    %19 = math.rsqrt %18 : vector<8x1xf32>
    %20 = vector.broadcast %19 : vector<8x1xf32> to vector<8x32xf32>
    %21 = arith.mulf %16, %20 : vector<8x32xf32>
    %22 = vector.broadcast %2 : vector<1x32xf32> to vector<8x32xf32>
    %23 = arith.mulf %21, %22 : vector<8x32xf32>
    %24 = vector.broadcast %3 : vector<1x32xf32> to vector<8x32xf32>
    %25 = arith.addf %23, %24 : vector<8x32xf32>
    %26 = arith.truncf %25 : vector<8x32xf32> to vector<8x32xbf16>
    %c0_10 = arith.constant 0 : index
    %c0_11 = arith.constant 0 : index
    %27 = vector.load %arg4[%c0_10, %c0_11] : memref<32x64xbf16, #tpu.memory_space<vmem>>, vector<32x64xbf16>
    %cst_12 = arith.constant dense<0.000000e+00> : vector<8x64xf32>
    %28 = tpu.matmul %26, %27, %cst_12 {dimension_numbers = #tpu.dot_dimension_numbers<[1], [0], [0], [1], [0, 0, 1, 1], [], []>} : vector<8x32xbf16>, vector<32x64xbf16>, vector<8x64xf32> -> vector<8x64xf32>
    %c0_13 = arith.constant 0 : index
    %c0_14 = arith.constant 0 : index
    %29 = vector.load %arg5[%c0_13, %c0_14] : memref<1x64xf32, #tpu.memory_space<vmem>>, vector<1x64xf32>
    %30 = vector.broadcast %29 : vector<1x64xf32> to vector<8x64xf32>
    %31 = arith.addf %28, %30 : vector<8x64xf32>
    %cst_15 = arith.constant 0.000000e+00 : f32
    %32 = vector.broadcast %cst_15 : f32 to vector<8x64xf32>
    %33 = arith.subf %32, %31 : vector<8x64xf32>
    %34 = math.exp %33 : vector<8x64xf32>
    %cst_16 = arith.constant 1.000000e+00 : f32
    %35 = vector.broadcast %cst_16 : f32 to vector<8x64xf32>
    %36 = arith.addf %35, %34 : vector<8x64xf32>
    %cst_17 = arith.constant 1.000000e+00 : f32
    %37 = vector.broadcast %cst_17 : f32 to vector<8x64xf32>
    %38 = arith.divf %37, %36 : vector<8x64xf32>
    %39 = arith.mulf %31, %38 : vector<8x64xf32>
    %40 = arith.truncf %39 : vector<8x64xf32> to vector<8x64xbf16>
    %c0_18 = arith.constant 0 : index
    %c0_19 = arith.constant 0 : index
    %41 = vector.load %arg6[%c0_18, %c0_19] : memref<64x32xbf16, #tpu.memory_space<vmem>>, vector<64x32xbf16>
    %cst_20 = arith.constant dense<0.000000e+00> : vector<8x32xf32>
    %42 = tpu.matmul %40, %41, %cst_20 {dimension_numbers = #tpu.dot_dimension_numbers<[1], [0], [0], [1], [0, 0, 1, 1], [], []>} : vector<8x64xbf16>, vector<64x32xbf16>, vector<8x32xf32> -> vector<8x32xf32>
    %c0_21 = arith.constant 0 : index
    %c0_22 = arith.constant 0 : index
    %43 = vector.load %arg7[%c0_21, %c0_22] : memref<1x32xf32, #tpu.memory_space<vmem>>, vector<1x32xf32>
    %44 = vector.broadcast %43 : vector<1x32xf32> to vector<8x32xf32>
    %45 = arith.addf %42, %44 : vector<8x32xf32>
    %cst_23 = arith.constant 5.000000e-01 : f32
    %46 = vector.broadcast %cst_23 : f32 to vector<8x32xf32>
    %47 = arith.mulf %46, %45 : vector<8x32xf32>
    %48 = arith.addf %47, %1 : vector<8x32xf32>
    %c0_24 = arith.constant 0 : index
    %c0_25 = arith.constant 0 : index
    %49 = vector.load %arg8[%c0_24, %c0_25] : memref<1x32xf32, #tpu.memory_space<vmem>>, vector<1x32xf32>
    %c0_26 = arith.constant 0 : index
    %c0_27 = arith.constant 0 : index
    %50 = vector.load %arg9[%c0_26, %c0_27] : memref<1x32xf32, #tpu.memory_space<vmem>>, vector<1x32xf32>
    %cst_28 = arith.constant dense<0.000000e+00> : vector<8xf32>
    %51 = vector.multi_reduction <add>, %48, %cst_28 [1] : vector<8x32xf32> to vector<8xf32>
    %52 = vector.shape_cast %51 : vector<8xf32> to vector<8x1xf32>
    %cst_29 = arith.constant 3.200000e+01 : f32
    %53 = vector.broadcast %cst_29 : f32 to vector<8x1xf32>
    %54 = arith.divf %52, %53 : vector<8x1xf32>
    %55 = vector.broadcast %54 : vector<8x1xf32> to vector<8x32xf32>
    %56 = arith.subf %48, %55 : vector<8x32xf32>
    %57 = arith.mulf %56, %56 : vector<8x32xf32>
    %cst_30 = arith.constant dense<0.000000e+00> : vector<8xf32>
    %58 = vector.multi_reduction <add>, %57, %cst_30 [1] : vector<8x32xf32> to vector<8xf32>
    %59 = vector.shape_cast %58 : vector<8xf32> to vector<8x1xf32>
    %cst_31 = arith.constant 3.200000e+01 : f32
    %60 = vector.broadcast %cst_31 : f32 to vector<8x1xf32>
    %61 = arith.divf %59, %60 : vector<8x1xf32>
    %62 = vector.broadcast %54 : vector<8x1xf32> to vector<8x32xf32>
    %63 = arith.subf %48, %62 : vector<8x32xf32>
    %cst_32 = arith.constant 9.99999974E-6 : f32
    %64 = vector.broadcast %cst_32 : f32 to vector<8x1xf32>
    %65 = arith.addf %61, %64 : vector<8x1xf32>
    %66 = math.rsqrt %65 : vector<8x1xf32>
    %67 = vector.broadcast %66 : vector<8x1xf32> to vector<8x32xf32>
    %68 = arith.mulf %63, %67 : vector<8x32xf32>
    %69 = vector.broadcast %49 : vector<1x32xf32> to vector<8x32xf32>
    %70 = arith.mulf %68, %69 : vector<8x32xf32>
    %71 = vector.broadcast %50 : vector<1x32xf32> to vector<8x32xf32>
    %72 = arith.addf %70, %71 : vector<8x32xf32>
    %73 = arith.truncf %72 : vector<8x32xf32> to vector<8x32xbf16>
    %cst_33 = arith.constant 0.000000e+00 : f32
    %74 = vector.broadcast %cst_33 : f32 to vector<8x32xf32>
    %c0_34 = arith.constant 0 : index
    %c0_35 = arith.constant 0 : index
    %75 = vector.load %arg10[%c0_34, %c0_35] : memref<32x32xbf16, #tpu.memory_space<vmem>>, vector<32x8xbf16>
    %cst_36 = arith.constant dense<0.000000e+00> : vector<8x8xf32>
    %76 = tpu.matmul %73, %75, %cst_36 {dimension_numbers = #tpu.dot_dimension_numbers<[1], [0], [0], [1], [0, 0, 1, 1], [], []>} : vector<8x32xbf16>, vector<32x8xbf16>, vector<8x8xf32> -> vector<8x8xf32>
    %c0_37 = arith.constant 0 : index
    %c0_38 = arith.constant 0 : index
    %77 = vector.load %arg11[%c0_37, %c0_38] : memref<1x32xf32, #tpu.memory_space<vmem>>, vector<1x8xf32>
    %78 = vector.broadcast %77 : vector<1x8xf32> to vector<8x8xf32>
    %79 = arith.addf %76, %78 : vector<8x8xf32>
    %c0_39 = arith.constant 0 : index
    %c0_40 = arith.constant 0 : index
    %80 = vector.load %arg12[%c0_39, %c0_40] : memref<32x32xbf16, #tpu.memory_space<vmem>>, vector<32x8xbf16>
    %cst_41 = arith.constant dense<0.000000e+00> : vector<8x8xf32>
    %81 = tpu.matmul %73, %80, %cst_41 {dimension_numbers = #tpu.dot_dimension_numbers<[1], [0], [0], [1], [0, 0, 1, 1], [], []>} : vector<8x32xbf16>, vector<32x8xbf16>, vector<8x8xf32> -> vector<8x8xf32>
    %c0_42 = arith.constant 0 : index
    %c0_43 = arith.constant 0 : index
    %82 = vector.load %arg13[%c0_42, %c0_43] : memref<1x32xf32, #tpu.memory_space<vmem>>, vector<1x8xf32>
    %83 = vector.broadcast %82 : vector<1x8xf32> to vector<8x8xf32>
    %84 = arith.addf %81, %83 : vector<8x8xf32>
    %c0_44 = arith.constant 0 : index
    %c0_45 = arith.constant 0 : index
    %85 = vector.load %arg14[%c0_44, %c0_45] : memref<32x32xbf16, #tpu.memory_space<vmem>>, vector<32x8xbf16>
    %cst_46 = arith.constant dense<0.000000e+00> : vector<8x8xf32>
    %86 = tpu.matmul %73, %85, %cst_46 {dimension_numbers = #tpu.dot_dimension_numbers<[1], [0], [0], [1], [0, 0, 1, 1], [], []>} : vector<8x32xbf16>, vector<32x8xbf16>, vector<8x8xf32> -> vector<8x8xf32>
    %c0_47 = arith.constant 0 : index
    %c0_48 = arith.constant 0 : index
    %87 = vector.load %arg15[%c0_47, %c0_48] : memref<1x32xf32, #tpu.memory_space<vmem>>, vector<1x8xf32>
    %88 = vector.broadcast %87 : vector<1x8xf32> to vector<8x8xf32>
    %89 = arith.addf %86, %88 : vector<8x8xf32>
    %90 = arith.truncf %79 : vector<8x8xf32> to vector<8x8xbf16>
    %91 = arith.truncf %84 : vector<8x8xf32> to vector<8x8xbf16>
    %cst_49 = arith.constant dense<0.000000e+00> : vector<8x8xf32>
    %92 = tpu.matmul %90, %91, %cst_49 {dimension_numbers = #tpu.dot_dimension_numbers<[1], [1], [0], [0], [0, 0, 1, 0], [], []>} : vector<8x8xbf16>, vector<8x8xbf16>, vector<8x8xf32> -> vector<8x8xf32>
    %cst_50 = arith.constant dense<0xFF800000> : vector<8xf32>
    %93 = vector.multi_reduction <maximumf>, %92, %cst_50 [1] : vector<8x8xf32> to vector<8xf32>
    %94 = vector.shape_cast %93 : vector<8xf32> to vector<8x1xf32>
    %95 = vector.broadcast %94 : vector<8x1xf32> to vector<8x8xf32>
    %96 = arith.subf %92, %95 : vector<8x8xf32>
    %97 = math.exp %96 : vector<8x8xf32>
    %cst_51 = arith.constant dense<0.000000e+00> : vector<8xf32>
    %98 = vector.multi_reduction <add>, %97, %cst_51 [1] : vector<8x8xf32> to vector<8xf32>
    %99 = vector.shape_cast %98 : vector<8xf32> to vector<8x1xf32>
    %100 = tpu.reciprocal %99 {approx = true} : vector<8x1xf32> -> vector<8x1xf32>
    %101 = vector.broadcast %100 : vector<8x1xf32> to vector<8x8xf32>
    %102 = arith.mulf %97, %101 : vector<8x8xf32>
    %103 = arith.truncf %102 : vector<8x8xf32> to vector<8x8xbf16>
    %104 = arith.truncf %89 : vector<8x8xf32> to vector<8x8xbf16>
    %cst_52 = arith.constant dense<0.000000e+00> : vector<8x8xf32>
    %105 = tpu.matmul %103, %104, %cst_52 {dimension_numbers = #tpu.dot_dimension_numbers<[1], [0], [0], [1], [0, 0, 1, 1], [], []>} : vector<8x8xbf16>, vector<8x8xbf16>, vector<8x8xf32> -> vector<8x8xf32>
    %106 = arith.truncf %105 : vector<8x8xf32> to vector<8x8xbf16>
    %c0_53 = arith.constant 0 : index
    %c0_54 = arith.constant 0 : index
    %107 = vector.load %arg16[%c0_53, %c0_54] : memref<32x32xbf16, #tpu.memory_space<vmem>>, vector<8x32xbf16>
    %cst_55 = arith.constant dense<0.000000e+00> : vector<8x32xf32>
    %108 = tpu.matmul %106, %107, %cst_55 {dimension_numbers = #tpu.dot_dimension_numbers<[1], [0], [0], [1], [0, 0, 1, 1], [], []>} : vector<8x8xbf16>, vector<8x32xbf16>, vector<8x32xf32> -> vector<8x32xf32>
    %109 = arith.addf %74, %108 : vector<8x32xf32>
    %c0_56 = arith.constant 0 : index
    %c8 = arith.constant 8 : index
    %110 = vector.load %arg10[%c0_56, %c8] : memref<32x32xbf16, #tpu.memory_space<vmem>>, vector<32x8xbf16>
    %cst_57 = arith.constant dense<0.000000e+00> : vector<8x8xf32>
    %111 = tpu.matmul %73, %110, %cst_57 {dimension_numbers = #tpu.dot_dimension_numbers<[1], [0], [0], [1], [0, 0, 1, 1], [], []>} : vector<8x32xbf16>, vector<32x8xbf16>, vector<8x8xf32> -> vector<8x8xf32>
    %c0_58 = arith.constant 0 : index
    %c8_59 = arith.constant 8 : index
    %112 = vector.load %arg11[%c0_58, %c8_59] : memref<1x32xf32, #tpu.memory_space<vmem>>, vector<1x8xf32>
    %113 = vector.broadcast %112 : vector<1x8xf32> to vector<8x8xf32>
    %114 = arith.addf %111, %113 : vector<8x8xf32>
    %c0_60 = arith.constant 0 : index
    %c8_61 = arith.constant 8 : index
    %115 = vector.load %arg12[%c0_60, %c8_61] : memref<32x32xbf16, #tpu.memory_space<vmem>>, vector<32x8xbf16>
    %cst_62 = arith.constant dense<0.000000e+00> : vector<8x8xf32>
    %116 = tpu.matmul %73, %115, %cst_62 {dimension_numbers = #tpu.dot_dimension_numbers<[1], [0], [0], [1], [0, 0, 1, 1], [], []>} : vector<8x32xbf16>, vector<32x8xbf16>, vector<8x8xf32> -> vector<8x8xf32>
    %c0_63 = arith.constant 0 : index
    %c8_64 = arith.constant 8 : index
    %117 = vector.load %arg13[%c0_63, %c8_64] : memref<1x32xf32, #tpu.memory_space<vmem>>, vector<1x8xf32>
    %118 = vector.broadcast %117 : vector<1x8xf32> to vector<8x8xf32>
    %119 = arith.addf %116, %118 : vector<8x8xf32>
    %c0_65 = arith.constant 0 : index
    %c8_66 = arith.constant 8 : index
    %120 = vector.load %arg14[%c0_65, %c8_66] : memref<32x32xbf16, #tpu.memory_space<vmem>>, vector<32x8xbf16>
    %cst_67 = arith.constant dense<0.000000e+00> : vector<8x8xf32>
    %121 = tpu.matmul %73, %120, %cst_67 {dimension_numbers = #tpu.dot_dimension_numbers<[1], [0], [0], [1], [0, 0, 1, 1], [], []>} : vector<8x32xbf16>, vector<32x8xbf16>, vector<8x8xf32> -> vector<8x8xf32>
    %c0_68 = arith.constant 0 : index
    %c8_69 = arith.constant 8 : index
    %122 = vector.load %arg15[%c0_68, %c8_69] : memref<1x32xf32, #tpu.memory_space<vmem>>, vector<1x8xf32>
    %123 = vector.broadcast %122 : vector<1x8xf32> to vector<8x8xf32>
    %124 = arith.addf %121, %123 : vector<8x8xf32>
    %125 = arith.truncf %114 : vector<8x8xf32> to vector<8x8xbf16>
    %126 = arith.truncf %119 : vector<8x8xf32> to vector<8x8xbf16>
    %cst_70 = arith.constant dense<0.000000e+00> : vector<8x8xf32>
    %127 = tpu.matmul %125, %126, %cst_70 {dimension_numbers = #tpu.dot_dimension_numbers<[1], [1], [0], [0], [0, 0, 1, 0], [], []>} : vector<8x8xbf16>, vector<8x8xbf16>, vector<8x8xf32> -> vector<8x8xf32>
    %cst_71 = arith.constant dense<0xFF800000> : vector<8xf32>
    %128 = vector.multi_reduction <maximumf>, %127, %cst_71 [1] : vector<8x8xf32> to vector<8xf32>
    %129 = vector.shape_cast %128 : vector<8xf32> to vector<8x1xf32>
    %130 = vector.broadcast %129 : vector<8x1xf32> to vector<8x8xf32>
    %131 = arith.subf %127, %130 : vector<8x8xf32>
    %132 = math.exp %131 : vector<8x8xf32>
    %cst_72 = arith.constant dense<0.000000e+00> : vector<8xf32>
    %133 = vector.multi_reduction <add>, %132, %cst_72 [1] : vector<8x8xf32> to vector<8xf32>
    %134 = vector.shape_cast %133 : vector<8xf32> to vector<8x1xf32>
    %135 = tpu.reciprocal %134 {approx = true} : vector<8x1xf32> -> vector<8x1xf32>
    %136 = vector.broadcast %135 : vector<8x1xf32> to vector<8x8xf32>
    %137 = arith.mulf %132, %136 : vector<8x8xf32>
    %138 = arith.truncf %137 : vector<8x8xf32> to vector<8x8xbf16>
    %139 = arith.truncf %124 : vector<8x8xf32> to vector<8x8xbf16>
    %cst_73 = arith.constant dense<0.000000e+00> : vector<8x8xf32>
    %140 = tpu.matmul %138, %139, %cst_73 {dimension_numbers = #tpu.dot_dimension_numbers<[1], [0], [0], [1], [0, 0, 1, 1], [], []>} : vector<8x8xbf16>, vector<8x8xbf16>, vector<8x8xf32> -> vector<8x8xf32>
    %141 = arith.truncf %140 : vector<8x8xf32> to vector<8x8xbf16>
    %c8_74 = arith.constant 8 : index
    %c0_75 = arith.constant 0 : index
    %142 = vector.load %arg16[%c8_74, %c0_75] : memref<32x32xbf16, #tpu.memory_space<vmem>>, vector<8x32xbf16>
    %cst_76 = arith.constant dense<0.000000e+00> : vector<8x32xf32>
    %143 = tpu.matmul %141, %142, %cst_76 {dimension_numbers = #tpu.dot_dimension_numbers<[1], [0], [0], [1], [0, 0, 1, 1], [], []>} : vector<8x8xbf16>, vector<8x32xbf16>, vector<8x32xf32> -> vector<8x32xf32>
    %144 = arith.addf %109, %143 : vector<8x32xf32>
    %c0_77 = arith.constant 0 : index
    %c16 = arith.constant 16 : index
    %145 = vector.load %arg10[%c0_77, %c16] : memref<32x32xbf16, #tpu.memory_space<vmem>>, vector<32x8xbf16>
    %cst_78 = arith.constant dense<0.000000e+00> : vector<8x8xf32>
    %146 = tpu.matmul %73, %145, %cst_78 {dimension_numbers = #tpu.dot_dimension_numbers<[1], [0], [0], [1], [0, 0, 1, 1], [], []>} : vector<8x32xbf16>, vector<32x8xbf16>, vector<8x8xf32> -> vector<8x8xf32>
    %c0_79 = arith.constant 0 : index
    %c16_80 = arith.constant 16 : index
    %147 = vector.load %arg11[%c0_79, %c16_80] : memref<1x32xf32, #tpu.memory_space<vmem>>, vector<1x8xf32>
    %148 = vector.broadcast %147 : vector<1x8xf32> to vector<8x8xf32>
    %149 = arith.addf %146, %148 : vector<8x8xf32>
    %c0_81 = arith.constant 0 : index
    %c16_82 = arith.constant 16 : index
    %150 = vector.load %arg12[%c0_81, %c16_82] : memref<32x32xbf16, #tpu.memory_space<vmem>>, vector<32x8xbf16>
    %cst_83 = arith.constant dense<0.000000e+00> : vector<8x8xf32>
    %151 = tpu.matmul %73, %150, %cst_83 {dimension_numbers = #tpu.dot_dimension_numbers<[1], [0], [0], [1], [0, 0, 1, 1], [], []>} : vector<8x32xbf16>, vector<32x8xbf16>, vector<8x8xf32> -> vector<8x8xf32>
    %c0_84 = arith.constant 0 : index
    %c16_85 = arith.constant 16 : index
    %152 = vector.load %arg13[%c0_84, %c16_85] : memref<1x32xf32, #tpu.memory_space<vmem>>, vector<1x8xf32>
    %153 = vector.broadcast %152 : vector<1x8xf32> to vector<8x8xf32>
    %154 = arith.addf %151, %153 : vector<8x8xf32>
    %c0_86 = arith.constant 0 : index
    %c16_87 = arith.constant 16 : index
    %155 = vector.load %arg14[%c0_86, %c16_87] : memref<32x32xbf16, #tpu.memory_space<vmem>>, vector<32x8xbf16>
    %cst_88 = arith.constant dense<0.000000e+00> : vector<8x8xf32>
    %156 = tpu.matmul %73, %155, %cst_88 {dimension_numbers = #tpu.dot_dimension_numbers<[1], [0], [0], [1], [0, 0, 1, 1], [], []>} : vector<8x32xbf16>, vector<32x8xbf16>, vector<8x8xf32> -> vector<8x8xf32>
    %c0_89 = arith.constant 0 : index
    %c16_90 = arith.constant 16 : index
    %157 = vector.load %arg15[%c0_89, %c16_90] : memref<1x32xf32, #tpu.memory_space<vmem>>, vector<1x8xf32>
    %158 = vector.broadcast %157 : vector<1x8xf32> to vector<8x8xf32>
    %159 = arith.addf %156, %158 : vector<8x8xf32>
    %160 = arith.truncf %149 : vector<8x8xf32> to vector<8x8xbf16>
    %161 = arith.truncf %154 : vector<8x8xf32> to vector<8x8xbf16>
    %cst_91 = arith.constant dense<0.000000e+00> : vector<8x8xf32>
    %162 = tpu.matmul %160, %161, %cst_91 {dimension_numbers = #tpu.dot_dimension_numbers<[1], [1], [0], [0], [0, 0, 1, 0], [], []>} : vector<8x8xbf16>, vector<8x8xbf16>, vector<8x8xf32> -> vector<8x8xf32>
    %cst_92 = arith.constant dense<0xFF800000> : vector<8xf32>
    %163 = vector.multi_reduction <maximumf>, %162, %cst_92 [1] : vector<8x8xf32> to vector<8xf32>
    %164 = vector.shape_cast %163 : vector<8xf32> to vector<8x1xf32>
    %165 = vector.broadcast %164 : vector<8x1xf32> to vector<8x8xf32>
    %166 = arith.subf %162, %165 : vector<8x8xf32>
    %167 = math.exp %166 : vector<8x8xf32>
    %cst_93 = arith.constant dense<0.000000e+00> : vector<8xf32>
    %168 = vector.multi_reduction <add>, %167, %cst_93 [1] : vector<8x8xf32> to vector<8xf32>
    %169 = vector.shape_cast %168 : vector<8xf32> to vector<8x1xf32>
    %170 = tpu.reciprocal %169 {approx = true} : vector<8x1xf32> -> vector<8x1xf32>
    %171 = vector.broadcast %170 : vector<8x1xf32> to vector<8x8xf32>
    %172 = arith.mulf %167, %171 : vector<8x8xf32>
    %173 = arith.truncf %172 : vector<8x8xf32> to vector<8x8xbf16>
    %174 = arith.truncf %159 : vector<8x8xf32> to vector<8x8xbf16>
    %cst_94 = arith.constant dense<0.000000e+00> : vector<8x8xf32>
    %175 = tpu.matmul %173, %174, %cst_94 {dimension_numbers = #tpu.dot_dimension_numbers<[1], [0], [0], [1], [0, 0, 1, 1], [], []>} : vector<8x8xbf16>, vector<8x8xbf16>, vector<8x8xf32> -> vector<8x8xf32>
    %176 = arith.truncf %175 : vector<8x8xf32> to vector<8x8xbf16>
    %c16_95 = arith.constant 16 : index
    %c0_96 = arith.constant 0 : index
    %177 = vector.load %arg16[%c16_95, %c0_96] : memref<32x32xbf16, #tpu.memory_space<vmem>>, vector<8x32xbf16>
    %cst_97 = arith.constant dense<0.000000e+00> : vector<8x32xf32>
    %178 = tpu.matmul %176, %177, %cst_97 {dimension_numbers = #tpu.dot_dimension_numbers<[1], [0], [0], [1], [0, 0, 1, 1], [], []>} : vector<8x8xbf16>, vector<8x32xbf16>, vector<8x32xf32> -> vector<8x32xf32>
    %179 = arith.addf %144, %178 : vector<8x32xf32>
    %c0_98 = arith.constant 0 : index
    %c24 = arith.constant 24 : index
    %180 = vector.load %arg10[%c0_98, %c24] : memref<32x32xbf16, #tpu.memory_space<vmem>>, vector<32x8xbf16>
    %cst_99 = arith.constant dense<0.000000e+00> : vector<8x8xf32>
    %181 = tpu.matmul %73, %180, %cst_99 {dimension_numbers = #tpu.dot_dimension_numbers<[1], [0], [0], [1], [0, 0, 1, 1], [], []>} : vector<8x32xbf16>, vector<32x8xbf16>, vector<8x8xf32> -> vector<8x8xf32>
    %c0_100 = arith.constant 0 : index
    %c24_101 = arith.constant 24 : index
    %182 = vector.load %arg11[%c0_100, %c24_101] : memref<1x32xf32, #tpu.memory_space<vmem>>, vector<1x8xf32>
    %183 = vector.broadcast %182 : vector<1x8xf32> to vector<8x8xf32>
    %184 = arith.addf %181, %183 : vector<8x8xf32>
    %c0_102 = arith.constant 0 : index
    %c24_103 = arith.constant 24 : index
    %185 = vector.load %arg12[%c0_102, %c24_103] : memref<32x32xbf16, #tpu.memory_space<vmem>>, vector<32x8xbf16>
    %cst_104 = arith.constant dense<0.000000e+00> : vector<8x8xf32>
    %186 = tpu.matmul %73, %185, %cst_104 {dimension_numbers = #tpu.dot_dimension_numbers<[1], [0], [0], [1], [0, 0, 1, 1], [], []>} : vector<8x32xbf16>, vector<32x8xbf16>, vector<8x8xf32> -> vector<8x8xf32>
    %c0_105 = arith.constant 0 : index
    %c24_106 = arith.constant 24 : index
    %187 = vector.load %arg13[%c0_105, %c24_106] : memref<1x32xf32, #tpu.memory_space<vmem>>, vector<1x8xf32>
    %188 = vector.broadcast %187 : vector<1x8xf32> to vector<8x8xf32>
    %189 = arith.addf %186, %188 : vector<8x8xf32>
    %c0_107 = arith.constant 0 : index
    %c24_108 = arith.constant 24 : index
    %190 = vector.load %arg14[%c0_107, %c24_108] : memref<32x32xbf16, #tpu.memory_space<vmem>>, vector<32x8xbf16>
    %cst_109 = arith.constant dense<0.000000e+00> : vector<8x8xf32>
    %191 = tpu.matmul %73, %190, %cst_109 {dimension_numbers = #tpu.dot_dimension_numbers<[1], [0], [0], [1], [0, 0, 1, 1], [], []>} : vector<8x32xbf16>, vector<32x8xbf16>, vector<8x8xf32> -> vector<8x8xf32>
    %c0_110 = arith.constant 0 : index
    %c24_111 = arith.constant 24 : index
    %192 = vector.load %arg15[%c0_110, %c24_111] : memref<1x32xf32, #tpu.memory_space<vmem>>, vector<1x8xf32>
    %193 = vector.broadcast %192 : vector<1x8xf32> to vector<8x8xf32>
    %194 = arith.addf %191, %193 : vector<8x8xf32>
    %195 = arith.truncf %184 : vector<8x8xf32> to vector<8x8xbf16>
    %196 = arith.truncf %189 : vector<8x8xf32> to vector<8x8xbf16>
    %cst_112 = arith.constant dense<0.000000e+00> : vector<8x8xf32>
    %197 = tpu.matmul %195, %196, %cst_112 {dimension_numbers = #tpu.dot_dimension_numbers<[1], [1], [0], [0], [0, 0, 1, 0], [], []>} : vector<8x8xbf16>, vector<8x8xbf16>, vector<8x8xf32> -> vector<8x8xf32>
    %cst_113 = arith.constant dense<0xFF800000> : vector<8xf32>
    %198 = vector.multi_reduction <maximumf>, %197, %cst_113 [1] : vector<8x8xf32> to vector<8xf32>
    %199 = vector.shape_cast %198 : vector<8xf32> to vector<8x1xf32>
    %200 = vector.broadcast %199 : vector<8x1xf32> to vector<8x8xf32>
    %201 = arith.subf %197, %200 : vector<8x8xf32>
    %202 = math.exp %201 : vector<8x8xf32>
    %cst_114 = arith.constant dense<0.000000e+00> : vector<8xf32>
    %203 = vector.multi_reduction <add>, %202, %cst_114 [1] : vector<8x8xf32> to vector<8xf32>
    %204 = vector.shape_cast %203 : vector<8xf32> to vector<8x1xf32>
    %205 = tpu.reciprocal %204 {approx = true} : vector<8x1xf32> -> vector<8x1xf32>
    %206 = vector.broadcast %205 : vector<8x1xf32> to vector<8x8xf32>
    %207 = arith.mulf %202, %206 : vector<8x8xf32>
    %208 = arith.truncf %207 : vector<8x8xf32> to vector<8x8xbf16>
    %209 = arith.truncf %194 : vector<8x8xf32> to vector<8x8xbf16>
    %cst_115 = arith.constant dense<0.000000e+00> : vector<8x8xf32>
    %210 = tpu.matmul %208, %209, %cst_115 {dimension_numbers = #tpu.dot_dimension_numbers<[1], [0], [0], [1], [0, 0, 1, 1], [], []>} : vector<8x8xbf16>, vector<8x8xbf16>, vector<8x8xf32> -> vector<8x8xf32>
    %211 = arith.truncf %210 : vector<8x8xf32> to vector<8x8xbf16>
    %c24_116 = arith.constant 24 : index
    %c0_117 = arith.constant 0 : index
    %212 = vector.load %arg16[%c24_116, %c0_117] : memref<32x32xbf16, #tpu.memory_space<vmem>>, vector<8x32xbf16>
    %cst_118 = arith.constant dense<0.000000e+00> : vector<8x32xf32>
    %213 = tpu.matmul %211, %212, %cst_118 {dimension_numbers = #tpu.dot_dimension_numbers<[1], [0], [0], [1], [0, 0, 1, 1], [], []>} : vector<8x8xbf16>, vector<8x32xbf16>, vector<8x32xf32> -> vector<8x32xf32>
    %214 = arith.addf %179, %213 : vector<8x32xf32>
    %c0_119 = arith.constant 0 : index
    %c0_120 = arith.constant 0 : index
    %215 = vector.load %arg17[%c0_119, %c0_120] : memref<1x32xf32, #tpu.memory_space<vmem>>, vector<1x32xf32>
    %216 = vector.broadcast %215 : vector<1x32xf32> to vector<8x32xf32>
    %217 = arith.addf %214, %216 : vector<8x32xf32>
    %218 = arith.addf %217, %48 : vector<8x32xf32>
    %c0_121 = arith.constant 0 : index
    %c0_122 = arith.constant 0 : index
    %219 = vector.load %arg18[%c0_121, %c0_122] : memref<1x32xf32, #tpu.memory_space<vmem>>, vector<1x32xf32>
    %c0_123 = arith.constant 0 : index
    %c0_124 = arith.constant 0 : index
    %220 = vector.load %arg19[%c0_123, %c0_124] : memref<1x32xf32, #tpu.memory_space<vmem>>, vector<1x32xf32>
    %cst_125 = arith.constant dense<0.000000e+00> : vector<8xf32>
    %221 = vector.multi_reduction <add>, %218, %cst_125 [1] : vector<8x32xf32> to vector<8xf32>
    %222 = vector.shape_cast %221 : vector<8xf32> to vector<8x1xf32>
    %cst_126 = arith.constant 3.200000e+01 : f32
    %223 = vector.broadcast %cst_126 : f32 to vector<8x1xf32>
    %224 = arith.divf %222, %223 : vector<8x1xf32>
    %225 = vector.broadcast %224 : vector<8x1xf32> to vector<8x32xf32>
    %226 = arith.subf %218, %225 : vector<8x32xf32>
    %227 = arith.mulf %226, %226 : vector<8x32xf32>
    %cst_127 = arith.constant dense<0.000000e+00> : vector<8xf32>
    %228 = vector.multi_reduction <add>, %227, %cst_127 [1] : vector<8x32xf32> to vector<8xf32>
    %229 = vector.shape_cast %228 : vector<8xf32> to vector<8x1xf32>
    %cst_128 = arith.constant 3.200000e+01 : f32
    %230 = vector.broadcast %cst_128 : f32 to vector<8x1xf32>
    %231 = arith.divf %229, %230 : vector<8x1xf32>
    %232 = vector.broadcast %224 : vector<8x1xf32> to vector<8x32xf32>
    %233 = arith.subf %218, %232 : vector<8x32xf32>
    %cst_129 = arith.constant 9.99999974E-6 : f32
    %234 = vector.broadcast %cst_129 : f32 to vector<8x1xf32>
    %235 = arith.addf %231, %234 : vector<8x1xf32>
    %236 = math.rsqrt %235 : vector<8x1xf32>
    %237 = vector.broadcast %236 : vector<8x1xf32> to vector<8x32xf32>
    %238 = arith.mulf %233, %237 : vector<8x32xf32>
    %239 = vector.broadcast %219 : vector<1x32xf32> to vector<8x32xf32>
    %240 = arith.mulf %238, %239 : vector<8x32xf32>
    %241 = vector.broadcast %220 : vector<1x32xf32> to vector<8x32xf32>
    %242 = arith.addf %240, %241 : vector<8x32xf32>
    %243 = arith.truncf %242 : vector<8x32xf32> to vector<8x32xbf16>
    %c0_130 = arith.constant 0 : index
    %c0_131 = arith.constant 0 : index
    %244 = vector.load %arg20[%c0_130, %c0_131] : memref<32x32xbf16, #tpu.memory_space<vmem>>, vector<32x32xbf16>
    %cst_132 = arith.constant dense<0.000000e+00> : vector<8x32xf32>
    %245 = tpu.matmul %243, %244, %cst_132 {dimension_numbers = #tpu.dot_dimension_numbers<[1], [0], [0], [1], [0, 0, 1, 1], [], []>} : vector<8x32xbf16>, vector<32x32xbf16>, vector<8x32xf32> -> vector<8x32xf32>
    %c0_133 = arith.constant 0 : index
    %c0_134 = arith.constant 0 : index
    %246 = vector.load %arg21[%c0_133, %c0_134] : memref<1x32xf32, #tpu.memory_space<vmem>>, vector<1x32xf32>
    %247 = vector.broadcast %246 : vector<1x32xf32> to vector<8x32xf32>
    %248 = arith.addf %245, %247 : vector<8x32xf32>
    %c0_135 = arith.constant 0 : index
    %c0_136 = arith.constant 0 : index
    %249 = vector.load %arg22[%c0_135, %c0_136] : memref<32x32xbf16, #tpu.memory_space<vmem>>, vector<32x32xbf16>
    %cst_137 = arith.constant dense<0.000000e+00> : vector<8x32xf32>
    %250 = tpu.matmul %243, %249, %cst_137 {dimension_numbers = #tpu.dot_dimension_numbers<[1], [0], [0], [1], [0, 0, 1, 1], [], []>} : vector<8x32xbf16>, vector<32x32xbf16>, vector<8x32xf32> -> vector<8x32xf32>
    %c0_138 = arith.constant 0 : index
    %c0_139 = arith.constant 0 : index
    %251 = vector.load %arg23[%c0_138, %c0_139] : memref<1x32xf32, #tpu.memory_space<vmem>>, vector<1x32xf32>
    %252 = vector.broadcast %251 : vector<1x32xf32> to vector<8x32xf32>
    %253 = arith.addf %250, %252 : vector<8x32xf32>
    %cst_140 = arith.constant 0.000000e+00 : f32
    %254 = vector.broadcast %cst_140 : f32 to vector<8x32xf32>
    %255 = arith.subf %254, %253 : vector<8x32xf32>
    %256 = math.exp %255 : vector<8x32xf32>
    %cst_141 = arith.constant 1.000000e+00 : f32
    %257 = vector.broadcast %cst_141 : f32 to vector<8x32xf32>
    %258 = arith.addf %257, %256 : vector<8x32xf32>
    %cst_142 = arith.constant 1.000000e+00 : f32
    %259 = vector.broadcast %cst_142 : f32 to vector<8x32xf32>
    %260 = arith.divf %259, %258 : vector<8x32xf32>
    %261 = arith.mulf %248, %260 : vector<8x32xf32>
    %cst_143 = arith.constant 0.000000e+00 : f32
    %262 = vector.broadcast %cst_143 : f32 to vector<1x32xf32>
    %c0_144 = arith.constant 0 : index
    %c0_145 = arith.constant 0 : index
    %263 = vector.load %arg39[%c0_144, %c0_145] : memref<10x32xf32, #tpu.memory_space<vmem>>, vector<1x32xf32>
    tpu.vector_store %arg39[%c0_144, %c0_145], %262 {strides = array<i32>} : memref<10x32xf32, #tpu.memory_space<vmem>>, vector<1x32xf32>,
    %c9 = arith.constant 9 : index
    %c0_146 = arith.constant 0 : index
    %264 = vector.load %arg39[%c9, %c0_146] : memref<10x32xf32, #tpu.memory_space<vmem>>, vector<1x32xf32>
    tpu.vector_store %arg39[%c9, %c0_146], %262 {strides = array<i32>} : memref<10x32xf32, #tpu.memory_space<vmem>>, vector<1x32xf32>,
    %c1 = arith.constant 1 : index
    %c0_147 = arith.constant 0 : index
    %265 = vector.load %arg39[%c1, %c0_147] : memref<10x32xf32, #tpu.memory_space<vmem>>, vector<8x32xf32>
    tpu.vector_store %arg39[%c1, %c0_147], %261 {strides = array<i32>} : memref<10x32xf32, #tpu.memory_space<vmem>>, vector<8x32xf32>,
    %c0_148 = arith.constant 0 : index
    %c0_149 = arith.constant 0 : index
    %c0_150 = arith.constant 0 : index
    %266 = vector.load %arg24[%c0_148, %c0_149, %c0_150] : memref<3x1x32xf32, #tpu.memory_space<vmem>>, vector<3x1x32xf32>
    %cst_151 = arith.constant 0.000000e+00 : f32
    %267 = vector.broadcast %cst_151 : f32 to vector<8x32xf32>
    %c0_152 = arith.constant 0 : index
    %c0_153 = arith.constant 0 : index
    %268 = vector.load %arg39[%c0_152, %c0_153] : memref<10x32xf32, #tpu.memory_space<vmem>>, vector<8x32xf32>
    %269 = vector.extract_strided_slice %266 {offsets = [0, 0, 0], sizes = [1, 1, 32], strides = [1, 1, 1]} : vector<3x1x32xf32> to vector<1x1x32xf32>
    %270 = vector.shape_cast %269 : vector<1x1x32xf32> to vector<1x32xf32>
    %271 = vector.broadcast %270 : vector<1x32xf32> to vector<8x32xf32>
    %272 = arith.mulf %268, %271 : vector<8x32xf32>
    %273 = arith.addf %267, %272 : vector<8x32xf32>
    %c1_154 = arith.constant 1 : index
    %c0_155 = arith.constant 0 : index
    %274 = vector.load %arg39[%c1_154, %c0_155] : memref<10x32xf32, #tpu.memory_space<vmem>>, vector<8x32xf32>
    %275 = vector.extract_strided_slice %266 {offsets = [1, 0, 0], sizes = [1, 1, 32], strides = [1, 1, 1]} : vector<3x1x32xf32> to vector<1x1x32xf32>
    %276 = vector.shape_cast %275 : vector<1x1x32xf32> to vector<1x32xf32>
    %277 = vector.broadcast %276 : vector<1x32xf32> to vector<8x32xf32>
    %278 = arith.mulf %274, %277 : vector<8x32xf32>
    %279 = arith.addf %273, %278 : vector<8x32xf32>
    %c2 = arith.constant 2 : index
    %c0_156 = arith.constant 0 : index
    %280 = vector.load %arg39[%c2, %c0_156] : memref<10x32xf32, #tpu.memory_space<vmem>>, vector<8x32xf32>
    %281 = vector.extract_strided_slice %266 {offsets = [2, 0, 0], sizes = [1, 1, 32], strides = [1, 1, 1]} : vector<3x1x32xf32> to vector<1x1x32xf32>
    %282 = vector.shape_cast %281 : vector<1x1x32xf32> to vector<1x32xf32>
    %283 = vector.broadcast %282 : vector<1x32xf32> to vector<8x32xf32>
    %284 = arith.mulf %280, %283 : vector<8x32xf32>
    %285 = arith.addf %279, %284 : vector<8x32xf32>
    %c0_157 = arith.constant 0 : index
    %c0_158 = arith.constant 0 : index
    %286 = vector.load %arg25[%c0_157, %c0_158] : memref<1x32xf32, #tpu.memory_space<vmem>>, vector<1x32xf32>
    %287 = vector.broadcast %286 : vector<1x32xf32> to vector<8x32xf32>
    %288 = arith.addf %285, %287 : vector<8x32xf32>
    %c0_159 = arith.constant 0 : index
    %c0_160 = arith.constant 0 : index
    %289 = vector.load %arg28[%c0_159, %c0_160] : memref<1x32xf32, #tpu.memory_space<vmem>>, vector<1x32xf32>
    %290 = vector.broadcast %289 : vector<1x32xf32> to vector<8x32xf32>
    %291 = arith.subf %288, %290 : vector<8x32xf32>
    %c0_161 = arith.constant 0 : index
    %c0_162 = arith.constant 0 : index
    %292 = vector.load %arg29[%c0_161, %c0_162] : memref<1x32xf32, #tpu.memory_space<vmem>>, vector<1x32xf32>
    %cst_163 = arith.constant 9.99999974E-6 : f32
    %293 = vector.broadcast %cst_163 : f32 to vector<1x32xf32>
    %294 = arith.addf %292, %293 : vector<1x32xf32>
    %295 = math.rsqrt %294 : vector<1x32xf32>
    %296 = vector.broadcast %295 : vector<1x32xf32> to vector<8x32xf32>
    %297 = arith.mulf %291, %296 : vector<8x32xf32>
    %c0_164 = arith.constant 0 : index
    %c0_165 = arith.constant 0 : index
    %298 = vector.load %arg26[%c0_164, %c0_165] : memref<1x32xf32, #tpu.memory_space<vmem>>, vector<1x32xf32>
    %299 = vector.broadcast %298 : vector<1x32xf32> to vector<8x32xf32>
    %300 = arith.mulf %297, %299 : vector<8x32xf32>
    %c0_166 = arith.constant 0 : index
    %c0_167 = arith.constant 0 : index
    %301 = vector.load %arg27[%c0_166, %c0_167] : memref<1x32xf32, #tpu.memory_space<vmem>>, vector<1x32xf32>
    %302 = vector.broadcast %301 : vector<1x32xf32> to vector<8x32xf32>
    %303 = arith.addf %300, %302 : vector<8x32xf32>
    %cst_168 = arith.constant 0.000000e+00 : f32
    %304 = vector.broadcast %cst_168 : f32 to vector<8x32xf32>
    %305 = arith.subf %304, %303 : vector<8x32xf32>
    %306 = math.exp %305 : vector<8x32xf32>
    %cst_169 = arith.constant 1.000000e+00 : f32
    %307 = vector.broadcast %cst_169 : f32 to vector<8x32xf32>
    %308 = arith.addf %307, %306 : vector<8x32xf32>
    %cst_170 = arith.constant 1.000000e+00 : f32
    %309 = vector.broadcast %cst_170 : f32 to vector<8x32xf32>
    %310 = arith.divf %309, %308 : vector<8x32xf32>
    %311 = arith.mulf %303, %310 : vector<8x32xf32>
    %312 = arith.truncf %311 : vector<8x32xf32> to vector<8x32xbf16>
    %c0_171 = arith.constant 0 : index
    %c0_172 = arith.constant 0 : index
    %313 = vector.load %arg30[%c0_171, %c0_172] : memref<32x32xbf16, #tpu.memory_space<vmem>>, vector<32x32xbf16>
    %cst_173 = arith.constant dense<0.000000e+00> : vector<8x32xf32>
    %314 = tpu.matmul %312, %313, %cst_173 {dimension_numbers = #tpu.dot_dimension_numbers<[1], [0], [0], [1], [0, 0, 1, 1], [], []>} : vector<8x32xbf16>, vector<32x32xbf16>, vector<8x32xf32> -> vector<8x32xf32>
    %c0_174 = arith.constant 0 : index
    %c0_175 = arith.constant 0 : index
    %315 = vector.load %arg31[%c0_174, %c0_175] : memref<1x32xf32, #tpu.memory_space<vmem>>, vector<1x32xf32>
    %316 = vector.broadcast %315 : vector<1x32xf32> to vector<8x32xf32>
    %317 = arith.addf %314, %316 : vector<8x32xf32>
    %318 = arith.addf %317, %218 : vector<8x32xf32>
    %c0_176 = arith.constant 0 : index
    %c0_177 = arith.constant 0 : index
    %319 = vector.load %arg32[%c0_176, %c0_177] : memref<1x32xf32, #tpu.memory_space<vmem>>, vector<1x32xf32>
    %c0_178 = arith.constant 0 : index
    %c0_179 = arith.constant 0 : index
    %320 = vector.load %arg33[%c0_178, %c0_179] : memref<1x32xf32, #tpu.memory_space<vmem>>, vector<1x32xf32>
    %cst_180 = arith.constant dense<0.000000e+00> : vector<8xf32>
    %321 = vector.multi_reduction <add>, %318, %cst_180 [1] : vector<8x32xf32> to vector<8xf32>
    %322 = vector.shape_cast %321 : vector<8xf32> to vector<8x1xf32>
    %cst_181 = arith.constant 3.200000e+01 : f32
    %323 = vector.broadcast %cst_181 : f32 to vector<8x1xf32>
    %324 = arith.divf %322, %323 : vector<8x1xf32>
    %325 = vector.broadcast %324 : vector<8x1xf32> to vector<8x32xf32>
    %326 = arith.subf %318, %325 : vector<8x32xf32>
    %327 = arith.mulf %326, %326 : vector<8x32xf32>
    %cst_182 = arith.constant dense<0.000000e+00> : vector<8xf32>
    %328 = vector.multi_reduction <add>, %327, %cst_182 [1] : vector<8x32xf32> to vector<8xf32>
    %329 = vector.shape_cast %328 : vector<8xf32> to vector<8x1xf32>
    %cst_183 = arith.constant 3.200000e+01 : f32
    %330 = vector.broadcast %cst_183 : f32 to vector<8x1xf32>
    %331 = arith.divf %329, %330 : vector<8x1xf32>
    %332 = vector.broadcast %324 : vector<8x1xf32> to vector<8x32xf32>
    %333 = arith.subf %318, %332 : vector<8x32xf32>
    %cst_184 = arith.constant 9.99999974E-6 : f32
    %334 = vector.broadcast %cst_184 : f32 to vector<8x1xf32>
    %335 = arith.addf %331, %334 : vector<8x1xf32>
    %336 = math.rsqrt %335 : vector<8x1xf32>
    %337 = vector.broadcast %336 : vector<8x1xf32> to vector<8x32xf32>
    %338 = arith.mulf %333, %337 : vector<8x32xf32>
    %339 = vector.broadcast %319 : vector<1x32xf32> to vector<8x32xf32>
    %340 = arith.mulf %338, %339 : vector<8x32xf32>
    %341 = vector.broadcast %320 : vector<1x32xf32> to vector<8x32xf32>
    %342 = arith.addf %340, %341 : vector<8x32xf32>
    %343 = arith.truncf %342 : vector<8x32xf32> to vector<8x32xbf16>
    %c0_185 = arith.constant 0 : index
    %c0_186 = arith.constant 0 : index
    %344 = vector.load %arg34[%c0_185, %c0_186] : memref<32x64xbf16, #tpu.memory_space<vmem>>, vector<32x64xbf16>
    %cst_187 = arith.constant dense<0.000000e+00> : vector<8x64xf32>
    %345 = tpu.matmul %343, %344, %cst_187 {dimension_numbers = #tpu.dot_dimension_numbers<[1], [0], [0], [1], [0, 0, 1, 1], [], []>} : vector<8x32xbf16>, vector<32x64xbf16>, vector<8x64xf32> -> vector<8x64xf32>
    %c0_188 = arith.constant 0 : index
    %c0_189 = arith.constant 0 : index
    %346 = vector.load %arg35[%c0_188, %c0_189] : memref<1x64xf32, #tpu.memory_space<vmem>>, vector<1x64xf32>
    %347 = vector.broadcast %346 : vector<1x64xf32> to vector<8x64xf32>
    %348 = arith.addf %345, %347 : vector<8x64xf32>
    %cst_190 = arith.constant 0.000000e+00 : f32
    %349 = vector.broadcast %cst_190 : f32 to vector<8x64xf32>
    %350 = arith.subf %349, %348 : vector<8x64xf32>
    %351 = math.exp %350 : vector<8x64xf32>
    %cst_191 = arith.constant 1.000000e+00 : f32
    %352 = vector.broadcast %cst_191 : f32 to vector<8x64xf32>
    %353 = arith.addf %352, %351 : vector<8x64xf32>
    %cst_192 = arith.constant 1.000000e+00 : f32
    %354 = vector.broadcast %cst_192 : f32 to vector<8x64xf32>
    %355 = arith.divf %354, %353 : vector<8x64xf32>
    %356 = arith.mulf %348, %355 : vector<8x64xf32>
    %357 = arith.truncf %356 : vector<8x64xf32> to vector<8x64xbf16>
    %c0_193 = arith.constant 0 : index
    %c0_194 = arith.constant 0 : index
    %358 = vector.load %arg36[%c0_193, %c0_194] : memref<64x32xbf16, #tpu.memory_space<vmem>>, vector<64x32xbf16>
    %cst_195 = arith.constant dense<0.000000e+00> : vector<8x32xf32>
    %359 = tpu.matmul %357, %358, %cst_195 {dimension_numbers = #tpu.dot_dimension_numbers<[1], [0], [0], [1], [0, 0, 1, 1], [], []>} : vector<8x64xbf16>, vector<64x32xbf16>, vector<8x32xf32> -> vector<8x32xf32>
    %c0_196 = arith.constant 0 : index
    %c0_197 = arith.constant 0 : index
    %360 = vector.load %arg37[%c0_196, %c0_197] : memref<1x32xf32, #tpu.memory_space<vmem>>, vector<1x32xf32>
    %361 = vector.broadcast %360 : vector<1x32xf32> to vector<8x32xf32>
    %362 = arith.addf %359, %361 : vector<8x32xf32>
    %cst_198 = arith.constant 5.000000e-01 : f32
    %363 = vector.broadcast %cst_198 : f32 to vector<8x32xf32>
    %364 = arith.mulf %363, %362 : vector<8x32xf32>
    %365 = arith.addf %364, %318 : vector<8x32xf32>
    %c0_199 = arith.constant 0 : index
    %c0_200 = arith.constant 0 : index
    %c0_201 = arith.constant 0 : index
    %366 = vector.load %arg38[%c0_199, %c0_200, %c0_201] : memref<1x8x32xf32, #tpu.memory_space<vmem>>, vector<1x8x32xf32>
    %367 = vector.shape_cast %366 : vector<1x8x32xf32> to vector<8x32xf32>
    %368 = vector.shape_cast %365 : vector<8x32xf32> to vector<1x8x32xf32>
    tpu.vector_store %arg38[%c0_199, %c0_200, %c0_201], %368 {strides = array<i32>} : memref<1x8x32xf32, #tpu.memory_space<vmem>>, vector<1x8x32xf32>,
    return
  }
  func.func @transform_0(%arg0: i32) -> (i32, i32, i32) {
    %c0_i32 = arith.constant 0 : i32
    %c0_i32_0 = arith.constant 0 : i32
    %c0_i32_1 = arith.constant 0 : i32
    return %arg0, %c0_i32, %c0_i32_0 : i32, i32, i32
  }
  func.func @transform_1(%arg0: i32) -> (i32, i32) {
    %c0_i32 = arith.constant 0 : i32
    %c0_i32_0 = arith.constant 0 : i32
    %c0_i32_1 = arith.constant 0 : i32
    return %c0_i32, %c0_i32_0 : i32, i32
  }
  func.func @transform_2(%arg0: i32) -> (i32, i32) {
    %c0_i32 = arith.constant 0 : i32
    %c0_i32_0 = arith.constant 0 : i32
    %c0_i32_1 = arith.constant 0 : i32
    return %c0_i32, %c0_i32_0 : i32, i32
  }
  func.func @transform_3(%arg0: i32) -> (i32, i32) {
    %c0_i32 = arith.constant 0 : i32
    %c0_i32_0 = arith.constant 0 : i32
    %c0_i32_1 = arith.constant 0 : i32
    return %c0_i32, %c0_i32_0 : i32, i32
  }
  func.func @transform_4(%arg0: i32) -> (i32, i32) {
    %c0_i32 = arith.constant 0 : i32
    %c0_i32_0 = arith.constant 0 : i32
    %c0_i32_1 = arith.constant 0 : i32
    return %c0_i32, %c0_i32_0 : i32, i32
  }
  func.func @transform_5(%arg0: i32) -> (i32, i32) {
    %c0_i32 = arith.constant 0 : i32
    %c0_i32_0 = arith.constant 0 : i32
    %c0_i32_1 = arith.constant 0 : i32
    return %c0_i32, %c0_i32_0 : i32, i32
  }
  func.func @transform_6(%arg0: i32) -> (i32, i32) {
    %c0_i32 = arith.constant 0 : i32
    %c0_i32_0 = arith.constant 0 : i32
    %c0_i32_1 = arith.constant 0 : i32
    return %c0_i32, %c0_i32_0 : i32, i32
  }
  func.func @transform_7(%arg0: i32) -> (i32, i32) {
    %c0_i32 = arith.constant 0 : i32
    %c0_i32_0 = arith.constant 0 : i32
    %c0_i32_1 = arith.constant 0 : i32
    return %c0_i32, %c0_i32_0 : i32, i32
  }
  func.func @transform_8(%arg0: i32) -> (i32, i32) {
    %c0_i32 = arith.constant 0 : i32
    %c0_i32_0 = arith.constant 0 : i32
    %c0_i32_1 = arith.constant 0 : i32
    return %c0_i32, %c0_i32_0 : i32, i32
  }
  func.func @transform_9(%arg0: i32) -> (i32, i32) {
    %c0_i32 = arith.constant 0 : i32
    %c0_i32_0 = arith.constant 0 : i32
    %c0_i32_1 = arith.constant 0 : i32
    return %c0_i32, %c0_i32_0 : i32, i32
  }
  func.func @transform_10(%arg0: i32) -> (i32, i32) {
    %c0_i32 = arith.constant 0 : i32
    %c0_i32_0 = arith.constant 0 : i32
    %c0_i32_1 = arith.constant 0 : i32
    return %c0_i32, %c0_i32_0 : i32, i32
  }
  func.func @transform_11(%arg0: i32) -> (i32, i32) {
    %c0_i32 = arith.constant 0 : i32
    %c0_i32_0 = arith.constant 0 : i32
    %c0_i32_1 = arith.constant 0 : i32
    return %c0_i32, %c0_i32_0 : i32, i32
  }
  func.func @transform_12(%arg0: i32) -> (i32, i32) {
    %c0_i32 = arith.constant 0 : i32
    %c0_i32_0 = arith.constant 0 : i32
    %c0_i32_1 = arith.constant 0 : i32
    return %c0_i32, %c0_i32_0 : i32, i32
  }
  func.func @transform_13(%arg0: i32) -> (i32, i32) {
    %c0_i32 = arith.constant 0 : i32
    %c0_i32_0 = arith.constant 0 : i32
    %c0_i32_1 = arith.constant 0 : i32
    return %c0_i32, %c0_i32_0 : i32, i32
  }
  func.func @transform_14(%arg0: i32) -> (i32, i32) {
    %c0_i32 = arith.constant 0 : i32
    %c0_i32_0 = arith.constant 0 : i32
    %c0_i32_1 = arith.constant 0 : i32
    return %c0_i32, %c0_i32_0 : i32, i32
  }
  func.func @transform_15(%arg0: i32) -> (i32, i32) {
    %c0_i32 = arith.constant 0 : i32
    %c0_i32_0 = arith.constant 0 : i32
    %c0_i32_1 = arith.constant 0 : i32
    return %c0_i32, %c0_i32_0 : i32, i32
  }
  func.func @transform_16(%arg0: i32) -> (i32, i32) {
    %c0_i32 = arith.constant 0 : i32
    %c0_i32_0 = arith.constant 0 : i32
    %c0_i32_1 = arith.constant 0 : i32
    return %c0_i32, %c0_i32_0 : i32, i32
  }
  func.func @transform_17(%arg0: i32) -> (i32, i32) {
    %c0_i32 = arith.constant 0 : i32
    %c0_i32_0 = arith.constant 0 : i32
    %c0_i32_1 = arith.constant 0 : i32
    return %c0_i32, %c0_i32_0 : i32, i32
  }
  func.func @transform_18(%arg0: i32) -> (i32, i32) {
    %c0_i32 = arith.constant 0 : i32
    %c0_i32_0 = arith.constant 0 : i32
    %c0_i32_1 = arith.constant 0 : i32
    return %c0_i32, %c0_i32_0 : i32, i32
  }
  func.func @transform_19(%arg0: i32) -> (i32, i32) {
    %c0_i32 = arith.constant 0 : i32
    %c0_i32_0 = arith.constant 0 : i32
    %c0_i32_1 = arith.constant 0 : i32
    return %c0_i32, %c0_i32_0 : i32, i32
  }
  func.func @transform_20(%arg0: i32) -> (i32, i32) {
    %c0_i32 = arith.constant 0 : i32
    %c0_i32_0 = arith.constant 0 : i32
    %c0_i32_1 = arith.constant 0 : i32
    return %c0_i32, %c0_i32_0 : i32, i32
  }
  func.func @transform_21(%arg0: i32) -> (i32, i32) {
    %c0_i32 = arith.constant 0 : i32
    %c0_i32_0 = arith.constant 0 : i32
    %c0_i32_1 = arith.constant 0 : i32
    return %c0_i32, %c0_i32_0 : i32, i32
  }
  func.func @transform_22(%arg0: i32) -> (i32, i32) {
    %c0_i32 = arith.constant 0 : i32
    %c0_i32_0 = arith.constant 0 : i32
    %c0_i32_1 = arith.constant 0 : i32
    return %c0_i32, %c0_i32_0 : i32, i32
  }
  func.func @transform_23(%arg0: i32) -> (i32, i32, i32) {
    %c0_i32 = arith.constant 0 : i32
    %c0_i32_0 = arith.constant 0 : i32
    %c0_i32_1 = arith.constant 0 : i32
    %c0_i32_2 = arith.constant 0 : i32
    return %c0_i32, %c0_i32_0, %c0_i32_1 : i32, i32, i32
  }
  func.func @transform_24(%arg0: i32) -> (i32, i32) {
    %c0_i32 = arith.constant 0 : i32
    %c0_i32_0 = arith.constant 0 : i32
    %c0_i32_1 = arith.constant 0 : i32
    return %c0_i32, %c0_i32_0 : i32, i32
  }
  func.func @transform_25(%arg0: i32) -> (i32, i32) {
    %c0_i32 = arith.constant 0 : i32
    %c0_i32_0 = arith.constant 0 : i32
    %c0_i32_1 = arith.constant 0 : i32
    return %c0_i32, %c0_i32_0 : i32, i32
  }
  func.func @transform_26(%arg0: i32) -> (i32, i32) {
    %c0_i32 = arith.constant 0 : i32
    %c0_i32_0 = arith.constant 0 : i32
    %c0_i32_1 = arith.constant 0 : i32
    return %c0_i32, %c0_i32_0 : i32, i32
  }
  func.func @transform_27(%arg0: i32) -> (i32, i32) {
    %c0_i32 = arith.constant 0 : i32
    %c0_i32_0 = arith.constant 0 : i32
    %c0_i32_1 = arith.constant 0 : i32
    return %c0_i32, %c0_i32_0 : i32, i32
  }
  func.func @transform_28(%arg0: i32) -> (i32, i32) {
    %c0_i32 = arith.constant 0 : i32
    %c0_i32_0 = arith.constant 0 : i32
    %c0_i32_1 = arith.constant 0 : i32
    return %c0_i32, %c0_i32_0 : i32, i32
  }
  func.func @transform_29(%arg0: i32) -> (i32, i32) {
    %c0_i32 = arith.constant 0 : i32
    %c0_i32_0 = arith.constant 0 : i32
    %c0_i32_1 = arith.constant 0 : i32
    return %c0_i32, %c0_i32_0 : i32, i32
  }
  func.func @transform_30(%arg0: i32) -> (i32, i32) {
    %c0_i32 = arith.constant 0 : i32
    %c0_i32_0 = arith.constant 0 : i32
    %c0_i32_1 = arith.constant 0 : i32
    return %c0_i32, %c0_i32_0 : i32, i32
  }
  func.func @transform_31(%arg0: i32) -> (i32, i32) {
    %c0_i32 = arith.constant 0 : i32
    %c0_i32_0 = arith.constant 0 : i32
    %c0_i32_1 = arith.constant 0 : i32
    return %c0_i32, %c0_i32_0 : i32, i32
  }
  func.func @transform_32(%arg0: i32) -> (i32, i32) {
    %c0_i32 = arith.constant 0 : i32
    %c0_i32_0 = arith.constant 0 : i32
    %c0_i32_1 = arith.constant 0 : i32
    return %c0_i32, %c0_i32_0 : i32, i32
  }
  func.func @transform_33(%arg0: i32) -> (i32, i32) {
    %c0_i32 = arith.constant 0 : i32
    %c0_i32_0 = arith.constant 0 : i32
    %c0_i32_1 = arith.constant 0 : i32
    return %c0_i32, %c0_i32_0 : i32, i32
  }
  func.func @transform_34(%arg0: i32) -> (i32, i32) {
    %c0_i32 = arith.constant 0 : i32
    %c0_i32_0 = arith.constant 0 : i32
    %c0_i32_1 = arith.constant 0 : i32
    return %c0_i32, %c0_i32_0 : i32, i32
  }
  func.func @transform_35(%arg0: i32) -> (i32, i32) {
    %c0_i32 = arith.constant 0 : i32
    %c0_i32_0 = arith.constant 0 : i32
    %c0_i32_1 = arith.constant 0 : i32
    return %c0_i32, %c0_i32_0 : i32, i32
  }
  func.func @transform_36(%arg0: i32) -> (i32, i32) {
    %c0_i32 = arith.constant 0 : i32
    %c0_i32_0 = arith.constant 0 : i32
    %c0_i32_1 = arith.constant 0 : i32
    return %c0_i32, %c0_i32_0 : i32, i32
  }
  func.func @transform_37(%arg0: i32) -> (i32, i32, i32) {
    %c0_i32 = arith.constant 0 : i32
    %c0_i32_0 = arith.constant 0 : i32
    %c0_i32_1 = arith.constant 0 : i32
    return %arg0, %c0_i32, %c0_i32_0 : i32, i32, i32
  }
}

module attributes {stable_mosaic.version = 11 : i64} {
  func.func @conformer_kernel(%arg0: i32, %arg1: memref<1x8x32xf32, #tpu.memory_space<vmem>>, %arg2: memref<1x32xf32, #tpu.memory_space<vmem>>, %arg3: memref<1x32xf32, #tpu.memory_space<vmem>>, %arg4: memref<32x64xbf16, #tpu.memory_space<vmem>>, %arg5: memref<1x64xf32, #tpu.memory_space<vmem>>, %arg6: memref<64x32xbf16, #tpu.memory_space<vmem>>, %arg7: memref<1x32xf32, #tpu.memory_space<vmem>>, %arg8: memref<1x32xf32, #tpu.memory_space<vmem>>, %arg9: memref<1x32xf32, #tpu.memory_space<vmem>>, %arg10: memref<32x32xbf16, #tpu.memory_space<vmem>>, %arg11: memref<1x32xf32, #tpu.memory_space<vmem>>, %arg12: memref<32x32xbf16, #tpu.memory_space<vmem>>, %arg13: memref<1x32xf32, #tpu.memory_space<vmem>>, %arg14: memref<32x32xbf16, #tpu.memory_space<vmem>>, %arg15: memref<1x32xf32, #tpu.memory_space<vmem>>, %arg16: memref<32x32xbf16, #tpu.memory_space<vmem>>, %arg17: memref<1x32xf32, #tpu.memory_space<vmem>>, %arg18: memref<1x32xf32, #tpu.memory_space<vmem>>, %arg19: memref<1x32xf32, #tpu.memory_space<vmem>>, %arg20: memref<32x32xbf16, #tpu.memory_space<vmem>>, %arg21: memref<1x32xf32, #tpu.memory_space<vmem>>, %arg22: memref<32x32xbf16, #tpu.memory_space<vmem>>, %arg23: memref<1x32xf32, #tpu.memory_space<vmem>>, %arg24: memref<3x1x32xf32, #tpu.memory_space<vmem>>, %arg25: memref<1x32xf32, #tpu.memory_space<vmem>>, %arg26: memref<1x32xf32, #tpu.memory_space<vmem>>, %arg27: memref<1x32xf32, #tpu.memory_space<vmem>>, %arg28: memref<1x32xf32, #tpu.memory_space<vmem>>, %arg29: memref<1x32xf32, #tpu.memory_space<vmem>>, %arg30: memref<32x32xbf16, #tpu.memory_space<vmem>>, %arg31: memref<1x32xf32, #tpu.memory_space<vmem>>, %arg32: memref<1x32xf32, #tpu.memory_space<vmem>>, %arg33: memref<1x32xf32, #tpu.memory_space<vmem>>, %arg34: memref<32x64xbf16, #tpu.memory_space<vmem>>, %arg35: memref<1x64xf32, #tpu.memory_space<vmem>>, %arg36: memref<64x32xbf16, #tpu.memory_space<vmem>>, %arg37: memref<1x32xf32, #tpu.memory_space<vmem>>, %arg38: memref<1x8x32xf32, #tpu.memory_space<vmem>>, %arg39: memref<10x32xf32, #tpu.memory_space<vmem>>) attributes {dimension_semantics = [#tpu.dimension_semantics<parallel>], iteration_bounds = array<i64: 2>, scalar_prefetch = 0 : i64, scratch_operands = 1 : i64, tpu.core_type = #tpu.core_type<tc>, window_params = [{transform_indices = @transform_0, window_bounds = array<i64: 1, 8, 32>}, {pipeline_mode = #tpu.pipeline_mode<synchronous>, transform_indices = @transform_1, window_bounds = array<i64: 1, 32>}, {pipeline_mode = #tpu.pipeline_mode<synchronous>, transform_indices = @transform_2, window_bounds = array<i64: 1, 32>}, {pipeline_mode = #tpu.pipeline_mode<synchronous>, transform_indices = @transform_3, window_bounds = array<i64: 32, 64>}, {pipeline_mode = #tpu.pipeline_mode<synchronous>, transform_indices = @transform_4, window_bounds = array<i64: 1, 64>}, {pipeline_mode = #tpu.pipeline_mode<synchronous>, transform_indices = @transform_5, window_bounds = array<i64: 64, 32>}, {pipeline_mode = #tpu.pipeline_mode<synchronous>, transform_indices = @transform_6, window_bounds = array<i64: 1, 32>}, {pipeline_mode = #tpu.pipeline_mode<synchronous>, transform_indices = @transform_7, window_bounds = array<i64: 1, 32>}, {pipeline_mode = #tpu.pipeline_mode<synchronous>, transform_indices = @transform_8, window_bounds = array<i64: 1, 32>}, {pipeline_mode = #tpu.pipeline_mode<synchronous>, transform_indices = @transform_9, window_bounds = array<i64: 32, 32>}, {pipeline_mode = #tpu.pipeline_mode<synchronous>, transform_indices = @transform_10, window_bounds = array<i64: 1, 32>}, {pipeline_mode = #tpu.pipeline_mode<synchronous>, transform_indices = @transform_11, window_bounds = array<i64: 32, 32>}, {pipeline_mode = #tpu.pipeline_mode<synchronous>, transform_indices = @transform_12, window_bounds = array<i64: 1, 32>}, {pipeline_mode = #tpu.pipeline_mode<synchronous>, transform_indices = @transform_13, window_bounds = array<i64: 32, 32>}, {pipeline_mode = #tpu.pipeline_mode<synchronous>, transform_indices = @transform_14, window_bounds = array<i64: 1, 32>}, {pipeline_mode = #tpu.pipeline_mode<synchronous>, transform_indices = @transform_15, window_bounds = array<i64: 32, 32>}, {pipeline_mode = #tpu.pipeline_mode<synchronous>, transform_indices = @transform_16, window_bounds = array<i64: 1, 32>}, {pipeline_mode = #tpu.pipeline_mode<synchronous>, transform_indices = @transform_17, window_bounds = array<i64: 1, 32>}, {pipeline_mode = #tpu.pipeline_mode<synchronous>, transform_indices = @transform_18, window_bounds = array<i64: 1, 32>}, {pipeline_mode = #tpu.pipeline_mode<synchronous>, transform_indices = @transform_19, window_bounds = array<i64: 32, 32>}, {pipeline_mode = #tpu.pipeline_mode<synchronous>, transform_indices = @transform_20, window_bounds = array<i64: 1, 32>}, {pipeline_mode = #tpu.pipeline_mode<synchronous>, transform_indices = @transform_21, window_bounds = array<i64: 32, 32>}, {pipeline_mode = #tpu.pipeline_mode<synchronous>, transform_indices = @transform_22, window_bounds = array<i64: 1, 32>}, {pipeline_mode = #tpu.pipeline_mode<synchronous>, transform_indices = @transform_23, window_bounds = array<i64: 3, 1, 32>}, {pipeline_mode = #tpu.pipeline_mode<synchronous>, transform_indices = @transform_24, window_bounds = array<i64: 1, 32>}, {pipeline_mode = #tpu.pipeline_mode<synchronous>, transform_indices = @transform_25, window_bounds = array<i64: 1, 32>}, {pipeline_mode = #tpu.pipeline_mode<synchronous>, transform_indices = @transform_26, window_bounds = array<i64: 1, 32>}, {pipeline_mode = #tpu.pipeline_mode<synchronous>, transform_indices = @transform_27, window_bounds = array<i64: 1, 32>}, {pipeline_mode = #tpu.pipeline_mode<synchronous>, transform_indices = @transform_28, window_bounds = array<i64: 1, 32>}, {pipeline_mode = #tpu.pipeline_mode<synchronous>, transform_indices = @transform_29, window_bounds = array<i64: 32, 32>}, {pipeline_mode = #tpu.pipeline_mode<synchronous>, transform_indices = @transform_30, window_bounds = array<i64: 1, 32>}, {pipeline_mode = #tpu.pipeline_mode<synchronous>, transform_indices = @transform_31, window_bounds = array<i64: 1, 32>}, {pipeline_mode = #tpu.pipeline_mode<synchronous>, transform_indices = @transform_32, window_bounds = array<i64: 1, 32>}, {pipeline_mode = #tpu.pipeline_mode<synchronous>, transform_indices = @transform_33, window_bounds = array<i64: 32, 64>}, {pipeline_mode = #tpu.pipeline_mode<synchronous>, transform_indices = @transform_34, window_bounds = array<i64: 1, 64>}, {pipeline_mode = #tpu.pipeline_mode<synchronous>, transform_indices = @transform_35, window_bounds = array<i64: 64, 32>}, {pipeline_mode = #tpu.pipeline_mode<synchronous>, transform_indices = @transform_36, window_bounds = array<i64: 1, 32>}, {transform_indices = @transform_37, window_bounds = array<i64: 1, 8, 32>}]} {
    %c0 = arith.constant 0 : index
    %c0_0 = arith.constant 0 : index
    %c0_1 = arith.constant 0 : index
    %0 = vector.load %arg1[%c0, %c0_0, %c0_1] : memref<1x8x32xf32, #tpu.memory_space<vmem>>, vector<1x8x32xf32>
    %1 = vector.shape_cast %0 : vector<1x8x32xf32> to vector<8x32xf32>
    %c0_2 = arith.constant 0 : index
    %c0_3 = arith.constant 0 : index
    %2 = vector.load %arg2[%c0_2, %c0_3] : memref<1x32xf32, #tpu.memory_space<vmem>>, vector<1x32xf32>
    %c0_4 = arith.constant 0 : index
    %c0_5 = arith.constant 0 : index
    %3 = vector.load %arg3[%c0_4, %c0_5] : memref<1x32xf32, #tpu.memory_space<vmem>>, vector<1x32xf32>
    %cst = arith.constant dense<0.000000e+00> : vector<8xf32>
    %4 = vector.multi_reduction <add>, %1, %cst [1] : vector<8x32xf32> to vector<8xf32>
    %5 = vector.shape_cast %4 : vector<8xf32> to vector<8x1xf32>
    %cst_6 = arith.constant 3.200000e+01 : f32
    %6 = vector.broadcast %cst_6 : f32 to vector<8x1xf32>
    %7 = arith.divf %5, %6 : vector<8x1xf32>
    %8 = vector.broadcast %7 : vector<8x1xf32> to vector<8x32xf32>
    %9 = arith.subf %1, %8 : vector<8x32xf32>
    %10 = arith.mulf %9, %9 : vector<8x32xf32>
    %cst_7 = arith.constant dense<0.000000e+00> : vector<8xf32>
    %11 = vector.multi_reduction <add>, %10, %cst_7 [1] : vector<8x32xf32> to vector<8xf32>
    %12 = vector.shape_cast %11 : vector<8xf32> to vector<8x1xf32>
    %cst_8 = arith.constant 3.200000e+01 : f32
    %13 = vector.broadcast %cst_8 : f32 to vector<8x1xf32>
    %14 = arith.divf %12, %13 : vector<8x1xf32>
    %15 = vector.broadcast %7 : vector<8x1xf32> to vector<8x32xf32>
    %16 = arith.subf %1, %15 : vector<8x32xf32>
    %cst_9 = arith.constant 9.99999974E-6 : f32
    %17 = vector.broadcast %cst_9 : f32 to vector<8x1xf32>
    %18 = arith.addf %14, %17 : vector<8x1xf32>
    %19 = math.rsqrt %18 : vector<8x1xf32>
    %20 = vector.broadcast %19 : vector<8x1xf32> to vector<8x32xf32>
    %21 = arith.mulf %16, %20 : vector<8x32xf32>
    %22 = vector.broadcast %2 : vector<1x32xf32> to vector<8x32xf32>
    %23 = arith.mulf %21, %22 : vector<8x32xf32>
    %24 = vector.broadcast %3 : vector<1x32xf32> to vector<8x32xf32>
    %25 = arith.addf %23, %24 : vector<8x32xf32>
    %26 = arith.truncf %25 : vector<8x32xf32> to vector<8x32xbf16>
    %c0_10 = arith.constant 0 : index
    %c0_11 = arith.constant 0 : index
    %27 = vector.load %arg4[%c0_10, %c0_11] : memref<32x64xbf16, #tpu.memory_space<vmem>>, vector<32x64xbf16>
    %cst_12 = arith.constant dense<0.000000e+00> : vector<8x64xf32>
    %28 = tpu.matmul %26, %27, %cst_12 {dimension_numbers = #tpu.dot_dimension_numbers<[1], [0], [0], [1], [0, 0, 1, 1], [], []>} : vector<8x32xbf16>, vector<32x64xbf16>, vector<8x64xf32> -> vector<8x64xf32>
    %c0_13 = arith.constant 0 : index
    %c0_14 = arith.constant 0 : index
    %29 = vector.load %arg5[%c0_13, %c0_14] : memref<1x64xf32, #tpu.memory_space<vmem>>, vector<1x64xf32>
    %30 = vector.broadcast %29 : vector<1x64xf32> to vector<8x64xf32>
    %31 = arith.addf %28, %30 : vector<8x64xf32>
    %cst_15 = arith.constant 0.000000e+00 : f32
    %32 = vector.broadcast %cst_15 : f32 to vector<8x64xf32>
    %33 = arith.subf %32, %31 : vector<8x64xf32>
    %34 = math.exp %33 : vector<8x64xf32>
    %cst_16 = arith.constant 1.000000e+00 : f32
    %35 = vector.broadcast %cst_16 : f32 to vector<8x64xf32>
    %36 = arith.addf %35, %34 : vector<8x64xf32>
    %cst_17 = arith.constant 1.000000e+00 : f32
    %37 = vector.broadcast %cst_17 : f32 to vector<8x64xf32>
    %38 = arith.divf %37, %36 : vector<8x64xf32>
    %39 = arith.mulf %31, %38 : vector<8x64xf32>
    %40 = arith.truncf %39 : vector<8x64xf32> to vector<8x64xbf16>
    %c0_18 = arith.constant 0 : index
    %c0_19 = arith.constant 0 : index
    %41 = vector.load %arg6[%c0_18, %c0_19] : memref<64x32xbf16, #tpu.memory_space<vmem>>, vector<64x32xbf16>
    %cst_20 = arith.constant dense<0.000000e+00> : vector<8x32xf32>
    %42 = tpu.matmul %40, %41, %cst_20 {dimension_numbers = #tpu.dot_dimension_numbers<[1], [0], [0], [1], [0, 0, 1, 1], [], []>} : vector<8x64xbf16>, vector<64x32xbf16>, vector<8x32xf32> -> vector<8x32xf32>
    %c0_21 = arith.constant 0 : index
    %c0_22 = arith.constant 0 : index
    %43 = vector.load %arg7[%c0_21, %c0_22] : memref<1x32xf32, #tpu.memory_space<vmem>>, vector<1x32xf32>
    %44 = vector.broadcast %43 : vector<1x32xf32> to vector<8x32xf32>
    %45 = arith.addf %42, %44 : vector<8x32xf32>
    %cst_23 = arith.constant 5.000000e-01 : f32
    %46 = vector.broadcast %cst_23 : f32 to vector<8x32xf32>
    %47 = arith.mulf %46, %45 : vector<8x32xf32>
    %48 = arith.addf %47, %1 : vector<8x32xf32>
    %c0_24 = arith.constant 0 : index
    %c0_25 = arith.constant 0 : index
    %49 = vector.load %arg8[%c0_24, %c0_25] : memref<1x32xf32, #tpu.memory_space<vmem>>, vector<1x32xf32>
    %c0_26 = arith.constant 0 : index
    %c0_27 = arith.constant 0 : index
    %50 = vector.load %arg9[%c0_26, %c0_27] : memref<1x32xf32, #tpu.memory_space<vmem>>, vector<1x32xf32>
    %cst_28 = arith.constant dense<0.000000e+00> : vector<8xf32>
    %51 = vector.multi_reduction <add>, %48, %cst_28 [1] : vector<8x32xf32> to vector<8xf32>
    %52 = vector.shape_cast %51 : vector<8xf32> to vector<8x1xf32>
    %cst_29 = arith.constant 3.200000e+01 : f32
    %53 = vector.broadcast %cst_29 : f32 to vector<8x1xf32>
    %54 = arith.divf %52, %53 : vector<8x1xf32>
    %55 = vector.broadcast %54 : vector<8x1xf32> to vector<8x32xf32>
    %56 = arith.subf %48, %55 : vector<8x32xf32>
    %57 = arith.mulf %56, %56 : vector<8x32xf32>
    %cst_30 = arith.constant dense<0.000000e+00> : vector<8xf32>
    %58 = vector.multi_reduction <add>, %57, %cst_30 [1] : vector<8x32xf32> to vector<8xf32>
    %59 = vector.shape_cast %58 : vector<8xf32> to vector<8x1xf32>
    %cst_31 = arith.constant 3.200000e+01 : f32
    %60 = vector.broadcast %cst_31 : f32 to vector<8x1xf32>
    %61 = arith.divf %59, %60 : vector<8x1xf32>
    %62 = vector.broadcast %54 : vector<8x1xf32> to vector<8x32xf32>
    %63 = arith.subf %48, %62 : vector<8x32xf32>
    %cst_32 = arith.constant 9.99999974E-6 : f32
    %64 = vector.broadcast %cst_32 : f32 to vector<8x1xf32>
    %65 = arith.addf %61, %64 : vector<8x1xf32>
    %66 = math.rsqrt %65 : vector<8x1xf32>
    %67 = vector.broadcast %66 : vector<8x1xf32> to vector<8x32xf32>
    %68 = arith.mulf %63, %67 : vector<8x32xf32>
    %69 = vector.broadcast %49 : vector<1x32xf32> to vector<8x32xf32>
    %70 = arith.mulf %68, %69 : vector<8x32xf32>
    %71 = vector.broadcast %50 : vector<1x32xf32> to vector<8x32xf32>
    %72 = arith.addf %70, %71 : vector<8x32xf32>
    %73 = arith.truncf %72 : vector<8x32xf32> to vector<8x32xbf16>
    %cst_33 = arith.constant 0.000000e+00 : f32
    %74 = vector.broadcast %cst_33 : f32 to vector<8x32xf32>
    %c0_34 = arith.constant 0 : index
    %c0_35 = arith.constant 0 : index
    %75 = vector.load %arg10[%c0_34, %c0_35] : memref<32x32xbf16, #tpu.memory_space<vmem>>, vector<32x8xbf16>
    %cst_36 = arith.constant dense<0.000000e+00> : vector<8x8xf32>
    %76 = tpu.matmul %73, %75, %cst_36 {dimension_numbers = #tpu.dot_dimension_numbers<[1], [0], [0], [1], [0, 0, 1, 1], [], []>} : vector<8x32xbf16>, vector<32x8xbf16>, vector<8x8xf32> -> vector<8x8xf32>
    %c0_37 = arith.constant 0 : index
    %c0_38 = arith.constant 0 : index
    %77 = vector.load %arg11[%c0_37, %c0_38] : memref<1x32xf32, #tpu.memory_space<vmem>>, vector<1x8xf32>
    %78 = vector.broadcast %77 : vector<1x8xf32> to vector<8x8xf32>
    %79 = arith.addf %76, %78 : vector<8x8xf32>
    %c0_39 = arith.constant 0 : index
    %c0_40 = arith.constant 0 : index
    %80 = vector.load %arg12[%c0_39, %c0_40] : memref<32x32xbf16, #tpu.memory_space<vmem>>, vector<32x8xbf16>
    %cst_41 = arith.constant dense<0.000000e+00> : vector<8x8xf32>
    %81 = tpu.matmul %73, %80, %cst_41 {dimension_numbers = #tpu.dot_dimension_numbers<[1], [0], [0], [1], [0, 0, 1, 1], [], []>} : vector<8x32xbf16>, vector<32x8xbf16>, vector<8x8xf32> -> vector<8x8xf32>
    %c0_42 = arith.constant 0 : index
    %c0_43 = arith.constant 0 : index
    %82 = vector.load %arg13[%c0_42, %c0_43] : memref<1x32xf32, #tpu.memory_space<vmem>>, vector<1x8xf32>
    %83 = vector.broadcast %82 : vector<1x8xf32> to vector<8x8xf32>
    %84 = arith.addf %81, %83 : vector<8x8xf32>
    %c0_44 = arith.constant 0 : index
    %c0_45 = arith.constant 0 : index
    %85 = vector.load %arg14[%c0_44, %c0_45] : memref<32x32xbf16, #tpu.memory_space<vmem>>, vector<32x8xbf16>
    %cst_46 = arith.constant dense<0.000000e+00> : vector<8x8xf32>
    %86 = tpu.matmul %73, %85, %cst_46 {dimension_numbers = #tpu.dot_dimension_numbers<[1], [0], [0], [1], [0, 0, 1, 1], [], []>} : vector<8x32xbf16>, vector<32x8xbf16>, vector<8x8xf32> -> vector<8x8xf32>
    %c0_47 = arith.constant 0 : index
    %c0_48 = arith.constant 0 : index
    %87 = vector.load %arg15[%c0_47, %c0_48] : memref<1x32xf32, #tpu.memory_space<vmem>>, vector<1x8xf32>
    %88 = vector.broadcast %87 : vector<1x8xf32> to vector<8x8xf32>
    %89 = arith.addf %86, %88 : vector<8x8xf32>
    %90 = arith.truncf %79 : vector<8x8xf32> to vector<8x8xbf16>
    %91 = arith.truncf %84 : vector<8x8xf32> to vector<8x8xbf16>
    %cst_49 = arith.constant dense<0.000000e+00> : vector<8x8xf32>
    %92 = tpu.matmul %90, %91, %cst_49 {dimension_numbers = #tpu.dot_dimension_numbers<[1], [1], [0], [0], [0, 0, 1, 0], [], []>} : vector<8x8xbf16>, vector<8x8xbf16>, vector<8x8xf32> -> vector<8x8xf32>
    %cst_50 = arith.constant dense<0xFF800000> : vector<8xf32>
    %93 = vector.multi_reduction <maximumf>, %92, %cst_50 [1] : vector<8x8xf32> to vector<8xf32>
    %94 = vector.shape_cast %93 : vector<8xf32> to vector<8x1xf32>
    %95 = vector.broadcast %94 : vector<8x1xf32> to vector<8x8xf32>
    %96 = arith.subf %92, %95 : vector<8x8xf32>
    %97 = math.exp %96 : vector<8x8xf32>
    %cst_51 = arith.constant dense<0.000000e+00> : vector<8xf32>
    %98 = vector.multi_reduction <add>, %97, %cst_51 [1] : vector<8x8xf32> to vector<8xf32>
    %99 = vector.shape_cast %98 : vector<8xf32> to vector<8x1xf32>
    %100 = tpu.reciprocal %99 {approx = true} : vector<8x1xf32> -> vector<8x1xf32>
    %101 = vector.broadcast %100 : vector<8x1xf32> to vector<8x8xf32>
    %102 = arith.mulf %97, %101 : vector<8x8xf32>
    %103 = arith.truncf %102 : vector<8x8xf32> to vector<8x8xbf16>
    %104 = arith.truncf %89 : vector<8x8xf32> to vector<8x8xbf16>
    %cst_52 = arith.constant dense<0.000000e+00> : vector<8x8xf32>
    %105 = tpu.matmul %103, %104, %cst_52 {dimension_numbers = #tpu.dot_dimension_numbers<[1], [0], [0], [1], [0, 0, 1, 1], [], []>} : vector<8x8xbf16>, vector<8x8xbf16>, vector<8x8xf32> -> vector<8x8xf32>
    %106 = arith.truncf %105 : vector<8x8xf32> to vector<8x8xbf16>
    %c0_53 = arith.constant 0 : index
    %c0_54 = arith.constant 0 : index
    %107 = vector.load %arg16[%c0_53, %c0_54] : memref<32x32xbf16, #tpu.memory_space<vmem>>, vector<8x32xbf16>
    %cst_55 = arith.constant dense<0.000000e+00> : vector<8x32xf32>
    %108 = tpu.matmul %106, %107, %cst_55 {dimension_numbers = #tpu.dot_dimension_numbers<[1], [0], [0], [1], [0, 0, 1, 1], [], []>} : vector<8x8xbf16>, vector<8x32xbf16>, vector<8x32xf32> -> vector<8x32xf32>
    %109 = arith.addf %74, %108 : vector<8x32xf32>
    %c0_56 = arith.constant 0 : index
    %c8 = arith.constant 8 : index
    %110 = vector.load %arg10[%c0_56, %c8] : memref<32x32xbf16, #tpu.memory_space<vmem>>, vector<32x8xbf16>
    %cst_57 = arith.constant dense<0.000000e+00> : vector<8x8xf32>
    %111 = tpu.matmul %73, %110, %cst_57 {dimension_numbers = #tpu.dot_dimension_numbers<[1], [0], [0], [1], [0, 0, 1, 1], [], []>} : vector<8x32xbf16>, vector<32x8xbf16>, vector<8x8xf32> -> vector<8x8xf32>
    %c0_58 = arith.constant 0 : index
    %c8_59 = arith.constant 8 : index
    %112 = vector.load %arg11[%c0_58, %c8_59] : memref<1x32xf32, #tpu.memory_space<vmem>>, vector<1x8xf32>
    %113 = vector.broadcast %112 : vector<1x8xf32> to vector<8x8xf32>
    %114 = arith.addf %111, %113 : vector<8x8xf32>
    %c0_60 = arith.constant 0 : index
    %c8_61 = arith.constant 8 : index
    %115 = vector.load %arg12[%c0_60, %c8_61] : memref<32x32xbf16, #tpu.memory_space<vmem>>, vector<32x8xbf16>
    %cst_62 = arith.constant dense<0.000000e+00> : vector<8x8xf32>
    %116 = tpu.matmul %73, %115, %cst_62 {dimension_numbers = #tpu.dot_dimension_numbers<[1], [0], [0], [1], [0, 0, 1, 1], [], []>} : vector<8x32xbf16>, vector<32x8xbf16>, vector<8x8xf32> -> vector<8x8xf32>
    %c0_63 = arith.constant 0 : index
    %c8_64 = arith.constant 8 : index
    %117 = vector.load %arg13[%c0_63, %c8_64] : memref<1x32xf32, #tpu.memory_space<vmem>>, vector<1x8xf32>
    %118 = vector.broadcast %117 : vector<1x8xf32> to vector<8x8xf32>
    %119 = arith.addf %116, %118 : vector<8x8xf32>
    %c0_65 = arith.constant 0 : index
    %c8_66 = arith.constant 8 : index
    %120 = vector.load %arg14[%c0_65, %c8_66] : memref<32x32xbf16, #tpu.memory_space<vmem>>, vector<32x8xbf16>
    %cst_67 = arith.constant dense<0.000000e+00> : vector<8x8xf32>
    %121 = tpu.matmul %73, %120, %cst_67 {dimension_numbers = #tpu.dot_dimension_numbers<[1], [0], [0], [1], [0, 0, 1, 1], [], []>} : vector<8x32xbf16>, vector<32x8xbf16>, vector<8x8xf32> -> vector<8x8xf32>
    %c0_68 = arith.constant 0 : index
    %c8_69 = arith.constant 8 : index
    %122 = vector.load %arg15[%c0_68, %c8_69] : memref<1x32xf32, #tpu.memory_space<vmem>>, vector<1x8xf32>
    %123 = vector.broadcast %122 : vector<1x8xf32> to vector<8x8xf32>
    %124 = arith.addf %121, %123 : vector<8x8xf32>
    %125 = arith.truncf %114 : vector<8x8xf32> to vector<8x8xbf16>
    %126 = arith.truncf %119 : vector<8x8xf32> to vector<8x8xbf16>
    %cst_70 = arith.constant dense<0.000000e+00> : vector<8x8xf32>
    %127 = tpu.matmul %125, %126, %cst_70 {dimension_numbers = #tpu.dot_dimension_numbers<[1], [1], [0], [0], [0, 0, 1, 0], [], []>} : vector<8x8xbf16>, vector<8x8xbf16>, vector<8x8xf32> -> vector<8x8xf32>
    %cst_71 = arith.constant dense<0xFF800000> : vector<8xf32>
    %128 = vector.multi_reduction <maximumf>, %127, %cst_71 [1] : vector<8x8xf32> to vector<8xf32>
    %129 = vector.shape_cast %128 : vector<8xf32> to vector<8x1xf32>
    %130 = vector.broadcast %129 : vector<8x1xf32> to vector<8x8xf32>
    %131 = arith.subf %127, %130 : vector<8x8xf32>
    %132 = math.exp %131 : vector<8x8xf32>
    %cst_72 = arith.constant dense<0.000000e+00> : vector<8xf32>
    %133 = vector.multi_reduction <add>, %132, %cst_72 [1] : vector<8x8xf32> to vector<8xf32>
    %134 = vector.shape_cast %133 : vector<8xf32> to vector<8x1xf32>
    %135 = tpu.reciprocal %134 {approx = true} : vector<8x1xf32> -> vector<8x1xf32>
    %136 = vector.broadcast %135 : vector<8x1xf32> to vector<8x8xf32>
    %137 = arith.mulf %132, %136 : vector<8x8xf32>
    %138 = arith.truncf %137 : vector<8x8xf32> to vector<8x8xbf16>
    %139 = arith.truncf %124 : vector<8x8xf32> to vector<8x8xbf16>
    %cst_73 = arith.constant dense<0.000000e+00> : vector<8x8xf32>
    %140 = tpu.matmul %138, %139, %cst_73 {dimension_numbers = #tpu.dot_dimension_numbers<[1], [0], [0], [1], [0, 0, 1, 1], [], []>} : vector<8x8xbf16>, vector<8x8xbf16>, vector<8x8xf32> -> vector<8x8xf32>
    %141 = arith.truncf %140 : vector<8x8xf32> to vector<8x8xbf16>
    %c8_74 = arith.constant 8 : index
    %c0_75 = arith.constant 0 : index
    %142 = vector.load %arg16[%c8_74, %c0_75] : memref<32x32xbf16, #tpu.memory_space<vmem>>, vector<8x32xbf16>
    %cst_76 = arith.constant dense<0.000000e+00> : vector<8x32xf32>
    %143 = tpu.matmul %141, %142, %cst_76 {dimension_numbers = #tpu.dot_dimension_numbers<[1], [0], [0], [1], [0, 0, 1, 1], [], []>} : vector<8x8xbf16>, vector<8x32xbf16>, vector<8x32xf32> -> vector<8x32xf32>
    %144 = arith.addf %109, %143 : vector<8x32xf32>
    %c0_77 = arith.constant 0 : index
    %c16 = arith.constant 16 : index
    %145 = vector.load %arg10[%c0_77, %c16] : memref<32x32xbf16, #tpu.memory_space<vmem>>, vector<32x8xbf16>
    %cst_78 = arith.constant dense<0.000000e+00> : vector<8x8xf32>
    %146 = tpu.matmul %73, %145, %cst_78 {dimension_numbers = #tpu.dot_dimension_numbers<[1], [0], [0], [1], [0, 0, 1, 1], [], []>} : vector<8x32xbf16>, vector<32x8xbf16>, vector<8x8xf32> -> vector<8x8xf32>
    %c0_79 = arith.constant 0 : index
    %c16_80 = arith.constant 16 : index
    %147 = vector.load %arg11[%c0_79, %c16_80] : memref<1x32xf32, #tpu.memory_space<vmem>>, vector<1x8xf32>
    %148 = vector.broadcast %147 : vector<1x8xf32> to vector<8x8xf32>
    %149 = arith.addf %146, %148 : vector<8x8xf32>
    %c0_81 = arith.constant 0 : index
    %c16_82 = arith.constant 16 : index
    %150 = vector.load %arg12[%c0_81, %c16_82] : memref<32x32xbf16, #tpu.memory_space<vmem>>, vector<32x8xbf16>
    %cst_83 = arith.constant dense<0.000000e+00> : vector<8x8xf32>
    %151 = tpu.matmul %73, %150, %cst_83 {dimension_numbers = #tpu.dot_dimension_numbers<[1], [0], [0], [1], [0, 0, 1, 1], [], []>} : vector<8x32xbf16>, vector<32x8xbf16>, vector<8x8xf32> -> vector<8x8xf32>
    %c0_84 = arith.constant 0 : index
    %c16_85 = arith.constant 16 : index
    %152 = vector.load %arg13[%c0_84, %c16_85] : memref<1x32xf32, #tpu.memory_space<vmem>>, vector<1x8xf32>
    %153 = vector.broadcast %152 : vector<1x8xf32> to vector<8x8xf32>
    %154 = arith.addf %151, %153 : vector<8x8xf32>
    %c0_86 = arith.constant 0 : index
    %c16_87 = arith.constant 16 : index
    %155 = vector.load %arg14[%c0_86, %c16_87] : memref<32x32xbf16, #tpu.memory_space<vmem>>, vector<32x8xbf16>
    %cst_88 = arith.constant dense<0.000000e+00> : vector<8x8xf32>
    %156 = tpu.matmul %73, %155, %cst_88 {dimension_numbers = #tpu.dot_dimension_numbers<[1], [0], [0], [1], [0, 0, 1, 1], [], []>} : vector<8x32xbf16>, vector<32x8xbf16>, vector<8x8xf32> -> vector<8x8xf32>
    %c0_89 = arith.constant 0 : index
    %c16_90 = arith.constant 16 : index
    %157 = vector.load %arg15[%c0_89, %c16_90] : memref<1x32xf32, #tpu.memory_space<vmem>>, vector<1x8xf32>
    %158 = vector.broadcast %157 : vector<1x8xf32> to vector<8x8xf32>
    %159 = arith.addf %156, %158 : vector<8x8xf32>
    %160 = arith.truncf %149 : vector<8x8xf32> to vector<8x8xbf16>
    %161 = arith.truncf %154 : vector<8x8xf32> to vector<8x8xbf16>
    %cst_91 = arith.constant dense<0.000000e+00> : vector<8x8xf32>
    %162 = tpu.matmul %160, %161, %cst_91 {dimension_numbers = #tpu.dot_dimension_numbers<[1], [1], [0], [0], [0, 0, 1, 0], [], []>} : vector<8x8xbf16>, vector<8x8xbf16>, vector<8x8xf32> -> vector<8x8xf32>
    %cst_92 = arith.constant dense<0xFF800000> : vector<8xf32>
    %163 = vector.multi_reduction <maximumf>, %162, %cst_92 [1] : vector<8x8xf32> to vector<8xf32>
    %164 = vector.shape_cast %163 : vector<8xf32> to vector<8x1xf32>
    %165 = vector.broadcast %164 : vector<8x1xf32> to vector<8x8xf32>
    %166 = arith.subf %162, %165 : vector<8x8xf32>
    %167 = math.exp %166 : vector<8x8xf32>
    %cst_93 = arith.constant dense<0.000000e+00> : vector<8xf32>
    %168 = vector.multi_reduction <add>, %167, %cst_93 [1] : vector<8x8xf32> to vector<8xf32>
    %169 = vector.shape_cast %168 : vector<8xf32> to vector<8x1xf32>
    %170 = tpu.reciprocal %169 {approx = true} : vector<8x1xf32> -> vector<8x1xf32>
    %171 = vector.broadcast %170 : vector<8x1xf32> to vector<8x8xf32>
    %172 = arith.mulf %167, %171 : vector<8x8xf32>
    %173 = arith.truncf %172 : vector<8x8xf32> to vector<8x8xbf16>
    %174 = arith.truncf %159 : vector<8x8xf32> to vector<8x8xbf16>
    %cst_94 = arith.constant dense<0.000000e+00> : vector<8x8xf32>
    %175 = tpu.matmul %173, %174, %cst_94 {dimension_numbers = #tpu.dot_dimension_numbers<[1], [0], [0], [1], [0, 0, 1, 1], [], []>} : vector<8x8xbf16>, vector<8x8xbf16>, vector<8x8xf32> -> vector<8x8xf32>
    %176 = arith.truncf %175 : vector<8x8xf32> to vector<8x8xbf16>
    %c16_95 = arith.constant 16 : index
    %c0_96 = arith.constant 0 : index
    %177 = vector.load %arg16[%c16_95, %c0_96] : memref<32x32xbf16, #tpu.memory_space<vmem>>, vector<8x32xbf16>
    %cst_97 = arith.constant dense<0.000000e+00> : vector<8x32xf32>
    %178 = tpu.matmul %176, %177, %cst_97 {dimension_numbers = #tpu.dot_dimension_numbers<[1], [0], [0], [1], [0, 0, 1, 1], [], []>} : vector<8x8xbf16>, vector<8x32xbf16>, vector<8x32xf32> -> vector<8x32xf32>
    %179 = arith.addf %144, %178 : vector<8x32xf32>
    %c0_98 = arith.constant 0 : index
    %c24 = arith.constant 24 : index
    %180 = vector.load %arg10[%c0_98, %c24] : memref<32x32xbf16, #tpu.memory_space<vmem>>, vector<32x8xbf16>
    %cst_99 = arith.constant dense<0.000000e+00> : vector<8x8xf32>
    %181 = tpu.matmul %73, %180, %cst_99 {dimension_numbers = #tpu.dot_dimension_numbers<[1], [0], [0], [1], [0, 0, 1, 1], [], []>} : vector<8x32xbf16>, vector<32x8xbf16>, vector<8x8xf32> -> vector<8x8xf32>
    %c0_100 = arith.constant 0 : index
    %c24_101 = arith.constant 24 : index
    %182 = vector.load %arg11[%c0_100, %c24_101] : memref<1x32xf32, #tpu.memory_space<vmem>>, vector<1x8xf32>
    %183 = vector.broadcast %182 : vector<1x8xf32> to vector<8x8xf32>
    %184 = arith.addf %181, %183 : vector<8x8xf32>
    %c0_102 = arith.constant 0 : index
    %c24_103 = arith.constant 24 : index
    %185 = vector.load %arg12[%c0_102, %c24_103] : memref<32x32xbf16, #tpu.memory_space<vmem>>, vector<32x8xbf16>
    %cst_104 = arith.constant dense<0.000000e+00> : vector<8x8xf32>
    %186 = tpu.matmul %73, %185, %cst_104 {dimension_numbers = #tpu.dot_dimension_numbers<[1], [0], [0], [1], [0, 0, 1, 1], [], []>} : vector<8x32xbf16>, vector<32x8xbf16>, vector<8x8xf32> -> vector<8x8xf32>
    %c0_105 = arith.constant 0 : index
    %c24_106 = arith.constant 24 : index
    %187 = vector.load %arg13[%c0_105, %c24_106] : memref<1x32xf32, #tpu.memory_space<vmem>>, vector<1x8xf32>
    %188 = vector.broadcast %187 : vector<1x8xf32> to vector<8x8xf32>
    %189 = arith.addf %186, %188 : vector<8x8xf32>
    %c0_107 = arith.constant 0 : index
    %c24_108 = arith.constant 24 : index
    %190 = vector.load %arg14[%c0_107, %c24_108] : memref<32x32xbf16, #tpu.memory_space<vmem>>, vector<32x8xbf16>
    %cst_109 = arith.constant dense<0.000000e+00> : vector<8x8xf32>
    %191 = tpu.matmul %73, %190, %cst_109 {dimension_numbers = #tpu.dot_dimension_numbers<[1], [0], [0], [1], [0, 0, 1, 1], [], []>} : vector<8x32xbf16>, vector<32x8xbf16>, vector<8x8xf32> -> vector<8x8xf32>
    %c0_110 = arith.constant 0 : index
    %c24_111 = arith.constant 24 : index
    %192 = vector.load %arg15[%c0_110, %c24_111] : memref<1x32xf32, #tpu.memory_space<vmem>>, vector<1x8xf32>
    %193 = vector.broadcast %192 : vector<1x8xf32> to vector<8x8xf32>
    %194 = arith.addf %191, %193 : vector<8x8xf32>
    %195 = arith.truncf %184 : vector<8x8xf32> to vector<8x8xbf16>
    %196 = arith.truncf %189 : vector<8x8xf32> to vector<8x8xbf16>
    %cst_112 = arith.constant dense<0.000000e+00> : vector<8x8xf32>
    %197 = tpu.matmul %195, %196, %cst_112 {dimension_numbers = #tpu.dot_dimension_numbers<[1], [1], [0], [0], [0, 0, 1, 0], [], []>} : vector<8x8xbf16>, vector<8x8xbf16>, vector<8x8xf32> -> vector<8x8xf32>
    %cst_113 = arith.constant dense<0xFF800000> : vector<8xf32>
    %198 = vector.multi_reduction <maximumf>, %197, %cst_113 [1] : vector<8x8xf32> to vector<8xf32>
    %199 = vector.shape_cast %198 : vector<8xf32> to vector<8x1xf32>
    %200 = vector.broadcast %199 : vector<8x1xf32> to vector<8x8xf32>
    %201 = arith.subf %197, %200 : vector<8x8xf32>
    %202 = math.exp %201 : vector<8x8xf32>
    %cst_114 = arith.constant dense<0.000000e+00> : vector<8xf32>
    %203 = vector.multi_reduction <add>, %202, %cst_114 [1] : vector<8x8xf32> to vector<8xf32>
    %204 = vector.shape_cast %203 : vector<8xf32> to vector<8x1xf32>
    %205 = tpu.reciprocal %204 {approx = true} : vector<8x1xf32> -> vector<8x1xf32>
    %206 = vector.broadcast %205 : vector<8x1xf32> to vector<8x8xf32>
    %207 = arith.mulf %202, %206 : vector<8x8xf32>
    %208 = arith.truncf %207 : vector<8x8xf32> to vector<8x8xbf16>
    %209 = arith.truncf %194 : vector<8x8xf32> to vector<8x8xbf16>
    %cst_115 = arith.constant dense<0.000000e+00> : vector<8x8xf32>
    %210 = tpu.matmul %208, %209, %cst_115 {dimension_numbers = #tpu.dot_dimension_numbers<[1], [0], [0], [1], [0, 0, 1, 1], [], []>} : vector<8x8xbf16>, vector<8x8xbf16>, vector<8x8xf32> -> vector<8x8xf32>
    %211 = arith.truncf %210 : vector<8x8xf32> to vector<8x8xbf16>
    %c24_116 = arith.constant 24 : index
    %c0_117 = arith.constant 0 : index
    %212 = vector.load %arg16[%c24_116, %c0_117] : memref<32x32xbf16, #tpu.memory_space<vmem>>, vector<8x32xbf16>
    %cst_118 = arith.constant dense<0.000000e+00> : vector<8x32xf32>
    %213 = tpu.matmul %211, %212, %cst_118 {dimension_numbers = #tpu.dot_dimension_numbers<[1], [0], [0], [1], [0, 0, 1, 1], [], []>} : vector<8x8xbf16>, vector<8x32xbf16>, vector<8x32xf32> -> vector<8x32xf32>
    %214 = arith.addf %179, %213 : vector<8x32xf32>
    %c0_119 = arith.constant 0 : index
    %c0_120 = arith.constant 0 : index
    %215 = vector.load %arg17[%c0_119, %c0_120] : memref<1x32xf32, #tpu.memory_space<vmem>>, vector<1x32xf32>
    %216 = vector.broadcast %215 : vector<1x32xf32> to vector<8x32xf32>
    %217 = arith.addf %214, %216 : vector<8x32xf32>
    %218 = arith.addf %217, %48 : vector<8x32xf32>
    %c0_121 = arith.constant 0 : index
    %c0_122 = arith.constant 0 : index
    %219 = vector.load %arg18[%c0_121, %c0_122] : memref<1x32xf32, #tpu.memory_space<vmem>>, vector<1x32xf32>
    %c0_123 = arith.constant 0 : index
    %c0_124 = arith.constant 0 : index
    %220 = vector.load %arg19[%c0_123, %c0_124] : memref<1x32xf32, #tpu.memory_space<vmem>>, vector<1x32xf32>
    %cst_125 = arith.constant dense<0.000000e+00> : vector<8xf32>
    %221 = vector.multi_reduction <add>, %218, %cst_125 [1] : vector<8x32xf32> to vector<8xf32>
    %222 = vector.shape_cast %221 : vector<8xf32> to vector<8x1xf32>
    %cst_126 = arith.constant 3.200000e+01 : f32
    %223 = vector.broadcast %cst_126 : f32 to vector<8x1xf32>
    %224 = arith.divf %222, %223 : vector<8x1xf32>
    %225 = vector.broadcast %224 : vector<8x1xf32> to vector<8x32xf32>
    %226 = arith.subf %218, %225 : vector<8x32xf32>
    %227 = arith.mulf %226, %226 : vector<8x32xf32>
    %cst_127 = arith.constant dense<0.000000e+00> : vector<8xf32>
    %228 = vector.multi_reduction <add>, %227, %cst_127 [1] : vector<8x32xf32> to vector<8xf32>
    %229 = vector.shape_cast %228 : vector<8xf32> to vector<8x1xf32>
    %cst_128 = arith.constant 3.200000e+01 : f32
    %230 = vector.broadcast %cst_128 : f32 to vector<8x1xf32>
    %231 = arith.divf %229, %230 : vector<8x1xf32>
    %232 = vector.broadcast %224 : vector<8x1xf32> to vector<8x32xf32>
    %233 = arith.subf %218, %232 : vector<8x32xf32>
    %cst_129 = arith.constant 9.99999974E-6 : f32
    %234 = vector.broadcast %cst_129 : f32 to vector<8x1xf32>
    %235 = arith.addf %231, %234 : vector<8x1xf32>
    %236 = math.rsqrt %235 : vector<8x1xf32>
    %237 = vector.broadcast %236 : vector<8x1xf32> to vector<8x32xf32>
    %238 = arith.mulf %233, %237 : vector<8x32xf32>
    %239 = vector.broadcast %219 : vector<1x32xf32> to vector<8x32xf32>
    %240 = arith.mulf %238, %239 : vector<8x32xf32>
    %241 = vector.broadcast %220 : vector<1x32xf32> to vector<8x32xf32>
    %242 = arith.addf %240, %241 : vector<8x32xf32>
    %243 = arith.truncf %242 : vector<8x32xf32> to vector<8x32xbf16>
    %c0_130 = arith.constant 0 : index
    %c0_131 = arith.constant 0 : index
    %244 = vector.load %arg20[%c0_130, %c0_131] : memref<32x32xbf16, #tpu.memory_space<vmem>>, vector<32x32xbf16>
    %cst_132 = arith.constant dense<0.000000e+00> : vector<8x32xf32>
    %245 = tpu.matmul %243, %244, %cst_132 {dimension_numbers = #tpu.dot_dimension_numbers<[1], [0], [0], [1], [0, 0, 1, 1], [], []>} : vector<8x32xbf16>, vector<32x32xbf16>, vector<8x32xf32> -> vector<8x32xf32>
    %c0_133 = arith.constant 0 : index
    %c0_134 = arith.constant 0 : index
    %246 = vector.load %arg21[%c0_133, %c0_134] : memref<1x32xf32, #tpu.memory_space<vmem>>, vector<1x32xf32>
    %247 = vector.broadcast %246 : vector<1x32xf32> to vector<8x32xf32>
    %248 = arith.addf %245, %247 : vector<8x32xf32>
    %c0_135 = arith.constant 0 : index
    %c0_136 = arith.constant 0 : index
    %249 = vector.load %arg22[%c0_135, %c0_136] : memref<32x32xbf16, #tpu.memory_space<vmem>>, vector<32x32xbf16>
    %cst_137 = arith.constant dense<0.000000e+00> : vector<8x32xf32>
    %250 = tpu.matmul %243, %249, %cst_137 {dimension_numbers = #tpu.dot_dimension_numbers<[1], [0], [0], [1], [0, 0, 1, 1], [], []>} : vector<8x32xbf16>, vector<32x32xbf16>, vector<8x32xf32> -> vector<8x32xf32>
    %c0_138 = arith.constant 0 : index
    %c0_139 = arith.constant 0 : index
    %251 = vector.load %arg23[%c0_138, %c0_139] : memref<1x32xf32, #tpu.memory_space<vmem>>, vector<1x32xf32>
    %252 = vector.broadcast %251 : vector<1x32xf32> to vector<8x32xf32>
    %253 = arith.addf %250, %252 : vector<8x32xf32>
    %cst_140 = arith.constant 0.000000e+00 : f32
    %254 = vector.broadcast %cst_140 : f32 to vector<8x32xf32>
    %255 = arith.subf %254, %253 : vector<8x32xf32>
    %256 = math.exp %255 : vector<8x32xf32>
    %cst_141 = arith.constant 1.000000e+00 : f32
    %257 = vector.broadcast %cst_141 : f32 to vector<8x32xf32>
    %258 = arith.addf %257, %256 : vector<8x32xf32>
    %cst_142 = arith.constant 1.000000e+00 : f32
    %259 = vector.broadcast %cst_142 : f32 to vector<8x32xf32>
    %260 = arith.divf %259, %258 : vector<8x32xf32>
    %261 = arith.mulf %248, %260 : vector<8x32xf32>
    %cst_143 = arith.constant 0.000000e+00 : f32
    %262 = vector.broadcast %cst_143 : f32 to vector<1x32xf32>
    %c0_144 = arith.constant 0 : index
    %c0_145 = arith.constant 0 : index
    %263 = vector.load %arg39[%c0_144, %c0_145] : memref<10x32xf32, #tpu.memory_space<vmem>>, vector<1x32xf32>
    tpu.vector_store %arg39[%c0_144, %c0_145], %262 {strides = array<i32>} : memref<10x32xf32, #tpu.memory_space<vmem>>, vector<1x32xf32>,
    %c9 = arith.constant 9 : index
    %c0_146 = arith.constant 0 : index
    %264 = vector.load %arg39[%c9, %c0_146] : memref<10x32xf32, #tpu.memory_space<vmem>>, vector<1x32xf32>
    tpu.vector_store %arg39[%c9, %c0_146], %262 {strides = array<i32>} : memref<10x32xf32, #tpu.memory_space<vmem>>, vector<1x32xf32>,
    %c1 = arith.constant 1 : index
    %c0_147 = arith.constant 0 : index
    %265 = vector.load %arg39[%c1, %c0_147] : memref<10x32xf32, #tpu.memory_space<vmem>>, vector<8x32xf32>
    tpu.vector_store %arg39[%c1, %c0_147], %261 {strides = array<i32>} : memref<10x32xf32, #tpu.memory_space<vmem>>, vector<8x32xf32>,
    %c0_148 = arith.constant 0 : index
    %c0_149 = arith.constant 0 : index
    %c0_150 = arith.constant 0 : index
    %266 = vector.load %arg24[%c0_148, %c0_149, %c0_150] : memref<3x1x32xf32, #tpu.memory_space<vmem>>, vector<3x1x32xf32>
    %cst_151 = arith.constant 0.000000e+00 : f32
    %267 = vector.broadcast %cst_151 : f32 to vector<8x32xf32>
    %c0_152 = arith.constant 0 : index
    %c0_153 = arith.constant 0 : index
    %268 = vector.load %arg39[%c0_152, %c0_153] : memref<10x32xf32, #tpu.memory_space<vmem>>, vector<8x32xf32>
    %269 = vector.extract_strided_slice %266 {offsets = [0, 0, 0], sizes = [1, 1, 32], strides = [1, 1, 1]} : vector<3x1x32xf32> to vector<1x1x32xf32>
    %270 = vector.shape_cast %269 : vector<1x1x32xf32> to vector<1x32xf32>
    %271 = vector.broadcast %270 : vector<1x32xf32> to vector<8x32xf32>
    %272 = arith.mulf %268, %271 : vector<8x32xf32>
    %273 = arith.addf %267, %272 : vector<8x32xf32>
    %c1_154 = arith.constant 1 : index
    %c0_155 = arith.constant 0 : index
    %274 = vector.load %arg39[%c1_154, %c0_155] : memref<10x32xf32, #tpu.memory_space<vmem>>, vector<8x32xf32>
    %275 = vector.extract_strided_slice %266 {offsets = [1, 0, 0], sizes = [1, 1, 32], strides = [1, 1, 1]} : vector<3x1x32xf32> to vector<1x1x32xf32>
    %276 = vector.shape_cast %275 : vector<1x1x32xf32> to vector<1x32xf32>
    %277 = vector.broadcast %276 : vector<1x32xf32> to vector<8x32xf32>
    %278 = arith.mulf %274, %277 : vector<8x32xf32>
    %279 = arith.addf %273, %278 : vector<8x32xf32>
    %c2 = arith.constant 2 : index
    %c0_156 = arith.constant 0 : index
    %280 = vector.load %arg39[%c2, %c0_156] : memref<10x32xf32, #tpu.memory_space<vmem>>, vector<8x32xf32>
    %281 = vector.extract_strided_slice %266 {offsets = [2, 0, 0], sizes = [1, 1, 32], strides = [1, 1, 1]} : vector<3x1x32xf32> to vector<1x1x32xf32>
    %282 = vector.shape_cast %281 : vector<1x1x32xf32> to vector<1x32xf32>
    %283 = vector.broadcast %282 : vector<1x32xf32> to vector<8x32xf32>
    %284 = arith.mulf %280, %283 : vector<8x32xf32>
    %285 = arith.addf %279, %284 : vector<8x32xf32>
    %c0_157 = arith.constant 0 : index
    %c0_158 = arith.constant 0 : index
    %286 = vector.load %arg25[%c0_157, %c0_158] : memref<1x32xf32, #tpu.memory_space<vmem>>, vector<1x32xf32>
    %287 = vector.broadcast %286 : vector<1x32xf32> to vector<8x32xf32>
    %288 = arith.addf %285, %287 : vector<8x32xf32>
    %c0_159 = arith.constant 0 : index
    %c0_160 = arith.constant 0 : index
    %289 = vector.load %arg28[%c0_159, %c0_160] : memref<1x32xf32, #tpu.memory_space<vmem>>, vector<1x32xf32>
    %290 = vector.broadcast %289 : vector<1x32xf32> to vector<8x32xf32>
    %291 = arith.subf %288, %290 : vector<8x32xf32>
    %c0_161 = arith.constant 0 : index
    %c0_162 = arith.constant 0 : index
    %292 = vector.load %arg29[%c0_161, %c0_162] : memref<1x32xf32, #tpu.memory_space<vmem>>, vector<1x32xf32>
    %cst_163 = arith.constant 9.99999974E-6 : f32
    %293 = vector.broadcast %cst_163 : f32 to vector<1x32xf32>
    %294 = arith.addf %292, %293 : vector<1x32xf32>
    %295 = math.rsqrt %294 : vector<1x32xf32>
    %296 = vector.broadcast %295 : vector<1x32xf32> to vector<8x32xf32>
    %297 = arith.mulf %291, %296 : vector<8x32xf32>
    %c0_164 = arith.constant 0 : index
    %c0_165 = arith.constant 0 : index
    %298 = vector.load %arg26[%c0_164, %c0_165] : memref<1x32xf32, #tpu.memory_space<vmem>>, vector<1x32xf32>
    %299 = vector.broadcast %298 : vector<1x32xf32> to vector<8x32xf32>
    %300 = arith.mulf %297, %299 : vector<8x32xf32>
    %c0_166 = arith.constant 0 : index
    %c0_167 = arith.constant 0 : index
    %301 = vector.load %arg27[%c0_166, %c0_167] : memref<1x32xf32, #tpu.memory_space<vmem>>, vector<1x32xf32>
    %302 = vector.broadcast %301 : vector<1x32xf32> to vector<8x32xf32>
    %303 = arith.addf %300, %302 : vector<8x32xf32>
    %cst_168 = arith.constant 0.000000e+00 : f32
    %304 = vector.broadcast %cst_168 : f32 to vector<8x32xf32>
    %305 = arith.subf %304, %303 : vector<8x32xf32>
    %306 = math.exp %305 : vector<8x32xf32>
    %cst_169 = arith.constant 1.000000e+00 : f32
    %307 = vector.broadcast %cst_169 : f32 to vector<8x32xf32>
    %308 = arith.addf %307, %306 : vector<8x32xf32>
    %cst_170 = arith.constant 1.000000e+00 : f32
    %309 = vector.broadcast %cst_170 : f32 to vector<8x32xf32>
    %310 = arith.divf %309, %308 : vector<8x32xf32>
    %311 = arith.mulf %303, %310 : vector<8x32xf32>
    %312 = arith.truncf %311 : vector<8x32xf32> to vector<8x32xbf16>
    %c0_171 = arith.constant 0 : index
    %c0_172 = arith.constant 0 : index
    %313 = vector.load %arg30[%c0_171, %c0_172] : memref<32x32xbf16, #tpu.memory_space<vmem>>, vector<32x32xbf16>
    %cst_173 = arith.constant dense<0.000000e+00> : vector<8x32xf32>
    %314 = tpu.matmul %312, %313, %cst_173 {dimension_numbers = #tpu.dot_dimension_numbers<[1], [0], [0], [1], [0, 0, 1, 1], [], []>} : vector<8x32xbf16>, vector<32x32xbf16>, vector<8x32xf32> -> vector<8x32xf32>
    %c0_174 = arith.constant 0 : index
    %c0_175 = arith.constant 0 : index
    %315 = vector.load %arg31[%c0_174, %c0_175] : memref<1x32xf32, #tpu.memory_space<vmem>>, vector<1x32xf32>
    %316 = vector.broadcast %315 : vector<1x32xf32> to vector<8x32xf32>
    %317 = arith.addf %314, %316 : vector<8x32xf32>
    %318 = arith.addf %317, %218 : vector<8x32xf32>
    %c0_176 = arith.constant 0 : index
    %c0_177 = arith.constant 0 : index
    %319 = vector.load %arg32[%c0_176, %c0_177] : memref<1x32xf32, #tpu.memory_space<vmem>>, vector<1x32xf32>
    %c0_178 = arith.constant 0 : index
    %c0_179 = arith.constant 0 : index
    %320 = vector.load %arg33[%c0_178, %c0_179] : memref<1x32xf32, #tpu.memory_space<vmem>>, vector<1x32xf32>
    %cst_180 = arith.constant dense<0.000000e+00> : vector<8xf32>
    %321 = vector.multi_reduction <add>, %318, %cst_180 [1] : vector<8x32xf32> to vector<8xf32>
    %322 = vector.shape_cast %321 : vector<8xf32> to vector<8x1xf32>
    %cst_181 = arith.constant 3.200000e+01 : f32
    %323 = vector.broadcast %cst_181 : f32 to vector<8x1xf32>
    %324 = arith.divf %322, %323 : vector<8x1xf32>
    %325 = vector.broadcast %324 : vector<8x1xf32> to vector<8x32xf32>
    %326 = arith.subf %318, %325 : vector<8x32xf32>
    %327 = arith.mulf %326, %326 : vector<8x32xf32>
    %cst_182 = arith.constant dense<0.000000e+00> : vector<8xf32>
    %328 = vector.multi_reduction <add>, %327, %cst_182 [1] : vector<8x32xf32> to vector<8xf32>
    %329 = vector.shape_cast %328 : vector<8xf32> to vector<8x1xf32>
    %cst_183 = arith.constant 3.200000e+01 : f32
    %330 = vector.broadcast %cst_183 : f32 to vector<8x1xf32>
    %331 = arith.divf %329, %330 : vector<8x1xf32>
    %332 = vector.broadcast %324 : vector<8x1xf32> to vector<8x32xf32>
    %333 = arith.subf %318, %332 : vector<8x32xf32>
    %cst_184 = arith.constant 9.99999974E-6 : f32
    %334 = vector.broadcast %cst_184 : f32 to vector<8x1xf32>
    %335 = arith.addf %331, %334 : vector<8x1xf32>
    %336 = math.rsqrt %335 : vector<8x1xf32>
    %337 = vector.broadcast %336 : vector<8x1xf32> to vector<8x32xf32>
    %338 = arith.mulf %333, %337 : vector<8x32xf32>
    %339 = vector.broadcast %319 : vector<1x32xf32> to vector<8x32xf32>
    %340 = arith.mulf %338, %339 : vector<8x32xf32>
    %341 = vector.broadcast %320 : vector<1x32xf32> to vector<8x32xf32>
    %342 = arith.addf %340, %341 : vector<8x32xf32>
    %343 = arith.truncf %342 : vector<8x32xf32> to vector<8x32xbf16>
    %c0_185 = arith.constant 0 : index
    %c0_186 = arith.constant 0 : index
    %344 = vector.load %arg34[%c0_185, %c0_186] : memref<32x64xbf16, #tpu.memory_space<vmem>>, vector<32x64xbf16>
    %cst_187 = arith.constant dense<0.000000e+00> : vector<8x64xf32>
    %345 = tpu.matmul %343, %344, %cst_187 {dimension_numbers = #tpu.dot_dimension_numbers<[1], [0], [0], [1], [0, 0, 1, 1], [], []>} : vector<8x32xbf16>, vector<32x64xbf16>, vector<8x64xf32> -> vector<8x64xf32>
    %c0_188 = arith.constant 0 : index
    %c0_189 = arith.constant 0 : index
    %346 = vector.load %arg35[%c0_188, %c0_189] : memref<1x64xf32, #tpu.memory_space<vmem>>, vector<1x64xf32>
    %347 = vector.broadcast %346 : vector<1x64xf32> to vector<8x64xf32>
    %348 = arith.addf %345, %347 : vector<8x64xf32>
    %cst_190 = arith.constant 0.000000e+00 : f32
    %349 = vector.broadcast %cst_190 : f32 to vector<8x64xf32>
    %350 = arith.subf %349, %348 : vector<8x64xf32>
    %351 = math.exp %350 : vector<8x64xf32>
    %cst_191 = arith.constant 1.000000e+00 : f32
    %352 = vector.broadcast %cst_191 : f32 to vector<8x64xf32>
    %353 = arith.addf %352, %351 : vector<8x64xf32>
    %cst_192 = arith.constant 1.000000e+00 : f32
    %354 = vector.broadcast %cst_192 : f32 to vector<8x64xf32>
    %355 = arith.divf %354, %353 : vector<8x64xf32>
    %356 = arith.mulf %348, %355 : vector<8x64xf32>
    %357 = arith.truncf %356 : vector<8x64xf32> to vector<8x64xbf16>
    %c0_193 = arith.constant 0 : index
    %c0_194 = arith.constant 0 : index
    %358 = vector.load %arg36[%c0_193, %c0_194] : memref<64x32xbf16, #tpu.memory_space<vmem>>, vector<64x32xbf16>
    %cst_195 = arith.constant dense<0.000000e+00> : vector<8x32xf32>
    %359 = tpu.matmul %357, %358, %cst_195 {dimension_numbers = #tpu.dot_dimension_numbers<[1], [0], [0], [1], [0, 0, 1, 1], [], []>} : vector<8x64xbf16>, vector<64x32xbf16>, vector<8x32xf32> -> vector<8x32xf32>
    %c0_196 = arith.constant 0 : index
    %c0_197 = arith.constant 0 : index
    %360 = vector.load %arg37[%c0_196, %c0_197] : memref<1x32xf32, #tpu.memory_space<vmem>>, vector<1x32xf32>
    %361 = vector.broadcast %360 : vector<1x32xf32> to vector<8x32xf32>
    %362 = arith.addf %359, %361 : vector<8x32xf32>
    %cst_198 = arith.constant 5.000000e-01 : f32
    %363 = vector.broadcast %cst_198 : f32 to vector<8x32xf32>
    %364 = arith.mulf %363, %362 : vector<8x32xf32>
    %365 = arith.addf %364, %318 : vector<8x32xf32>
    %c0_199 = arith.constant 0 : index
    %c0_200 = arith.constant 0 : index
    %c0_201 = arith.constant 0 : index
    %366 = vector.load %arg38[%c0_199, %c0_200, %c0_201] : memref<1x8x32xf32, #tpu.memory_space<vmem>>, vector<1x8x32xf32>
    %367 = vector.shape_cast %366 : vector<1x8x32xf32> to vector<8x32xf32>
    %368 = vector.shape_cast %365 : vector<8x32xf32> to vector<1x8x32xf32>
    tpu.vector_store %arg38[%c0_199, %c0_200, %c0_201], %368 {strides = array<i32>} : memref<1x8x32xf32, #tpu.memory_space<vmem>>, vector<1x8x32xf32>,
    return
  }
  func.func @transform_0(%arg0: i32) -> (i32, i32, i32) {
    %c0_i32 = arith.constant 0 : i32
    %c0_i32_0 = arith.constant 0 : i32
    %c0_i32_1 = arith.constant 0 : i32
    return %arg0, %c0_i32, %c0_i32_0 : i32, i32, i32
  }
  func.func @transform_1(%arg0: i32) -> (i32, i32) {
    %c0_i32 = arith.constant 0 : i32
    %c0_i32_0 = arith.constant 0 : i32
    %c0_i32_1 = arith.constant 0 : i32
    return %c0_i32, %c0_i32_0 : i32, i32
  }
  func.func @transform_2(%arg0: i32) -> (i32, i32) {
    %c0_i32 = arith.constant 0 : i32
    %c0_i32_0 = arith.constant 0 : i32
    %c0_i32_1 = arith.constant 0 : i32
    return %c0_i32, %c0_i32_0 : i32, i32
  }
  func.func @transform_3(%arg0: i32) -> (i32, i32) {
    %c0_i32 = arith.constant 0 : i32
    %c0_i32_0 = arith.constant 0 : i32
    %c0_i32_1 = arith.constant 0 : i32
    return %c0_i32, %c0_i32_0 : i32, i32
  }
  func.func @transform_4(%arg0: i32) -> (i32, i32) {
    %c0_i32 = arith.constant 0 : i32
    %c0_i32_0 = arith.constant 0 : i32
    %c0_i32_1 = arith.constant 0 : i32
    return %c0_i32, %c0_i32_0 : i32, i32
  }
  func.func @transform_5(%arg0: i32) -> (i32, i32) {
    %c0_i32 = arith.constant 0 : i32
    %c0_i32_0 = arith.constant 0 : i32
    %c0_i32_1 = arith.constant 0 : i32
    return %c0_i32, %c0_i32_0 : i32, i32
  }
  func.func @transform_6(%arg0: i32) -> (i32, i32) {
    %c0_i32 = arith.constant 0 : i32
    %c0_i32_0 = arith.constant 0 : i32
    %c0_i32_1 = arith.constant 0 : i32
    return %c0_i32, %c0_i32_0 : i32, i32
  }
  func.func @transform_7(%arg0: i32) -> (i32, i32) {
    %c0_i32 = arith.constant 0 : i32
    %c0_i32_0 = arith.constant 0 : i32
    %c0_i32_1 = arith.constant 0 : i32
    return %c0_i32, %c0_i32_0 : i32, i32
  }
  func.func @transform_8(%arg0: i32) -> (i32, i32) {
    %c0_i32 = arith.constant 0 : i32
    %c0_i32_0 = arith.constant 0 : i32
    %c0_i32_1 = arith.constant 0 : i32
    return %c0_i32, %c0_i32_0 : i32, i32
  }
  func.func @transform_9(%arg0: i32) -> (i32, i32) {
    %c0_i32 = arith.constant 0 : i32
    %c0_i32_0 = arith.constant 0 : i32
    %c0_i32_1 = arith.constant 0 : i32
    return %c0_i32, %c0_i32_0 : i32, i32
  }
  func.func @transform_10(%arg0: i32) -> (i32, i32) {
    %c0_i32 = arith.constant 0 : i32
    %c0_i32_0 = arith.constant 0 : i32
    %c0_i32_1 = arith.constant 0 : i32
    return %c0_i32, %c0_i32_0 : i32, i32
  }
  func.func @transform_11(%arg0: i32) -> (i32, i32) {
    %c0_i32 = arith.constant 0 : i32
    %c0_i32_0 = arith.constant 0 : i32
    %c0_i32_1 = arith.constant 0 : i32
    return %c0_i32, %c0_i32_0 : i32, i32
  }
  func.func @transform_12(%arg0: i32) -> (i32, i32) {
    %c0_i32 = arith.constant 0 : i32
    %c0_i32_0 = arith.constant 0 : i32
    %c0_i32_1 = arith.constant 0 : i32
    return %c0_i32, %c0_i32_0 : i32, i32
  }
  func.func @transform_13(%arg0: i32) -> (i32, i32) {
    %c0_i32 = arith.constant 0 : i32
    %c0_i32_0 = arith.constant 0 : i32
    %c0_i32_1 = arith.constant 0 : i32
    return %c0_i32, %c0_i32_0 : i32, i32
  }
  func.func @transform_14(%arg0: i32) -> (i32, i32) {
    %c0_i32 = arith.constant 0 : i32
    %c0_i32_0 = arith.constant 0 : i32
    %c0_i32_1 = arith.constant 0 : i32
    return %c0_i32, %c0_i32_0 : i32, i32
  }
  func.func @transform_15(%arg0: i32) -> (i32, i32) {
    %c0_i32 = arith.constant 0 : i32
    %c0_i32_0 = arith.constant 0 : i32
    %c0_i32_1 = arith.constant 0 : i32
    return %c0_i32, %c0_i32_0 : i32, i32
  }
  func.func @transform_16(%arg0: i32) -> (i32, i32) {
    %c0_i32 = arith.constant 0 : i32
    %c0_i32_0 = arith.constant 0 : i32
    %c0_i32_1 = arith.constant 0 : i32
    return %c0_i32, %c0_i32_0 : i32, i32
  }
  func.func @transform_17(%arg0: i32) -> (i32, i32) {
    %c0_i32 = arith.constant 0 : i32
    %c0_i32_0 = arith.constant 0 : i32
    %c0_i32_1 = arith.constant 0 : i32
    return %c0_i32, %c0_i32_0 : i32, i32
  }
  func.func @transform_18(%arg0: i32) -> (i32, i32) {
    %c0_i32 = arith.constant 0 : i32
    %c0_i32_0 = arith.constant 0 : i32
    %c0_i32_1 = arith.constant 0 : i32
    return %c0_i32, %c0_i32_0 : i32, i32
  }
  func.func @transform_19(%arg0: i32) -> (i32, i32) {
    %c0_i32 = arith.constant 0 : i32
    %c0_i32_0 = arith.constant 0 : i32
    %c0_i32_1 = arith.constant 0 : i32
    return %c0_i32, %c0_i32_0 : i32, i32
  }
  func.func @transform_20(%arg0: i32) -> (i32, i32) {
    %c0_i32 = arith.constant 0 : i32
    %c0_i32_0 = arith.constant 0 : i32
    %c0_i32_1 = arith.constant 0 : i32
    return %c0_i32, %c0_i32_0 : i32, i32
  }
  func.func @transform_21(%arg0: i32) -> (i32, i32) {
    %c0_i32 = arith.constant 0 : i32
    %c0_i32_0 = arith.constant 0 : i32
    %c0_i32_1 = arith.constant 0 : i32
    return %c0_i32, %c0_i32_0 : i32, i32
  }
  func.func @transform_22(%arg0: i32) -> (i32, i32) {
    %c0_i32 = arith.constant 0 : i32
    %c0_i32_0 = arith.constant 0 : i32
    %c0_i32_1 = arith.constant 0 : i32
    return %c0_i32, %c0_i32_0 : i32, i32
  }
  func.func @transform_23(%arg0: i32) -> (i32, i32, i32) {
    %c0_i32 = arith.constant 0 : i32
    %c0_i32_0 = arith.constant 0 : i32
    %c0_i32_1 = arith.constant 0 : i32
    %c0_i32_2 = arith.constant 0 : i32
    return %c0_i32, %c0_i32_0, %c0_i32_1 : i32, i32, i32
  }
  func.func @transform_24(%arg0: i32) -> (i32, i32) {
    %c0_i32 = arith.constant 0 : i32
    %c0_i32_0 = arith.constant 0 : i32
    %c0_i32_1 = arith.constant 0 : i32
    return %c0_i32, %c0_i32_0 : i32, i32
  }
  func.func @transform_25(%arg0: i32) -> (i32, i32) {
    %c0_i32 = arith.constant 0 : i32
    %c0_i32_0 = arith.constant 0 : i32
    %c0_i32_1 = arith.constant 0 : i32
    return %c0_i32, %c0_i32_0 : i32, i32
  }
  func.func @transform_26(%arg0: i32) -> (i32, i32) {
    %c0_i32 = arith.constant 0 : i32
    %c0_i32_0 = arith.constant 0 : i32
    %c0_i32_1 = arith.constant 0 : i32
    return %c0_i32, %c0_i32_0 : i32, i32
  }
  func.func @transform_27(%arg0: i32) -> (i32, i32) {
    %c0_i32 = arith.constant 0 : i32
    %c0_i32_0 = arith.constant 0 : i32
    %c0_i32_1 = arith.constant 0 : i32
    return %c0_i32, %c0_i32_0 : i32, i32
  }
  func.func @transform_28(%arg0: i32) -> (i32, i32) {
    %c0_i32 = arith.constant 0 : i32
    %c0_i32_0 = arith.constant 0 : i32
    %c0_i32_1 = arith.constant 0 : i32
    return %c0_i32, %c0_i32_0 : i32, i32
  }
  func.func @transform_29(%arg0: i32) -> (i32, i32) {
    %c0_i32 = arith.constant 0 : i32
    %c0_i32_0 = arith.constant 0 : i32
    %c0_i32_1 = arith.constant 0 : i32
    return %c0_i32, %c0_i32_0 : i32, i32
  }
  func.func @transform_30(%arg0: i32) -> (i32, i32) {
    %c0_i32 = arith.constant 0 : i32
    %c0_i32_0 = arith.constant 0 : i32
    %c0_i32_1 = arith.constant 0 : i32
    return %c0_i32, %c0_i32_0 : i32, i32
  }
  func.func @transform_31(%arg0: i32) -> (i32, i32) {
    %c0_i32 = arith.constant 0 : i32
    %c0_i32_0 = arith.constant 0 : i32
    %c0_i32_1 = arith.constant 0 : i32
    return %c0_i32, %c0_i32_0 : i32, i32
  }
  func.func @transform_32(%arg0: i32) -> (i32, i32) {
    %c0_i32 = arith.constant 0 : i32
    %c0_i32_0 = arith.constant 0 : i32
    %c0_i32_1 = arith.constant 0 : i32
    return %c0_i32, %c0_i32_0 : i32, i32
  }
  func.func @transform_33(%arg0: i32) -> (i32, i32) {
    %c0_i32 = arith.constant 0 : i32
    %c0_i32_0 = arith.constant 0 : i32
    %c0_i32_1 = arith.constant 0 : i32
    return %c0_i32, %c0_i32_0 : i32, i32
  }
  func.func @transform_34(%arg0: i32) -> (i32, i32) {
    %c0_i32 = arith.constant 0 : i32
    %c0_i32_0 = arith.constant 0 : i32
    %c0_i32_1 = arith.constant 0 : i32
    return %c0_i32, %c0_i32_0 : i32, i32
  }
  func.func @transform_35(%arg0: i32) -> (i32, i32) {
    %c0_i32 = arith.constant 0 : i32
    %c0_i32_0 = arith.constant 0 : i32
    %c0_i32_1 = arith.constant 0 : i32
    return %c0_i32, %c0_i32_0 : i32, i32
  }
  func.func @transform_36(%arg0: i32) -> (i32, i32) {
    %c0_i32 = arith.constant 0 : i32
    %c0_i32_0 = arith.constant 0 : i32
    %c0_i32_1 = arith.constant 0 : i32
    return %c0_i32, %c0_i32_0 : i32, i32
  }
  func.func @transform_37(%arg0: i32) -> (i32, i32, i32) {
    %c0_i32 = arith.constant 0 : i32
    %c0_i32_0 = arith.constant 0 : i32
    %c0_i32_1 = arith.constant 0 : i32
    return %arg0, %c0_i32, %c0_i32_0 : i32, i32, i32
  }
}

</mosaic_0001>

<bundles_post_ra>
// kernel: tpu_custom_call.1
= control target key start
LH: loop header
LB: loop body
LE: loop exit
PB: predicated region body
PF: predicated region fallthrough
CT: control target
= control target key end

     0   :  { %s3962_s6 = smov 1   ;;  %s3963_s10 = smov 2   ;;  %s4769_s0 = inlined_call_operand.smem [shape: u32[38], index: -1, kind: input, shape index: {}] }
   0x1   :  { %s4031_s5 = sld [smem:[%s4769_s0]]   ;;  %s3964_s14 = smov 3  }
   0x2   :  { %s4036_s9 = sld [smem:[%s4769_s0 + %s3962_s6]]   ;;  %s3965_s18 = smov 4  }
   0x3   :  { %s4041_s13 = sld [smem:[%s4769_s0 + %s3963_s10]]   ;;  %s3966_s22 = smov 5  }
   0x4   :  { %s4046_s17 = sld [smem:[%s4769_s0 + %s3964_s14]]   ;;  %s3967_s26 = smov 6  }
   0x5   :  { %s4051_s21 = sld [smem:[%s4769_s0 + %s3965_s18]]   ;;  %s3968_s30 = smov 7  }
   0x6   :  { %s4056_s25 = sld [smem:[%s4769_s0 + %s3966_s22]]   ;;  %s3969_s4 = smov 8  }
   0x7   :  { %4802 = sst [smem:[#allocation41_spill]] %s4031_s5  ;;  %s3970_s10 = smov 9  }
   0x8   :  { %4803 = sst [smem:[#allocation42_spill]] %s4036_s9  ;;  %s3971_s15 = smov 10  }
   0x9   :  { %s4061_s29 = sld [smem:[%s4769_s0 + %s3967_s26]]   ;;  %s3972_s20 = smov 11  }
   0xa   :  { %4804 = sst [smem:[#allocation43_spill]] %s4046_s17  ;;  %s3973_s26 = smov 12  }
   0xb   :  { %s4066_s3 = sld [smem:[%s4769_s0 + %s3968_s30]]   ;;  %s3974_s1 = smov 13  }
   0xc   :  { %4805 = sst [smem:[#allocation44_spill]] %s4056_s25  ;;  %s3975_s7 = smov 14  }
   0xd   :  { %s4071_s8 = sld [smem:[%s4769_s0 + %s3969_s4]]   ;;  %s3977_s22 = smov 16  }
   0xe   :  { %s4076_s14 = sld [smem:[%s4769_s0 + %s3970_s10]]   ;;  %s3978_s28 = smov 17  }
   0xf   :  { %s4081_s19 = sld [smem:[%s4769_s0 + %s3971_s15]]   ;;  %s3976_s15 = smov 15  }
  0x10   :  { %s4086_s24 = sld [smem:[%s4769_s0 + %s3972_s20]]  }
  0x11   :  { %4806 = sst [smem:[#allocation45_spill]] %s4066_s3 }
  0x12   :  { %s4091_s30 = sld [smem:[%s4769_s0 + %s3973_s26]]  }
  0x13   :  { %4807 = sst [smem:[#allocation46_spill]] %s4071_s8 }
  0x14   :  { %4808 = sst [smem:[#allocation47_spill]] %s4076_s14 }
  0x15   :  { %s4096_s6 = sld [smem:[%s4769_s0 + %s3974_s1]]  }
  0x16   :  { %4809 = sst [smem:[#allocation48_spill]] %s4086_s24 }
  0x17   :  { %s4101_s12 = sld [smem:[%s4769_s0 + %s3975_s7]]   ;;  %s3979_s7 = smov 18  }
  0x18   :  { %s4106_s20 = sld [smem:[%s4769_s0 + %s3976_s15]]   ;;  %s3980_s15 = smov 19  }
  0x19   :  { %s4111_s27 = sld [smem:[%s4769_s0 + %s3977_s22]]   ;;  %s3981_s22 = smov 20  }
  0x1a   :  { %s4116_s4 = sld [smem:[%s4769_s0 + %s3978_s28]]   ;;  %s3982_s28 = smov 21  }
  0x1b   :  { %4810 = sst [smem:[#allocation49_spill]] %s4096_s6 }
  0x1c   :  { %s4121_s6 = sld [smem:[%s4769_s0 + %s3979_s7]]   ;;  %s3983_s7 = smov 22  }
  0x1d   :  { %s4126_s24 = sld [smem:[%s4769_s0 + %s3980_s15]]   ;;  %s3984_s15 = smov 23  }
  0x1e   :  { %s4131_s14 = sld [smem:[%s4769_s0 + %s3981_s22]]   ;;  %s3985_s22 = smov 24  }
  0x1f   :  { %s4136_s25 = sld [smem:[%s4769_s0 + %s3982_s28]]   ;;  %s3986_s28 = smov 25  }
  0x20   :  { %4811 = sst [smem:[#allocation50_spill]] %s4116_s4 }
  0x21   :  { %s4141_s17 = sld [smem:[%s4769_s0 + %s3983_s7]]   ;;  %s3987_s7 = smov 26  }
  0x22   :  { %4812 = sst [smem:[#allocation51_spill]] %s4121_s6 }
  0x23   :  { %4813 = sst [smem:[#allocation52_spill]] %s4126_s24 }
  0x24   :  { %s4146_s24 = sld [smem:[%s4769_s0 + %s3984_s15]]   ;;  %s3988_s15 = smov 27  }
  0x25   :  { %4814 = sst [smem:[#allocation53_spill]] %s4136_s25 }
  0x26   :  { %s4151_s5 = sld [smem:[%s4769_s0 + %s3985_s22]]   ;;  %s3989_s22 = smov 28  }
  0x27   :  { %4815 = sst [smem:[#allocation54_spill]] %s4141_s17 }
  0x28   :  { %s4156_s25 = sld [smem:[%s4769_s0 + %s3986_s28]]   ;;  %s3990_s28 = smov 29  }
  0x29   :  { %s4161_s17 = sld [smem:[%s4769_s0 + %s3987_s7]]   ;;  %s3991_s7 = smov 30  }
  0x2a   :  { %4816 = sst [smem:[#allocation55_spill]] %s4146_s24 }
  0x2b   :  { %s4166_s24 = sld [smem:[%s4769_s0 + %s3988_s15]]   ;;  %s3992_s15 = smov 31  }
  0x2c   :  { %4817 = sst [smem:[#allocation56_spill]] %s4151_s5 }
  0x2d   :  { %s4171_s5 = sld [smem:[%s4769_s0 + %s3989_s22]]   ;;  %s3993_s22 = smov 32  }
  0x2e   :  { %4818 = sst [smem:[#allocation57_spill]] %s4156_s25 }
  0x2f   :  { %4819 = sst [smem:[#allocation58_spill]] %s4161_s17 }
  0x30   :  { %s4176_s25 = sld [smem:[%s4769_s0 + %s3990_s28]]   ;;  %s3994_s28 = smov 33  }
  0x31   :  { %4820 = sst [smem:[#allocation59_spill]] %s4166_s24 }
  0x32   :  { %s4181_s17 = sld [smem:[%s4769_s0 + %s3991_s7]]   ;;  %s3995_s7 = smov 34  }
  0x33   :  { %4821 = sst [smem:[#allocation60_spill]] %s4171_s5 }
  0x34   :  { %s4186_s24 = sld [smem:[%s4769_s0 + %s3992_s15]]   ;;  %s3996_s15 = smov 35  }
  0x35   :  { %s4191_s5 = sld [smem:[%s4769_s0 + %s3993_s22]]   ;;  %s3997_s22 = smov 36  }
  0x36   :  { %s4196_s6 = sld [smem:[%s4769_s0 + %s3994_s28]]   ;;  %s3998_s28 = smov 37  }
  0x38   :  { %4822 = sst [smem:[#allocation61_spill]] %s4181_s17 }
  0x39   :  { %s4201_s17 = sld [smem:[%s4769_s0 + %s3995_s7]]  }
  0x3a   :  { %4823 = sst [smem:[#allocation62_spill]] %s4186_s24 }
  0x3b   :  { %4824 = sst [smem:[#allocation63_spill]] %s4191_s5 }
  0x3c   :  { %4825 = sst [smem:[#allocation64_spill]] %s4196_s6 }
  0x3d   :  { %s4206_s24 = sld [smem:[%s4769_s0 + %s3996_s15]]  }
  0x3e   :  { %s4211_s5 = sld [smem:[%s4769_s0 + %s3997_s22]]  }
  0x3f   :  { %s4216_s6 = sld [smem:[%s4769_s0 + %s3998_s28]]  }
  0x44   :  { %4826 = sst [smem:[#allocation65_spill]] %s4211_s5 }
  0x45   :  { %4827 = sst [smem:[#allocation66_spill]] %s4216_s6 }
  0x46   :  { %80 = vsyncpa [#allocation4], 0 }
  0x47   :  { %81 = vsyncpa [#allocation7], 0 }
  0x48   :  { %82 = vsyncpa [#allocation10], 0 }
  0x49   :  { %83 = vsyncpa [#allocation13], 0 }
  0x4a   :  { %84 = vsyncpa [#allocation16], 0 }
  0x4b   :  { %85 = vsyncpa [#allocation19], 0 }
  0x4c   :  { %86 = vsyncpa [#allocation22], 0 }
  0x4d   :  { %87 = vsyncpa [#allocation25], 0 }
  0x4e   :  { %88 = vsyncpa [#allocation28], 0 }
  0x4f   :  { %89 = vsyncpa [#allocation5], 0 }
  0x50   :  { %91 = vsyncpa [#allocation5 + $0x1], 0  ;;  %s4218_s7 = smov 0   ;;  %s4220_s10 = smov 0  }
  0x51   :  { %s4222_s11 = smov 0   ;;  %s4224_s15 = smov 0  }
  0x52 LB: > { %s4828_s9 = sld [smem:[#allocation42_spill]]  ;;  %s4239_s0 = sadd.s32 4294967295, %s3960_s15   ;;  %s3960_s15 = sphi %s4224_s15, %s4874_s15   ;;  %s3956_s11 = sphi %s4222_s11, %s4876_s11   ;;  %s3952_s10 = sphi %s4220_s10, %s4878_s10   ;;  %s3948_s7 = sphi %s4218_s7, %s4877_s7  }
  0x53   : > { %s4829_s4 = sld [smem:[#allocation50_spill]]  ;;  %s2833_s16 = sadd.s32 4294967294, %s3960_s15  }
  0x54   : > { %s4830_s3 = sld [smem:[#allocation45_spill]]  ;;  %s4243_s18 = sadd.s32 1, %s3960_s15  }
  0x55   : > { %s4831_s8 = sld [smem:[#allocation46_spill]]  ;;  %s886_s22 = sadd.s32 1, %s3956_s11 }
  0x56   : > { %4832 = sst [smem:[#allocation67_spill]] %s3948_s7  ;;  %s883_s23 = ssub.s32 %s3960_s15, %s4243_s18 }
  0x57   : > { %4833 = sst [smem:[#allocation68_spill]] %s3956_s11  ;;  %p896_p0 = scmp.ne.s32.totalorder %s3956_s11, %s3952_s10 }
  0x58   : > { %4834 = sst [smem:[#allocation69_spill]] %s3960_s15  ;;  %p884_p1 = scmp.eq.s32.totalorder %s883_s23, 0 }
  0x59   : > { %4835 = sst [smem:[#allocation70_spill]] %s4243_s18  ;;  %p897_p2 = scmp.eq.s32.totalorder %s4239_s0, 1 }
  0x5a   : > { %p902_p3 = scmp.ne.s32.totalorder %s3952_s10, %s3948_s7  ;;  %p903_p4 = scmp.eq.s32.totalorder %s2833_s16, 1 }
  0x5b   : > { %s4254_s26 = scalar_select %p884_p1, %s3956_s11, %s886_s22  }
  0x5c   : > { %p4256_p5 = por %p897_p2, %p896_p0  ;;  %p4260_p6 = por %p903_p4, %p902_p3 }
  0x5d   : > { %4836 = sst [smem:[#allocation71_spill]] %s4254_s26  ;;  %p2834_p7 = scmp.ge.s32.totalorder %s3960_s15, 1 }
  0x5e   : > { %s4837_s28 = scalar_select %p4256_p5, 1, 0 }
  0x5f   : > { %s4839_s1 = scalar_select %p4260_p6, 1, 0 }
  0x60   : > { %4838 = sst [smem:[#allocation72_spill]] %s4837_s28  ;;  %p910_p8 = scmp.lt.s32.totalorder %s3960_s15, 3 }
  0x61   : > { %4840 = sst [smem:[#allocation73_spill]] %s4839_s1  ;;  %p3154_p9 = scmp.eq.s32.totalorder %s4239_s0, 0 }
  0x62   : > { %p4267_p10 = pnand %p2834_p7, %p910_p8  ;;  %s934_s16 = sshll.u32 %s4041_s13, 4  ;;  %s935_s16 = int_to_ptr.hbm [resolvable:$true] %s934_s16 }
  0x63   : > { %s3999_s22 = smov [#allocation6]   ;;  %s964_s26 = sshll.u32 %s4061_s29, 4  ;;  %s4281_s26 = int_to_ptr.hbm [resolvable:$true] %s964_s26 }
  0x64   : > { %p3098_p11 = pneg %p4267_p10  ;;  %s936_s23 = sshll.u32 %s3999_s22, 4  ;;  %s937_s23 = int_to_ptr.vmem [resolvable:$true] %s936_s23 }
  0x65   : > { %s988_s18 = sshll.u32 %s4831_s8, 4  ;;  %s4000_s1 = smov [#allocation9]   ;;  %s4299_s18 = int_to_ptr.hbm [resolvable:$true] %s988_s18 }
  0x66   : > { %p4277_p12 = pnand %p3154_p9, %p3098_p11  ;;  %s4284_s7 = sshll.u32 %s4000_s1, 4  ;;  %s967_s7 = int_to_ptr.vmem [resolvable:$true] %s4284_s7 }
  0x67   : > { %s3352_s15 = sshra.s32 %s935_s16, 4  ;;  %s3359_s6 = scalar_lea.hbm %s4041_s13, 1  ;;  %s3353_s15 = int_to_ptr.hbm [resolvable:$true] %s3352_s15 }
  0x68   : > { %s3354_s28 = scalar_lea.hbm %s3353_s15, 1  ;;  %p4288_p0 = pneg %p4277_p12 }
  0x69   : > { %p3355_p13 = scmp.ne.s32.totalorder %s3353_s15, %s3354_s28  ;;  %p3360_p3 = scmp.lt.s32.totalorder %s3353_s15, %s4041_s13 }
  0x6a   : > { %p3361_p4 = scmp.lt.s32.totalorder %s3359_s6, %s3354_s28 }
  0x6b   : > { %p3357_p1 = pnand %p4288_p0, %p3355_p13 }
  0x6c   : > { %p3362_p7 = por %p3361_p4, %p3360_p3 }
  0x6d   : > { %p3358_p2 = pneg %p3357_p1 }
  0x6f   : > { %p3363_p8 = pnand %p3362_p7, %p3358_p2 }
  0x71   : > { %3366 = shalt.err (!%p3363_p8)
}
  0x72   : > { %3104 = dma.hbm_to_vmem [thread:$0]  (!%p4277_p12), %s935_s16, 16, %s937_s23, [#allocation7]  }
  0x73   : > { %s3382_s1 = sshra.s32 %s4281_s26, 4  ;;  %s3389_s6 = scalar_lea.hbm %s4061_s29, 1  ;;  %s3383_s1 = int_to_ptr.hbm [resolvable:$true] %s3382_s1 }
  0x74   : > { %s3384_s5 = scalar_lea.hbm %s3383_s1, 1  ;;  %p3390_p2 = scmp.lt.s32.totalorder %s3383_s1, %s4061_s29 }
  0x75   : > { %p3385_p11 = scmp.ne.s32.totalorder %s3383_s1, %s3384_s5  ;;  %p3391_p3 = scmp.lt.s32.totalorder %s3389_s6, %s3384_s5 }
  0x77   : > { %p3387_p13 = pnand %p3385_p11, %p4288_p0  ;;  %p3392_p4 = por %p3391_p3, %p3390_p2 }
  0x79   : > { %p3388_p1 = pneg %p3387_p13 }
  0x7b   : > { %p3393_p7 = pnand %p3392_p4, %p3388_p1 }
  0x7d   : > { %3396 = shalt.err (!%p3393_p7)
}
  0x7e   : > { %3110 = dma.hbm_to_vmem [thread:$0]  (!%p4277_p12), %s4281_s26, 16, %s967_s7, [#allocation10]  }
  0x7f   : > { %s1018_s15 = sshll.u32 %s4091_s30, 4  ;;  %s4001_s28 = smov [#allocation12]   ;;  %s4310_s15 = int_to_ptr.hbm [resolvable:$true] %s1018_s15 }
  0x80   : > { %s990_s16 = sshll.u32 %s4001_s28, 4  ;;  %s3412_s23 = sshra.s32 %s4299_s18, 4  ;;  %s991_s16 = int_to_ptr.vmem [resolvable:$true] %s990_s16  ;;  %s3413_s23 = int_to_ptr.hbm [resolvable:$true] %s3412_s23 }
  0x81   : > { %s3414_s5 = scalar_lea.hbm %s3413_s23, 1  ;;  %s3419_s1 = scalar_lea.hbm %s4831_s8, 1 }
  0x82   : > { %p3415_p8 = scmp.ne.s32.totalorder %s3413_s23, %s3414_s5  ;;  %p3420_p1 = scmp.lt.s32.totalorder %s3413_s23, %s4831_s8 }
  0x83   : > { %p3421_p2 = scmp.lt.s32.totalorder %s3419_s1, %s3414_s5 }
  0x84   : > { %p3417_p11 = pnand %p3415_p8, %p4288_p0 }
  0x85   : > { %p3422_p3 = por %p3421_p2, %p3420_p1 }
  0x86   : > { %p3418_p13 = pneg %p3417_p11 }
  0x88   : > { %p3423_p4 = pnand %p3422_p3, %p3418_p13 }
  0x8a   : > { %3426 = shalt.err (!%p3423_p4)
}
  0x8b   : > { %3116 = dma.hbm_to_vmem [thread:$0]  (!%p4277_p12), %s4299_s18, 16, %s991_s16, [#allocation13]  }
  0x8c   : > { %s4002_s7 = smov [#allocation15]   ;;  %s1044_s6 = sshll.u32 %s4106_s20, 4  ;;  %s4321_s6 = int_to_ptr.hbm [resolvable:$true] %s1044_s6 }
  0x8d   : > { %s1020_s26 = sshll.u32 %s4002_s7, 4  ;;  %s3442_s28 = sshra.s32 %s4310_s15, 4  ;;  %s1021_s26 = int_to_ptr.vmem [resolvable:$true] %s1020_s26  ;;  %s3443_s28 = int_to_ptr.hbm [resolvable:$true] %s3442_s28 }
  0x8e   : > { %s3444_s23 = scalar_lea.hbm %s3443_s28, 1  ;;  %s3449_s5 = scalar_lea.hbm %s4091_s30, 1 }
  0x8f   : > { %p3445_p7 = scmp.ne.s32.totalorder %s3443_s28, %s3444_s23  ;;  %p3450_p13 = scmp.lt.s32.totalorder %s3443_s28, %s4091_s30 }
  0x90   : > { %p3451_p1 = scmp.lt.s32.totalorder %s3449_s5, %s3444_s23 }
  0x91   : > { %p3447_p8 = pnand %p3445_p7, %p4288_p0 }
  0x92   : > { %p3452_p2 = por %p3451_p1, %p3450_p13 }
  0x93   : > { %p3448_p11 = pneg %p3447_p8 }
  0x95   : > { %p3453_p3 = pnand %p3452_p2, %p3448_p11 }
  0x97   : > { %3456 = shalt.err (!%p3453_p3)
}
  0x98   : > { %3122 = dma.hbm_to_vmem [thread:$0]  (!%p4277_p12), %s4310_s15, 16, %s1021_s26, [#allocation16]  }
  0x99   : > { %s4003_s18 = smov [#allocation18]   ;;  %s1071_s1 = sshll.u32 %s4829_s4, 4  ;;  %s1072_s1 = int_to_ptr.hbm [resolvable:$true] %s1071_s1 }
  0x9a   : > { %s1046_s16 = sshll.u32 %s4003_s18, 4  ;;  %s3472_s7 = sshra.s32 %s4321_s6, 4  ;;  %s1047_s16 = int_to_ptr.vmem [resolvable:$true] %s1046_s16  ;;  %s3473_s7 = int_to_ptr.hbm [resolvable:$true] %s3472_s7 }
  0x9b   : > { %s3474_s28 = scalar_lea.hbm %s3473_s7, 16  ;;  %s3479_s23 = scalar_lea.hbm %s4106_s20, 16 }
  0x9c   : > { %p3475_p4 = scmp.ne.s32.totalorder %s3473_s7, %s3474_s28  ;;  %p3480_p11 = scmp.lt.s32.totalorder %s3473_s7, %s4106_s20 }
  0x9d   : > { %p3481_p13 = scmp.lt.s32.totalorder %s3479_s23, %s3474_s28 }
  0x9e   : > { %p3477_p7 = pnand %p3475_p4, %p4288_p0 }
  0x9f   : > { %p3482_p1 = por %p3481_p13, %p3480_p11 }
  0xa0   : > { %p3478_p8 = pneg %p3477_p7 }
  0xa2   : > { %p3483_p2 = pnand %p3482_p1, %p3478_p8 }
  0xa4   : > { %3486 = shalt.err (!%p3483_p2)
}
  0xa5   : > { %s4790_s5 = smov 64   ;;  %s4792_s15 = smov 4  }
  0xa6   : > { %3128 = dma.hbm_to_vmem [thread:$0]  (!%p4277_p12), %s4321_s6, 256, %s1047_s16, [#allocation19], %s4790_s5, %s4790_s5, %s4792_s15  }
  0xa7   : > { %s4006_s26 = smov [#allocation21]   ;;  %s1098_s7 = sshll.u32 %s4131_s14, 4  ;;  %s4344_s7 = int_to_ptr.hbm [resolvable:$true] %s1098_s7 }
  0xa8   : > { %s1073_s18 = sshll.u32 %s4006_s26, 4  ;;  %s3502_s28 = sshra.s32 %s1072_s1, 4  ;;  %s1074_s18 = int_to_ptr.vmem [resolvable:$true] %s1073_s18  ;;  %s3503_s28 = int_to_ptr.hbm [resolvable:$true] %s3502_s28 }
  0xa9   : > { %s3504_s23 = scalar_lea.hbm %s3503_s28, 1  ;;  %s3509_s8 = scalar_lea.hbm %s4829_s4, 1 }
  0xaa   : > { %p3505_p3 = scmp.ne.s32.totalorder %s3503_s28, %s3504_s23  ;;  %p3510_p8 = scmp.lt.s32.totalorder %s3503_s28, %s4829_s4 }
  0xab   : > { %p3511_p11 = scmp.lt.s32.totalorder %s3509_s8, %s3504_s23 }
  0xac   : > { %p3507_p4 = pnand %p3505_p3, %p4288_p0 }
  0xad   : > { %p3512_p13 = por %p3511_p11, %p3510_p8 }
  0xae   : > { %p3508_p7 = pneg %p3507_p4 }
  0xb0   : > { %p3513_p1 = pnand %p3512_p13, %p3508_p7 }
  0xb2   : > { %3516 = shalt.err (!%p3513_p1)
}
  0xb3   : > { %3134 = dma.hbm_to_vmem [thread:$0]  (!%p4277_p12), %s1072_s1, 16, %s1074_s18, [#allocation22]  }
  0xb4   : > { %s1144_s6 = sshll.u32 %s4176_s25, 4  ;;  %s4007_s16 = smov [#allocation24]   ;;  %s4353_s6 = int_to_ptr.hbm [resolvable:$true] %s1144_s6 }
  0xb5   : > { %s1100_s26 = sshll.u32 %s4007_s16, 4  ;;  %s3532_s5 = sshra.s32 %s4344_s7, 4  ;;  %s1101_s26 = int_to_ptr.vmem [resolvable:$true] %s1100_s26  ;;  %s3533_s5 = int_to_ptr.hbm [resolvable:$true] %s3532_s5 }
  0xb6   : > { %s3534_s8 = scalar_lea.hbm %s3533_s5, 1  ;;  %s3539_s28 = scalar_lea.hbm %s4131_s14, 1 }
  0xb7   : > { %p3535_p2 = scmp.ne.s32.totalorder %s3533_s5, %s3534_s8  ;;  %p3540_p7 = scmp.lt.s32.totalorder %s3533_s5, %s4131_s14 }
  0xb8   : > { %p3541_p8 = scmp.lt.s32.totalorder %s3539_s28, %s3534_s8 }
  0xb9   : > { %p3537_p3 = pnand %p3535_p2, %p4288_p0 }
  0xba   : > { %p3542_p11 = por %p3541_p8, %p3540_p7 }
  0xbb   : > { %p3538_p4 = pneg %p3537_p3 }
  0xbd   : > { %p3543_p13 = pnand %p3542_p11, %p3538_p4 }
  0xbf   : > { %3546 = shalt.err (!%p3543_p13)
}
  0xc0   : > { %3140 = dma.hbm_to_vmem [thread:$0]  (!%p4277_p12), %s4344_s7, 16, %s1101_s26, [#allocation25]  }
  0xc1   : > { %s4008_s1 = smov [#allocation27]   ;;  %s922_s23 = sshll.u32 %s4828_s9, 4  ;;  %s4364_s23 = int_to_ptr.hbm [resolvable:$true] %s922_s23 }
  0xc2   : > { %s1146_s18 = sshll.u32 %s4008_s1, 4  ;;  %s3562_s5 = sshra.s32 %s4353_s6, 4  ;;  %s1147_s18 = int_to_ptr.vmem [resolvable:$true] %s1146_s18  ;;  %s3563_s5 = int_to_ptr.hbm [resolvable:$true] %s3562_s5 }
  0xc3   : > { %s3564_s16 = scalar_lea.hbm %s3563_s5, 16  ;;  %s3569_s8 = scalar_lea.hbm %s4176_s25, 16 }
  0xc4   : > { %p3565_p1 = scmp.ne.s32.totalorder %s3563_s5, %s3564_s16  ;;  %p3570_p4 = scmp.lt.s32.totalorder %s3563_s5, %s4176_s25 }
  0xc5   : > { %p3571_p7 = scmp.lt.s32.totalorder %s3569_s8, %s3564_s16 }
  0xc6   : > { %p3567_p2 = pnand %p3565_p1, %p4288_p0 }
  0xc7   : > { %p3572_p8 = por %p3571_p7, %p3570_p4 }
  0xc8   : > { %p3568_p3 = pneg %p3567_p2 }
  0xca   : > { %p3573_p11 = pnand %p3572_p8, %p3568_p3 }
  0xcc   : > { %3576 = shalt.err (!%p3573_p11)
}
  0xcd   : > { %s4844_s7 = smov 64   ;;  %s949_s26 = sshll.u32 %s4051_s21, 4  ;;  %s4378_s26 = int_to_ptr.hbm [resolvable:$true] %s949_s26 }
  0xce   : > { %3146 = dma.hbm_to_vmem [thread:$0]  (!%p4277_p12), %s4353_s6, 256, %s1147_s18, [#allocation28], %s4844_s7, %s4844_s7, %s4792_s15  }
  0xcf   : > { %s4009_s28 = smov [#allocation3]   ;;  %s3592_s5 = sshra.s32 %s4364_s23, 4  ;;  %s3593_s5 = int_to_ptr.hbm [resolvable:$true] %s3592_s5 }
  0xd0   : > { %s924_s1 = sshll.u32 %s4009_s28, 4  ;;  %s3594_s16 = scalar_lea.hbm %s3593_s5, 1  ;;  %s925_s1 = int_to_ptr.vmem [resolvable:$true] %s924_s1 }
  0xd1   : > { %p3595_p13 = scmp.ne.s32.totalorder %s3593_s5, %s3594_s16  ;;  %s3599_s8 = scalar_lea.hbm %s4828_s9, 1 }
  0xd2   : > { %p3600_p3 = scmp.lt.s32.totalorder %s3593_s5, %s4828_s9  ;;  %p3601_p4 = scmp.lt.s32.totalorder %s3599_s8, %s3594_s16 }
  0xd3   : > { %p3597_p1 = pnand %p3595_p13, %p4288_p0 }
  0xd4   : > { %p3602_p7 = por %p3601_p4, %p3600_p3 }
  0xd5   : > { %p3598_p2 = pneg %p3597_p1 }
  0xd7   : > { %p3603_p8 = pnand %p3602_p7, %p3598_p2 }
  0xd9   : > { %3606 = shalt.err (!%p3603_p8)
}
  0xda   : > { %3101 = dma.hbm_to_vmem [thread:$0]  (!%p4277_p12), %s4364_s23, 16, %s925_s1, [#allocation4]  }
  0xdb   : > { %s4010_s6 = smov [#allocation8]   ;;  %s976_s28 = sshll.u32 %s4830_s3, 4  ;;  %s4389_s28 = int_to_ptr.hbm [resolvable:$true] %s976_s28 }
  0xdc   : > { %s951_s18 = sshll.u32 %s4010_s6, 4  ;;  %s3622_s5 = sshra.s32 %s4378_s26, 4  ;;  %s952_s18 = int_to_ptr.vmem [resolvable:$true] %s951_s18  ;;  %s3623_s5 = int_to_ptr.hbm [resolvable:$true] %s3622_s5 }
  0xdd   : > { %s3624_s16 = scalar_lea.hbm %s3623_s5, 1  ;;  %s3629_s8 = scalar_lea.hbm %s4051_s21, 1 }
  0xde   : > { %p3625_p11 = scmp.ne.s32.totalorder %s3623_s5, %s3624_s16  ;;  %p3630_p2 = scmp.lt.s32.totalorder %s3623_s5, %s4051_s21 }
  0xdf   : > { %p3631_p3 = scmp.lt.s32.totalorder %s3629_s8, %s3624_s16 }
  0xe0   : > { %p3627_p13 = pnand %p3625_p11, %p4288_p0 }
  0xe1   : > { %p3632_p4 = por %p3631_p3, %p3630_p2 }
  0xe2   : > { %p3628_p1 = pneg %p3627_p13 }
  0xe4   : > { %p3633_p7 = pnand %p3632_p4, %p3628_p1 }
  0xe6   : > { %3636 = shalt.err (!%p3633_p7)
}
  0xe7   : > { %3107 = dma.hbm_to_vmem [thread:$0]  (!%p4277_p12), %s4378_s26, 16, %s952_s18, [#allocation7]  }
  0xe8   : > { %s1003_s23 = sshll.u32 %s4081_s19, 4  ;;  %s4011_s1 = smov [#allocation11]   ;;  %s4400_s23 = int_to_ptr.hbm [resolvable:$true] %s1003_s23 }
  0xe9   : > { %s978_s6 = sshll.u32 %s4011_s1, 4  ;;  %s3652_s5 = sshra.s32 %s4389_s28, 4  ;;  %s979_s6 = int_to_ptr.vmem [resolvable:$true] %s978_s6  ;;  %s3653_s5 = int_to_ptr.hbm [resolvable:$true] %s3652_s5 }
  0xea   : > { %s3654_s16 = scalar_lea.hbm %s3653_s5, 1  ;;  %s3659_s8 = scalar_lea.hbm %s4830_s3, 1 }
  0xeb   : > { %p3655_p8 = scmp.ne.s32.totalorder %s3653_s5, %s3654_s16  ;;  %p3660_p1 = scmp.lt.s32.totalorder %s3653_s5, %s4830_s3 }
  0xec   : > { %p3661_p2 = scmp.lt.s32.totalorder %s3659_s8, %s3654_s16 }
  0xed   : > { %p3657_p11 = pnand %p3655_p8, %p4288_p0 }
  0xee   : > { %p3662_p3 = por %p3661_p2, %p3660_p1 }
  0xef   : > { %p3658_p13 = pneg %p3657_p11 }
  0xf1   : > { %p3663_p4 = pnand %p3662_p3, %p3658_p13 }
  0xf3   : > { %3666 = shalt.err (!%p3663_p4)
}
  0xf4   : > { %3113 = dma.hbm_to_vmem [thread:$0]  (!%p4277_p12), %s4389_s28, 16, %s979_s6, [#allocation10]  }
  0xf5   : > { %s4012_s26 = smov [#allocation14]   ;;  %s1033_s1 = sshll.u32 %s4101_s12, 4  ;;  %s4411_s1 = int_to_ptr.hbm [resolvable:$true] %s1033_s1 }
  0xf6   : > { %s1005_s18 = sshll.u32 %s4012_s26, 4  ;;  %s3682_s5 = sshra.s32 %s4400_s23, 4  ;;  %s1006_s18 = int_to_ptr.vmem [resolvable:$true] %s1005_s18  ;;  %s3683_s5 = int_to_ptr.hbm [resolvable:$true] %s3682_s5 }
  0xf7   : > { %s3684_s16 = scalar_lea.hbm %s3683_s5, 1  ;;  %s3689_s8 = scalar_lea.hbm %s4081_s19, 1 }
  0xf8   : > { %p3685_p7 = scmp.ne.s32.totalorder %s3683_s5, %s3684_s16  ;;  %p3690_p13 = scmp.lt.s32.totalorder %s3683_s5, %s4081_s19 }
  0xf9   : > { %p3691_p1 = scmp.lt.s32.totalorder %s3689_s8, %s3684_s16 }
  0xfa   : > { %p3687_p8 = pnand %p3685_p7, %p4288_p0 }
  0xfb   : > { %p3692_p2 = por %p3691_p1, %p3690_p13 }
  0xfc   : > { %p3688_p11 = pneg %p3687_p8 }
  0xfe   : > { %p3693_p3 = pnand %p3692_p2, %p3688_p11 }
 0x100   : > { %3696 = shalt.err (!%p3693_p3)
}
 0x101   : > { %3119 = dma.hbm_to_vmem [thread:$0]  (!%p4277_p12), %s4400_s23, 16, %s1006_s18, [#allocation13]  }
 0x102   : > { %s1059_s28 = sshll.u32 %s4111_s27, 4  ;;  %s4013_s6 = smov [#allocation17]   ;;  %s4422_s28 = int_to_ptr.hbm [resolvable:$true] %s1059_s28 }
 0x103   : > { %s1035_s26 = sshll.u32 %s4013_s6, 4  ;;  %s3712_s5 = sshra.s32 %s4411_s1, 4  ;;  %s1036_s26 = int_to_ptr.vmem [resolvable:$true] %s1035_s26  ;;  %s3713_s5 = int_to_ptr.hbm [resolvable:$true] %s3712_s5 }
 0x104   : > { %s3714_s16 = scalar_lea.hbm %s3713_s5, 1  ;;  %s3719_s8 = scalar_lea.hbm %s4101_s12, 1 }
 0x105   : > { %p3715_p4 = scmp.ne.s32.totalorder %s3713_s5, %s3714_s16  ;;  %p3720_p11 = scmp.lt.s32.totalorder %s3713_s5, %s4101_s12 }
 0x106   : > { %p3721_p13 = scmp.lt.s32.totalorder %s3719_s8, %s3714_s16 }
 0x107   : > { %p3717_p7 = pnand %p3715_p4, %p4288_p0 }
 0x108   : > { %p3722_p1 = por %p3721_p13, %p3720_p11 }
 0x109   : > { %p3718_p8 = pneg %p3717_p7 }
 0x10b   : > { %p3723_p2 = pnand %p3722_p1, %p3718_p8 }
 0x10d   : > { %3726 = shalt.err (!%p3723_p2)
}
 0x10e   : > { %s4845_s23 = sld [smem:[#allocation51_spill]]  ;;  %s4014_s18 = smov [#allocation20]  }
 0x10f   : > { %3125 = dma.hbm_to_vmem [thread:$0]  (!%p4277_p12), %s4411_s1, 16, %s1036_s26, [#allocation16]  }
 0x110   : > { %s1061_s6 = sshll.u32 %s4014_s18, 4  ;;  %s3742_s5 = sshra.s32 %s4422_s28, 4  ;;  %s1062_s6 = int_to_ptr.vmem [resolvable:$true] %s1061_s6  ;;  %s3743_s5 = int_to_ptr.hbm [resolvable:$true] %s3742_s5 }
 0x111   : > { %s3744_s16 = scalar_lea.hbm %s3743_s5, 1  ;;  %s3749_s8 = scalar_lea.hbm %s4111_s27, 1 }
 0x112   : > { %p3745_p3 = scmp.ne.s32.totalorder %s3743_s5, %s3744_s16  ;;  %p3750_p8 = scmp.lt.s32.totalorder %s3743_s5, %s4111_s27 }
 0x113   : > { %p3751_p11 = scmp.lt.s32.totalorder %s3749_s8, %s3744_s16 }
 0x114   : > { %s1083_s15 = sshll.u32 %s4845_s23, 4  ;;  %p3747_p4 = pnand %p3745_p3, %p4288_p0  ;;  %s4433_s15 = int_to_ptr.hbm [resolvable:$true] %s1083_s15 }
 0x115   : > { %p3752_p13 = por %p3751_p11, %p3750_p8 }
 0x116   : > { %p3748_p7 = pneg %p3747_p4 }
 0x118   : > { %p3753_p1 = pnand %p3752_p13, %p3748_p7 }
 0x11a   : > { %3756 = shalt.err (!%p3753_p1)
}
 0x11b   : > { %s4846_s1 = sld [smem:[#allocation53_spill]]  ;;  %s4015_s18 = smov [#allocation23]  }
 0x11c   : > { %3131 = dma.hbm_to_vmem [thread:$0]  (!%p4277_p12), %s4422_s28, 16, %s1062_s6, [#allocation19]  }
 0x11d   : > { %s1085_s3 = sshll.u32 %s4015_s18, 4  ;;  %s3772_s5 = sshra.s32 %s4433_s15, 4  ;;  %s1086_s3 = int_to_ptr.vmem [resolvable:$true] %s1085_s3  ;;  %s3773_s5 = int_to_ptr.hbm [resolvable:$true] %s3772_s5 }
 0x11e   : > { %s3774_s16 = scalar_lea.hbm %s3773_s5, 1  ;;  %s3779_s8 = scalar_lea.hbm %s4845_s23, 1 }
 0x11f   : > { %p3775_p2 = scmp.ne.s32.totalorder %s3773_s5, %s3774_s16  ;;  %p3780_p7 = scmp.lt.s32.totalorder %s3773_s5, %s4845_s23 }
 0x120   : > { %p3781_p8 = scmp.lt.s32.totalorder %s3779_s8, %s3774_s16 }
 0x121   : > { %s1109_s26 = sshll.u32 %s4846_s1, 4  ;;  %p3777_p3 = pnand %p3775_p2, %p4288_p0  ;;  %s4444_s26 = int_to_ptr.hbm [resolvable:$true] %s1109_s26 }
 0x122   : > { %p3782_p11 = por %p3781_p8, %p3780_p7 }
 0x123   : > { %p3778_p4 = pneg %p3777_p3 }
 0x125   : > { %p3783_p13 = pnand %p3782_p11, %p3778_p4 }
 0x127   : > { %3786 = shalt.err (!%p3783_p13)
}
 0x128   : > { %s4847_s28 = sld [smem:[#allocation64_spill]]  ;;  %s4016_s6 = smov [#allocation26]  }
 0x129   : > { %3137 = dma.hbm_to_vmem [thread:$0]  (!%p4277_p12), %s4433_s15, 16, %s1086_s3, [#allocation22]  }
 0x12a   : > { %s1111_s18 = sshll.u32 %s4016_s6, 4  ;;  %s3802_s9 = sshra.s32 %s4444_s26, 4  ;;  %s1112_s18 = int_to_ptr.vmem [resolvable:$true] %s1111_s18  ;;  %s3803_s9 = int_to_ptr.hbm [resolvable:$true] %s3802_s9 }
 0x12b   : > { %s3804_s5 = scalar_lea.hbm %s3803_s9, 16  ;;  %s3809_s16 = scalar_lea.hbm %s4846_s1, 16 }
 0x12c   : > { %p3805_p1 = scmp.ne.s32.totalorder %s3803_s9, %s3804_s5  ;;  %p3810_p4 = scmp.lt.s32.totalorder %s3803_s9, %s4846_s1 }
 0x12d   : > { %p3811_p7 = scmp.lt.s32.totalorder %s3809_s16, %s3804_s5 }
 0x12e   : > { %s1167_s4 = sshll.u32 %s4847_s28, 4  ;;  %p3807_p2 = pnand %p3805_p1, %p4288_p0  ;;  %s1168_s4 = int_to_ptr.hbm [resolvable:$true] %s1167_s4 }
 0x12f   : > { %p3812_p8 = por %p3811_p7, %p3810_p4 }
 0x130   : > { %p3808_p3 = pneg %p3807_p2 }
 0x132   : > { %p3813_p11 = pnand %p3812_p8, %p3808_p3 }
 0x134   : > { %3816 = shalt.err (!%p3813_p11)
}
 0x135   : > { %s4848_s3 = smov 4   ;;  %s4017_s15 = smov [#allocation29]  }
 0x136   : > { %3143 = dma.hbm_to_vmem [thread:$0]  (!%p4277_p12), %s4444_s26, 256, %s1112_s18, [#allocation25], %s4844_s7, %s4844_s7, %s4848_s3  }
 0x137   : > { %s1169_s8 = sshll.u32 %s4017_s15, 4  ;;  %s3832_s6 = sshra.s32 %s1168_s4, 4  ;;  %s1170_s8 = int_to_ptr.vmem [resolvable:$true] %s1169_s8  ;;  %s3833_s6 = int_to_ptr.hbm [resolvable:$true] %s3832_s6 }
 0x138   : > { %s3834_s9 = scalar_lea.hbm %s3833_s6, 16  ;;  %s3839_s5 = scalar_lea.hbm %s4847_s28, 16 }
 0x139   : > { %p3835_p13 = scmp.ne.s32.totalorder %s3833_s6, %s3834_s9  ;;  %p3840_p3 = scmp.lt.s32.totalorder %s3833_s6, %s4847_s28 }
 0x13a   : > { %p3841_p4 = scmp.lt.s32.totalorder %s3839_s5, %s3834_s9 }
 0x13b   : > { %p3837_p1 = pnand %p3835_p13, %p4288_p0 }
 0x13c   : > { %p3842_p7 = por %p3841_p4, %p3840_p3 }
 0x13d   : > { %p3838_p2 = pneg %p3837_p1 }
 0x13f   : > { %p3843_p8 = pnand %p3842_p7, %p3838_p2 }
 0x141   : > { %3846 = shalt.err (!%p3843_p8)
}
 0x142   : > { %3149 = dma.hbm_to_vmem [thread:$0]  (!%p4277_p12), %s1168_s4, 256, %s1170_s8, [#allocation28], %s4844_s7, %s4844_s7, %s4848_s3  }
 0x143   : > { %1201 = sbr.rel (%p4267_p10) target bundleno = 4662 (0x1236), region = 168 }
 0x148   : > { %3907 = dma.done.wait (%p3154_p9), [#allocation4], 16  }
 0x149   : > { %3909 = vsyncadd (%p3154_p9), [#allocation4], 4294967280 }
 0x14a   : > { %3911 = dma.done.wait (%p3154_p9), [#allocation7], 32  }
 0x14b   : > { %3913 = vsyncadd (%p3154_p9), [#allocation7], 4294967264 }
 0x14c   : > { %3915 = dma.done.wait (%p3154_p9), [#allocation10], 32  }
 0x14d   : > { %3917 = vsyncadd (%p3154_p9), [#allocation10], 4294967264 }
 0x14e   : > { %3919 = dma.done.wait (%p3154_p9), [#allocation13], 32  }
 0x14f   : > { %3921 = vsyncadd (%p3154_p9), [#allocation13], 4294967264 }
 0x150   : > { %3923 = dma.done.wait (%p3154_p9), [#allocation16], 32  }
 0x151   : > { %3925 = vsyncadd (%p3154_p9), [#allocation16], 4294967264 }
 0x152   : > { %3927 = dma.done.wait (%p3154_p9), [#allocation19], 272  }
 0x153   : > { %3929 = vsyncadd (%p3154_p9), [#allocation19], 4294967024 }
 0x154   : > { %3931 = dma.done.wait (%p3154_p9), [#allocation22], 32  }
 0x155   : > { %3933 = vsyncadd (%p3154_p9), [#allocation22], 4294967264 }
 0x156   : > { %3935 = dma.done.wait (%p3154_p9), [#allocation25], 272  }
 0x157   : > { %3937 = vsyncadd (%p3154_p9), [#allocation25], 4294967024 }
 0x158   : > { %3939 = dma.done.wait (%p3154_p9), [#allocation28], 512  }
 0x159   : > { %3941 = vsyncadd (%p3154_p9), [#allocation28], 4294966784  ;;  %s4849_s4 = sld [smem:[#allocation41_spill]]  ;;  %p1373_p10 = scmp.lt.s32.totalorder %s4239_s0, 1  ;;  %vm1381_vm0 = vcmask 261120   ;;  %v4018_v2 = vmov 32.0  }
 0x15a   : > { %s4850_s7 = sld [smem:[#allocation43_spill]]  ;;  %3308 = vrcp.f32 %v4018_v2  ;;  %v3282_v25 = vld [vmem:[#allocation3] ss:$0 sm:$0xff]  ;;  %v3283_v28 = vld [vmem:[#allocation6] ss:$0 sm:$0xff]  ;;  %vm1513_vm9 = vcmask 523264  }
 0x15b   : > { %s1374_s11 = scalar_select %p1373_p10, %s4239_s0, 1  ;;  %v3284_v35 = vld [vmem:[#allocation8] ss:$0 sm:$0xff]  ;;  %v3285_v56 = vld [vmem:[#allocation9] ss:$0 sm:$0xff]  ;;  %vm1705_vm13 = vcmask 1043456  }
 0x15c   : > { %s4852_s18 = sld [smem:[#allocation44_spill]]  ;;  %s4019_s15 = smov 120   ;;  %vm1669_vm14 = vcmask 64512  }
 0x15d   : > { %s2872_s2 = sshll.u32 %s1374_s11, 3  ;;  %s4853_s16 = sld [smem:[#allocation47_spill]] }
 0x15e   : > { %s4854_s3 = sld [smem:[#allocation48_spill]]  ;;  %s4020_s6 = smov 112  }
 0x15f   : > { %s1376_s22 = scalar_lea.vmem %s4849_s4, %s2872_s2  ;;  %s4855_s8 = sld [smem:[#allocation49_spill]] }
 0x160   : > { %v4516_v0 = vld [vmem:[%s1376_s22] sm:$0xff]  ;;  %s4851_s26 = smov %s4850_s7  ;;  %v3309_v3 = vpop.eup %3308  ;;  %v3005_v14 = vld [vmem:[%s4850_s7 + $0x8] sm:$0xff]  ;;  %s4021_s9 = smov 104  }
 0x161   : > { %v1382_v1 = vsel %vm1381_vm0, %v4516_v0, 0.0  ;;  %v1386_v4 = vmul.f32 32.0, %v3309_v3  ;;  %vm1390_vm1 = vweird.f32 %v3309_v3  ;;  %1449 = vmatpush.bf16.msra.mxu0 %v3005_v14  ;;  %v3004_v15 = vld [vmem:[%s4851_s26] sm:$0xff]  ;;  %s4856_s5 = sld [smem:[#allocation52_spill]] }
 0x162   : > { %1383 = vadd.xlane.f32.xlu0 %v1382_v1  ;;  %v3009_v32 = vld [vmem:[%s4852_s18 + $0x18] sm:$0xff]  ;;  %v3008_v33 = vld [vmem:[%s4852_s18 + $0x10] sm:$0xff]  ;;  %v3007_v34 = vld [vmem:[%s4852_s18 + $0x8] sm:$0xff]  ;;  %s4857_s4 = sld [smem:[#allocation54_spill]] }
 0x163   : > { %v1387_v5 = vsub.f32 1.0, %v1386_v4  ;;  %1521 = vmatpush.bf16.msra.mxu1 %v3009_v32  ;;  %v3006_v37 = vld [vmem:[%s4852_s18] sm:$0xff]  ;;  %v4540_v63 = vld [vmem:[%s4853_s16 + $0x8] sm:$0xff]  ;;  %s4858_s11 = sld [smem:[#allocation60_spill]] }
 0x164   : > { %1594 = vmatpush.bf16.msra.mxu2 %v4540_v63  ;;  %v4546_v1 = vld [vmem:[%s4853_s16] sm:$0xff]  ;;  %s4859_s2 = sld [smem:[#allocation55_spill]] }
 0x165   : > { %v1388_v6 = vmul.f32 %v3309_v3, %v1387_v5  ;;  %1450 = vmatpush.bf16.msra.mxu0 %v3004_v15  ;;  %s4860_s22 = sld [smem:[#allocation56_spill]] }
 0x166   : > { %s4861_s7 = sld [smem:[#allocation59_spill]] }
 0x167   : > { %v1389_v7 = vadd.f32 %v3309_v3, %v1388_v6  ;;  %1522 = vmatpush.bf16.msra.mxu1 %v3008_v33  ;;  %v4558_v6 = vld [vmem:[%s4854_s3] sm:$0xff] }
 0x168   : > { %1595 = vmatpush.bf16.msra.mxu2 %v4546_v1  ;;  %v4597_v33 = vld [vmem:[#allocation17] ss:$0 sm:$0xff] }
 0x169   : > { %v4520_v8 = vsel %vm1390_vm1, %v3309_v3, %v1389_v7  ;;  %v4551_v3 = vld [vmem:[%s4854_s3 + $0x8] sm:$0xff] }
 0x16a   : > { %1748 = vrot.lane.b32.xlu2 %v4551_v3, %s4019_s15  ;;  %1627 = vmatpush.bf16.msra.mxu3 %v4551_v3 }
 0x16b   : > { %1523 = vmatpush.bf16.msra.mxu1 %v3007_v34 }
 0x16e   : > { %1628 = vmatpush.bf16.msra.mxu3 %v4558_v6 }
 0x16f   : > { %1524 = vmatpush.bf16.msra.mxu1 %v3006_v37 }
 0x172   : > { %1746 = vrot.lane.b32.xlu2 %v4558_v6, %s4019_s15 }
 0x1c4   : > { %v1749_v14 = vpop.permute.xlu2 %1748 }
 0x1d5   : > { %v1384_v9 = vpop.xlane.xlu0 %1383 }
 0x1d6   : > { %v1392_v10 = vmul.f32 %v4520_v8, %v1384_v9  ;;  %v4567_v9 = vld [vmem:[%s4855_s8 + $0x8] sm:$0xff] }
 0x1d7   : > { %1660 = vmatpush.bf16.msrb.mxu0 %v4567_v9 }
 0x1d8   : > { %v1393_v11 = vsub.f32 %v4516_v0, %v1392_v10 }
 0x1da   : > { %v1394_v12 = vmul.f32 %v1393_v11, %v1393_v11 }
 0x1dc   : > { %v1395_v13 = vsel %vm1381_vm0, %v1394_v12, 0.0 }
 0x1dd   : > { %1396 = vadd.xlane.f32.xlu0 %v1395_v13  ;;  %v4574_v13 = vld [vmem:[#allocation15] ss:$0 sm:$0xff] }
 0x1f1   : > { %1726 = vrot.lane.b32.xlu0 %v4540_v63, %s4019_s15 }
 0x250   : > { %v1397_v16 = vpop.xlane.xlu0 %1396 }
 0x251   : > { %v1398_v17 = vmul.f32 %v1397_v16, %v4520_v8 }
 0x253   : > { %v1399_v18 = vadd.f32 1e-05, %v1398_v17  ;;  %v4579_v17 = vld [vmem:[#allocation14] ss:$0 sm:$0xff] }
 0x255   : > { %3310 = vrsqrt.f32 %v1399_v18  ;;  %vm1406_vm3 = vweird.f32 %v1399_v18 }
 0x25b   : > { %v3311_v19 = vpop.eup %3310 }
 0x25c   : > { %v1401_v20 = vmul.f32 %v3311_v19, %v1399_v18  ;;  %vm1407_vm2 = vweird.f32 %v3311_v19  ;;  %v1747_v18 = vpop.permute.xlu2 %1746 }
 0x25d   : > { %vm1408_vm4 = vmor %vm1406_vm3, %vm1407_vm2  ;;  %vm2293_vm3 = vcmask 253952  }
 0x25e   : > { %v1402_v21 = vmul.f32 %v3311_v19, %v1401_v20 }
 0x260   : > { %v1403_v22 = vmul.f32 0.5, %v1402_v21 }
 0x262   : > { %v1404_v23 = vsub.f32 1.5, %v1403_v22 }
 0x263   : > { %v1727_v10 = vpop.permute.xlu0 %1726 }
 0x264   : > { %v1405_v24 = vmul.f32 %v3311_v19, %v1404_v23  ;;  %1739 = vmatpush.bf16.msrb.mxu1 %v1727_v10 }
 0x266   : > { %v1409_v26 = vsel %vm1408_vm4, %v3311_v19, %v1405_v24 }
 0x267   : > { %v1410_v27 = vmul.f32 %v1409_v26, %v1393_v11  ;;  %v4571_v11 = vld [vmem:[%s4855_s8] sm:$0xff] }
 0x268   : > { %1661 = vmatpush.bf16.msrb.mxu0 %v4571_v11 }
 0x269   : > { %v1414_v29 = vmul.f32 %v3282_v25, %v1410_v27  ;;  %v3286_v25 = vld [vmem:[#allocation11] ss:$0 sm:$0xff]  ;;  %v3287_v27 = vld [vmem:[#allocation12] ss:$0 sm:$0xff] }
 0x26b   : > { %v1418_v30 = vadd.f32 %v3283_v28, %v1414_v29 }
 0x26d   : > { %v1419_v31 = vpack.c.bf16 %v1418_v30, %v1418_v30 }
 0x26f   : > { %2881 = vmatmul.msk.bf16.vlgmr.msra.gmra.mxu0 %vm1381_vm0, %v1419_v31 }
 0x270   : > { %1761 = vmatpush.bf16.msra.mxu0 %v1749_v14 }
 0x274   : > { %1762 = vmatpush.bf16.msra.mxu0 %v1747_v18 }
 0x2ec   : > { %v1452_v36 = vpop.f32.mrf.mxu0 }
 0x2ed   : > { %v1453_v38 = vadd.f32 %v3284_v35, %v1452_v36 }
 0x2ef   : > { %v1456_v39 = vsub.f32 0.0, %v1453_v38 }
 0x2f1   : > { %v1457_v40 = vmul.f32 1.442695, %v1456_v39 }
 0x2f3   : > { %3312 = vpow2.f32 %v1457_v40 }
 0x2f4   : > { %v1454_v41 = vpop.f32.mrf.mxu0 }
 0x2f9   : > { %v3313_v42 = vpop.eup %3312 }
 0x2fa   : > { %v1459_v43 = vadd.f32 1.0, %v3313_v42 }
 0x2fc   : > { %3314 = vrcp.f32 %v1459_v43  ;;  %v1471_v47 = vand.u32 2147483648, %v1459_v43  ;;  %v1469_v49 = vand.u32 2147483647, %v1459_v43  ;;  %vm1465_vm6 = vweird.f32 %v1459_v43 }
 0x2fe   : > { %v1472_v51 = vor.u32 1.1754944e-38, %v1471_v47  ;;  %vm1470_vm8 = vcmp.eq.f32.partialorder %v1469_v49, 8.507059e+37 }
 0x302   : > { %v3315_v44 = vpop.eup %3314 }
 0x303   : > { %v1461_v45 = vmul.f32 %v3315_v44, %v1459_v43  ;;  %vm1466_vm5 = vweird.f32 %v3315_v44 }
 0x304   : > { %vm1467_vm7 = vmor %vm1465_vm6, %vm1466_vm5 }
 0x305   : > { %v1462_v46 = vsub.f32 1.0, %v1461_v45 }
 0x307   : > { %v1463_v48 = vmul.f32 %v3315_v44, %v1462_v46 }
 0x309   : > { %v1464_v50 = vadd.f32 %v3315_v44, %v1463_v48 }
 0x30b   : > { %v1468_v52 = vsel %vm1467_vm7, %v3315_v44, %v1464_v50 }
 0x30c   : > { %v1473_v53 = vsel %vm1470_vm8, %v1472_v51, %v1468_v52 }
 0x30d   : > { %v1475_v54 = vmul.f32 %v1473_v53, %v1453_v38 }
 0x30f   : > { %v1476_v55 = vpack.c.bf16 %v1475_v54, %v1475_v54 }
 0x311   : > { %2898 = vmatmul.msk.bf16.vlgmr.msra.gmra.mxu1 %vm1513_vm9, %v1476_v55 }
 0x38e   : > { %v1526_v57 = vpop.f32.mrf.mxu1 }
 0x38f   : > { %v1527_v58 = vadd.f32 %v3285_v56, %v1526_v57 }
 0x391   : > { %v1530_v59 = vmul.f32 0.5, %v1527_v58 }
 0x393   : > { %v4535_v60 = vadd.f32 %v1530_v59, %v4516_v0 }
 0x395   : > { %v1534_v61 = vsel %vm1381_vm0, %v4535_v60, 0.0 }
 0x396   : > { %v1528_v62 = vpop.f32.mrf.mxu1  ;;  %1535 = vadd.xlane.f32.xlu1 %v1534_v61 }
 0x409   : > { %v1536_v0 = vpop.xlane.xlu1 %1535 }
 0x40a   : > { %v1537_v2 = vmul.f32 %v1536_v0, %v4520_v8 }
 0x40c   : > { %v1538_v4 = vsub.f32 %v4535_v60, %v1537_v2 }
 0x40e   : > { %v1539_v5 = vmul.f32 %v1538_v4, %v1538_v4 }
 0x410   : > { %v1540_v7 = vsel %vm1381_vm0, %v1539_v5, 0.0 }
 0x411   : > { %1541 = vadd.xlane.f32.xlu1 %v1540_v7 }
 0x42a   : > { %1724 = vrot.lane.b32.xlu1 %v4546_v1, %s4019_s15 }
 0x432   : > { %1752 = vrot.lane.b32.xlu1 %v4574_v13, %s4019_s15 }
 0x43a   : > { %1730 = vrot.lane.b32.xlu1 %v4579_v17, %s4019_s15 }
 0x442   : > { %1770 = vrot.lane.b32.xlu1 %v4567_v9, %s4019_s15 }
 0x484   : > { %v1542_v12 = vpop.xlane.xlu1 %1541 }
 0x485   : > { %v1543_v15 = vmul.f32 %v1542_v12, %v4520_v8 }
 0x487   : > { %v1544_v16 = vadd.f32 1e-05, %v1543_v15 }
 0x489   : > { %3316 = vrsqrt.f32 %v1544_v16  ;;  %vm1551_vm11 = vweird.f32 %v1544_v16 }
 0x48f   : > { %v3317_v19 = vpop.eup %3316 }
 0x490   : > { %v1546_v20 = vmul.f32 %v3317_v19, %v1544_v16  ;;  %vm1552_vm10 = vweird.f32 %v3317_v19 }
 0x491   : > { %vm1553_vm12 = vmor %vm1551_vm11, %vm1552_vm10 }
 0x492   : > { %v1547_v21 = vmul.f32 %v3317_v19, %v1546_v20 }
 0x494   : > { %v1548_v22 = vmul.f32 0.5, %v1547_v21 }
 0x496   : > { %v1549_v23 = vsub.f32 1.5, %v1548_v22 }
 0x498   : > { %v1550_v24 = vmul.f32 %v3317_v19, %v1549_v23 }
 0x49a   : > { %v1554_v26 = vsel %vm1553_vm12, %v3317_v19, %v1550_v24 }
 0x49b   : > { %v1555_v28 = vmul.f32 %v1554_v26, %v1538_v4 }
 0x49c   : > { %v1725_v29 = vpop.permute.xlu1 %1724 }
 0x49d   : > { %v1559_v30 = vmul.f32 %v3286_v25, %v1555_v28  ;;  %1740 = vmatpush.bf16.msrb.mxu1 %v1725_v29  ;;  %v1723_v28 = vld [vmem:[#allocation18] sm:$0xf] }
 0x49e   : > { %v1868_v29 = vsel %vm1705_vm13, %v1723_v28, 0 }
 0x49f   : > { %v1563_v31 = vadd.f32 %v3287_v27, %v1559_v30 }
 0x4a1   : > { %v4585_v32 = vpack.c.bf16 %v1563_v31, %v1563_v31 }
 0x4a3   : > { %2907 = vmatmul.msk.bf16.vlgmr.msra.gmra.mxu2 %vm1381_vm0, %v4585_v32  ;;  %2916 = vmatmul.msk.bf16.vlgmr.msra.gmra.mxu3 %vm1381_vm0, %v4585_v32 }
 0x4a4   : > { %2925 = vmatmul.msk.bf16.vlgmr.msrb.gmra.mxu0 %vm1381_vm0, %v4585_v32  ;;  %2928 = vmatmul.msk.bf16.vlgmr.msrb.gmra.mxu1 %vm1381_vm0, %v4585_v32  ;;  %v1753_v49 = vpop.permute.xlu1 %1752 }
 0x4ac   : > { %v1731_v59 = vpop.permute.xlu1 %1730 }
 0x4b4   : > { %2929 = vmatmul.msk.bf16.vlgmr.msra.gmra.mxu0 %vm1381_vm0, %v4585_v32  ;;  %v1771_v61 = vpop.permute.xlu1 %1770 }
 0x521   : > { %v1663_v34 = vpop.f32.mrf.mxu0  ;;  %v4599_v35 = vpop.f32.mrf.mxu1 }
 0x522   : > { %v1664_v36 = vadd.f32 %v4597_v33, %v1663_v34  ;;  %v1743_v25 = vadd.f32 %v4599_v35, %v1731_v59 }
 0x524   : > { %v1701_v37 = vpack.c.bf16 %v1664_v36, %v1664_v36  ;;  %v1790_v27 = vpack.c.bf16 %v1743_v25, %v1743_v25 }
 0x526   : > { %v1597_v38 = vpop.f32.mrf.mxu2  ;;  %v1630_v39 = vpop.f32.mrf.mxu3  ;;  %v1707_v40 = vsel %vm1705_vm13, %v1701_v37, 0 }
 0x527   : > { %v1631_v41 = vadd.f32 %v4574_v13, %v1630_v39  ;;  %1716 = vmatpush.bf16.msrb.mxu3 %v1707_v40  ;;  %v1598_v46 = vadd.f32 %v4579_v17, %v1597_v38 }
 0x529   : > { %v1668_v42 = vpack.c.bf16 %v1631_v41, %v1631_v41  ;;  %v1665_v43 = vpop.f32.mrf.mxu0  ;;  %v1744_v44 = vpop.f32.mrf.mxu1  ;;  %v1667_v50 = vpack.c.bf16 %v1598_v46, %v1598_v46 }
 0x52b   : > { %v1674_v45 = vsel %vm1669_vm14, %v1668_v42, 0 }
 0x52c   : > { %1683 = vmatpush.bf16.xpose.msrb.mxu2 %v1674_v45 }
 0x52e   : > { %v1599_v47 = vpop.f32.mrf.mxu2  ;;  %v1632_v48 = vpop.f32.mrf.mxu3 }
 0x531   : > { %v1764_v51 = vpop.f32.mrf.mxu0 }
 0x532   : > { %v1765_v52 = vadd.f32 %v1764_v51, %v1753_v49 }
 0x533   : > { %2926 = vmatmul.msk.bf16.vlgmr.msrb.gmra.mxu2 %vm1669_vm14, %v1667_v50 }
 0x534   : > { %v1791_v53 = vpack.c.bf16 %v1765_v52, %v1765_v52  ;;  %1783 = vmatpush.bf16.msra.mxu2 %v1771_v61 }
 0x536   : > { %v1796_v54 = vsel %vm1669_vm14, %v1791_v53, 0 }
 0x537   : > { %1805 = vmatpush.bf16.xpose.msra.mxu3 %v1796_v54 }
 0x539   : > { %v1766_v55 = vpop.f32.mrf.mxu0 }
 0x5b6   : > { %v1685_v56 = vpop.f32.mrf.mxu2 }
 0x5b7   : > { %v1689_v57 = vsel %vm1669_vm14, %v1685_v56, -inf }
 0x5b8   : > { %1690 = vmax.xlane.f32.xlu2 %v1689_v57 }
 0x5be   : > { %v1687_v58 = vpop.f32.mrf.mxu2 }
 0x5d0   : > { %1768 = vrot.lane.b32.xlu2 %v4571_v11, %s4019_s15 }
 0x5d8   : > { %1774 = vrot.lane.b32.xlu2 %v4597_v33, %s4019_s15  ;;  %s4862_s15 = sld [smem:[#allocation57_spill]] }
 0x5e0   : > { %1885 = vrot.lane.b32.xlu2 %v4540_v63, %s4020_s6 }
 0x5e8   : > { %1905 = vrot.lane.b32.xlu2 %v4558_v6, %s4020_s6 }
 0x5f0   : > { %1883 = vrot.lane.b32.xlu2 %v4546_v1, %s4020_s6 }
 0x5f8   : > { %1929 = vrot.lane.b32.xlu2 %v4567_v9, %s4020_s6 }
 0x62b   : > { %v1691_v62 = vpop.xlane.xlu2 %1690 }
 0x62c   : > { %v1692_v0 = vsub.f32 %v1685_v56, %v1691_v62 }
 0x62e   : > { %v1693_v2 = vmul.f32 1.442695, %v1692_v0 }
 0x630   : > { %3318 = vpow2.f32 %v1693_v2 }
 0x633   : > { %v1769_v4 = vpop.permute.xlu2 %1768 }
 0x634   : > { %1784 = vmatpush.bf16.msra.mxu2 %v1769_v4 }
 0x636   : > { %v3319_v5 = vpop.eup %3318 }
 0x637   : > { %2930 = vmatmul.msk.bf16.vlgmr.msra.gmra.mxu2 %vm1381_vm0, %v4585_v32  ;;  %v1695_v7 = vsel %vm1669_vm14, %v3319_v5, 0.0 }
 0x638   : > { %1696 = vadd.xlane.f32.xlu0 %v1695_v7  ;;  %1877 = vmatpush.bf16.msrb.mxu2 %v1868_v29 }
 0x63b   : > { %v1775_v10 = vpop.permute.xlu2 %1774 }
 0x643   : > { %v1886_v12 = vpop.permute.xlu2 %1885 }
 0x64b   : > { %v1906_v15 = vpop.permute.xlu2 %1905 }
 0x653   : > { %v1884_v20 = vpop.permute.xlu2 %1883 }
 0x65b   : > { %v1930_v49 = vpop.permute.xlu2 %1929 }
 0x6ab   : > { %v1697_v14 = vpop.xlane.xlu0 %1696 }
 0x6ac   : > { %3320 = vrcp.f32 %v1697_v14 }
 0x6b2   : > { %v3321_v16 = vpop.eup %3320 }
 0x6b3   : > { %v1699_v18 = vmul.f32 %v3321_v16, %v3319_v5 }
 0x6b5   : > { %v1700_v19 = vpack.c.bf16 %v1699_v18, %v1699_v18 }
 0x6b7   : > { %2927 = vmatmul.msk.bf16.vlgmr.msrb.gmra.mxu3 %vm1669_vm14, %v1700_v19 }
 0x6b8   : > { %1898 = vmatpush.bf16.msrb.mxu3 %v1886_v12 }
 0x6ba   : > { %v1786_v21 = vpop.f32.mrf.mxu2 }
 0x6bb   : > { %v1787_v22 = vadd.f32 %v1786_v21, %v1775_v10 }
 0x6bc   : > { %1899 = vmatpush.bf16.msrb.mxu3 %v1884_v20 }
 0x6bd   : > { %v1823_v23 = vpack.c.bf16 %v1787_v22, %v1787_v22 }
 0x6bf   : > { %v1828_v24 = vsel %vm1705_vm13, %v1823_v23, 0 }
 0x6c0   : > { %1837 = vmatpush.bf16.msra.mxu1 %v1828_v24 }
 0x6c2   : > { %v1788_v26 = vpop.f32.mrf.mxu2 }
 0x6c7   : > { %2931 = vmatmul.msk.bf16.vlgmr.msra.gmra.mxu3 %vm1669_vm14, %v1790_v27 }
 0x6d7   : > { %2935 = vmatmul.msk.bf16.vlgmr.msrb.gmra.mxu3 %vm1381_vm0, %v4585_v32 }
 0x73a   : > { %v1718_v30 = vpop.f32.mrf.mxu3 }
 0x73b   : > { %v1722_v31 = vpack.c.bf16 %v1718_v30, %v1718_v30  ;;  %v2003_v30 = vld [vmem:[#allocation18 + $0x8] sm:$0xf] }
 0x73d   : > { %2934 = vmatmul.msk.bf16.vlgmr.msrb.gmra.mxu2 %vm1669_vm14, %v1722_v31  ;;  %v2008_v31 = vsel %vm1705_vm13, %v2003_v30, 0 }
 0x742   : > { %v1720_v34 = vpop.f32.mrf.mxu3 }
 0x74a   : > { %v1807_v36 = vpop.f32.mrf.mxu3 }
 0x74b   : > { %v1811_v37 = vsel %vm1669_vm14, %v1807_v36, -inf }
 0x74c   : > { %1812 = vmax.xlane.f32.xlu1 %v1811_v37 }
 0x752   : > { %v1809_v35 = vpop.f32.mrf.mxu3 }
 0x75a   : > { %v1901_v38 = vpop.f32.mrf.mxu3 }
 0x762   : > { %v1903_v39 = vpop.f32.mrf.mxu3 }
 0x765   : > { %1889 = vrot.lane.b32.xlu1 %v4579_v17, %s4020_s6 }
 0x76d   : > { %1933 = vrot.lane.b32.xlu1 %v4597_v33, %s4020_s6 }
 0x775   : > { %2048 = vrot.lane.b32.xlu1 %v4551_v3, %s4021_s9 }
 0x77d   : > { %2046 = vrot.lane.b32.xlu1 %v4558_v6, %s4021_s9 }
 0x785   : > { %2026 = vrot.lane.b32.xlu1 %v4540_v63, %s4021_s9 }
 0x78d   : > { %2030 = vrot.lane.b32.xlu1 %v4579_v17, %s4021_s9 }
 0x795   : > { %2070 = vrot.lane.b32.xlu1 %v4567_v9, %s4021_s9  ;;  %v1844_v9 = vld [vmem:[#allocation18 + $0x4] sm:$0xf] }
 0x796   : > { %v1849_v17 = vsel %vm1705_vm13, %v1844_v9, 0 }
 0x797   : > { %1858 = vmatpush.bf16.msrb.mxu0 %v1849_v17 }
 0x79b   : > { %1942 = vmatpush.bf16.msra.mxu0 %v1930_v49 }
 0x79d   : > { %2068 = vrot.lane.b32.xlu1 %v4571_v11, %s4021_s9 }
 0x7a5   : > { %2074 = vrot.lane.b32.xlu1 %v4597_v33, %s4021_s9 }
 0x7bf   : > { %v1813_v40 = vpop.xlane.xlu1 %1812 }
 0x7c0   : > { %v1814_v41 = vsub.f32 %v1807_v36, %v1813_v40  ;;  %v4637_v42 = vpop.f32.mrf.mxu2 }
 0x7c2   : > { %v1815_v43 = vmul.f32 1.442695, %v1814_v41 }
 0x7c4   : > { %3322 = vpow2.f32 %v1815_v43 }
 0x7c8   : > { %v1881_v44 = vpop.f32.mrf.mxu2 }
 0x7ca   : > { %v3323_v45 = vpop.eup %3322 }
 0x7cb   : > { %v1817_v46 = vsel %vm1669_vm14, %v3323_v45, 0.0 }
 0x7cc   : > { %1818 = vadd.xlane.f32.xlu0 %v1817_v46 }
 0x7d7   : > { %v1890_v50 = vpop.permute.xlu1 %1889 }
 0x7d8   : > { %v1902_v61 = vadd.f32 %v1901_v38, %v1890_v50 }
 0x7da   : > { %v1949_v2 = vpack.c.bf16 %v1902_v61, %v1902_v61  ;;  %v2144_v61 = vld [vmem:[#allocation18 + $0xc] sm:$0xf] }
 0x7df   : > { %v1934_v53 = vpop.permute.xlu1 %1933 }
 0x7e0   : > { %1907 = vrot.lane.b32.xlu0 %v4551_v3, %s4020_s6 }
 0x7e7   : > { %v2049_v55 = vpop.permute.xlu1 %2048 }
 0x7e8   : > { %1911 = vrot.lane.b32.xlu0 %v4574_v13, %s4020_s6 }
 0x7ef   : > { %v2047_v0 = vpop.permute.xlu1 %2046 }
 0x7f0   : > { %1927 = vrot.lane.b32.xlu0 %v4571_v11, %s4020_s6  ;;  %s4863_s6 = sld [smem:[#allocation58_spill]] }
 0x7f7   : > { %v2027_v22 = vpop.permute.xlu1 %2026 }
 0x7ff   : > { %v2031_v29 = vpop.permute.xlu1 %2030 }
 0x83f   : > { %v1819_v3 = vpop.xlane.xlu0 %1818 }
 0x840   : > { %3324 = vrcp.f32 %v1819_v3 }
 0x846   : > { %v3325_v6 = vpop.eup %3324 }
 0x847   : > { %v1821_v47 = vmul.f32 %v3325_v6, %v3323_v45 }
 0x849   : > { %v1822_v63 = vpack.c.bf16 %v1821_v47, %v1821_v47 }
 0x84b   : > { %2932 = vmatmul.msk.bf16.vlgmr.msra.gmra.mxu1 %vm1669_vm14, %v1822_v63 }
 0x852   : > { %v1908_v48 = vpop.permute.xlu0 %1907 }
 0x853   : > { %1920 = vmatpush.bf16.msrb.mxu1 %v1908_v48 }
 0x857   : > { %1921 = vmatpush.bf16.msrb.mxu1 %v1906_v15 }
 0x85a   : > { %v1912_v11 = vpop.permute.xlu0 %1911 }
 0x85b   : > { %2936 = vmatmul.msk.bf16.vlgmr.msrb.gmra.mxu1 %vm1381_vm0, %v4585_v32 }
 0x85c   : > { %2017 = vmatpush.bf16.msra.mxu1 %v2008_v31 }
 0x862   : > { %v1928_v33 = vpop.permute.xlu0 %1927 }
 0x863   : > { %1943 = vmatpush.bf16.msra.mxu0 %v1928_v33 }
 0x8c8   : > { %v1839_v51 = vpop.f32.mrf.mxu1 }
 0x8c9   : > { %v1843_v52 = vpack.c.bf16 %v1839_v51, %v1839_v51 }
 0x8cb   : > { %2933 = vmatmul.msk.bf16.vlgmr.msrb.gmra.mxu0 %vm1669_vm14, %v1843_v52 }
 0x8cc   : > { %2039 = vmatpush.bf16.msrb.mxu0 %v2027_v22 }
 0x8d0   : > { %v1841_v54 = vpop.f32.mrf.mxu1 }
 0x8d8   : > { %v1923_v56 = vpop.f32.mrf.mxu1 }
 0x8d9   : > { %v1924_v57 = vadd.f32 %v1923_v56, %v1912_v11 }
 0x8db   : > { %v1950_v58 = vpack.c.bf16 %v1924_v57, %v1924_v57  ;;  %2937 = vmatmul.msk.bf16.vlgmr.msra.gmra.mxu0 %vm1381_vm0, %v4585_v32 }
 0x8dd   : > { %v1955_v59 = vsel %vm1669_vm14, %v1950_v58, 0 }
 0x8de   : > { %1964 = vmatpush.bf16.xpose.msra.mxu2 %v1955_v59 }
 0x8e0   : > { %v1925_v62 = vpop.f32.mrf.mxu1 }
 0x8e1   : > { %v2149_v62 = vsel %vm1705_vm13, %v2144_v61, 0 }
 0x8e5   : > { %2938 = vmatmul.msk.bf16.vlgmr.msra.gmra.mxu2 %vm1669_vm14, %v1949_v2 }
 0x8e6   : > { %2061 = vmatpush.bf16.msrb.mxu2 %v2049_v55 }
 0x8ea   : > { %2062 = vmatpush.bf16.msrb.mxu2 %v2047_v0 }
 0x8ee   : > { %2158 = vmatpush.bf16.msra.mxu2 %v2149_v62 }
 0x8f5   : > { %2942 = vmatmul.msk.bf16.vlgmr.msrb.gmra.mxu2 %vm1381_vm0, %v4585_v32 }
 0x948   : > { %v4671_v4 = vpop.f32.mrf.mxu0 }
 0x949   : > { %v1880_v33 = vadd.f32 %v4637_v42, %v4671_v4 }
 0x950   : > { %v1862_v5 = vpop.f32.mrf.mxu0 }
 0x958   : > { %v1945_v7 = vpop.f32.mrf.mxu0 }
 0x959   : > { %v1946_v10 = vadd.f32 %v1945_v7, %v1934_v53 }
 0x95b   : > { %v1982_v12 = vpack.c.bf16 %v1946_v10, %v1946_v10 }
 0x95d   : > { %v1987_v14 = vsel %vm1705_vm13, %v1982_v12, 0  ;;  %v3291_v12 = vld [vmem:[#allocation20] ss:$0 sm:$0xff] }
 0x95e   : > { %1996 = vmatpush.bf16.msra.mxu3 %v1987_v14 }
 0x960   : > { %v1947_v15 = vpop.f32.mrf.mxu0 }
 0x968   : > { %v1966_v16 = vpop.f32.mrf.mxu2 }
 0x969   : > { %v1970_v18 = vsel %vm1669_vm14, %v1966_v16, -inf }
 0x96a   : > { %1971 = vmax.xlane.f32.xlu2 %v1970_v18 }
 0x970   : > { %v1968_v19 = vpop.f32.mrf.mxu2 }
 0x978   : > { %v2064_v20 = vpop.f32.mrf.mxu2 }
 0x980   : > { %v2066_v21 = vpop.f32.mrf.mxu2 }
 0x982   : > { %2024 = vrot.lane.b32.xlu2 %v4546_v1, %s4021_s9  ;;  %v2071_v1 = vpop.permute.xlu1 %2070 }
 0x983   : > { %2083 = vmatpush.bf16.msrb.mxu3 %v2071_v1 }
 0x98a   : > { %v2069_v34 = vpop.permute.xlu1 %2068 }
 0x98b   : > { %2084 = vmatpush.bf16.msrb.mxu3 %v2069_v34 }
 0x992   : > { %v2075_v47 = vpop.permute.xlu1 %2074 }
 0x9dd   : > { %v1972_v23 = vpop.xlane.xlu2 %1971 }
 0x9de   : > { %v1973_v24 = vsub.f32 %v1966_v16, %v1972_v23 }
 0x9e0   : > { %v1974_v25 = vmul.f32 1.442695, %v1973_v24 }
 0x9e2   : > { %3326 = vpow2.f32 %v1974_v25 }
 0x9e5   : > { %v2025_v26 = vpop.permute.xlu2 %2024 }
 0x9e6   : > { %2040 = vmatpush.bf16.msrb.mxu0 %v2025_v26  ;;  %v3017_v26 = vld [vmem:[%s4856_s5 + $0x8] sm:$0xff] }
 0x9e8   : > { %v3327_v27 = vpop.eup %3326 }
 0x9e9   : > { %2941 = vmatmul.msk.bf16.vlgmr.msrb.gmra.mxu0 %vm1381_vm0, %v4585_v32  ;;  %v1976_v28 = vsel %vm1669_vm14, %v3327_v27, 0.0 }
 0x9ea   : > { %1977 = vadd.xlane.f32.xlu0 %v1976_v28  ;;  %v3018_v28 = vld [vmem:[#allocation26] sm:$0xff] }
 0x9fe   : > { %2052 = vrot.lane.b32.xlu0 %v4574_v13, %s4021_s9  ;;  %s4864_s9 = sld [smem:[#allocation61_spill]] }
 0xa5d   : > { %v1978_v36 = vpop.xlane.xlu0 %1977 }
 0xa5e   : > { %3328 = vrcp.f32 %v1978_v36 }
 0xa64   : > { %v3329_v37 = vpop.eup %3328 }
 0xa65   : > { %v1980_v35 = vmul.f32 %v3329_v37, %v3327_v27  ;;  %v3019_v27 = vld [vmem:[#allocation26 + $0x8] sm:$0xff] }
 0xa66   : > { %v2042_v38 = vpop.f32.mrf.mxu0 }
 0xa67   : > { %v1981_v39 = vpack.c.bf16 %v1980_v35, %v1980_v35  ;;  %v2043_v40 = vadd.f32 %v2042_v38, %v2031_v29 }
 0xa69   : > { %2939 = vmatmul.msk.bf16.vlgmr.msra.gmra.mxu3 %vm1669_vm14, %v1981_v39  ;;  %v2090_v48 = vpack.c.bf16 %v2043_v40, %v2043_v40  ;;  %v3292_v39 = vld [vmem:[#allocation21] ss:$0 sm:$0xff] }
 0xa6a   : > { %2233 = vmatpush.bf16.msra.mxu3 %v3017_v26 }
 0xa6e   : > { %v2044_v41 = vpop.f32.mrf.mxu0 }
 0xa70   : > { %v2053_v13 = vpop.permute.xlu0 %2052 }
 0xa71   : > { %v2065_v43 = vadd.f32 %v2064_v20, %v2053_v13  ;;  %v3293_v13 = vld [vmem:[#allocation23] ss:$0 sm:$0xff] }
 0xa73   : > { %v2091_v44 = vpack.c.bf16 %v2065_v43, %v2065_v43 }
 0xa75   : > { %v2096_v45 = vsel %vm1669_vm14, %v2091_v44, 0 }
 0xa76   : > { %2105 = vmatpush.bf16.xpose.msrb.mxu1 %v2096_v45 }
 0xa79   : > { %2943 = vmatmul.msk.bf16.vlgmr.msrb.gmra.mxu3 %vm1381_vm0, %v4585_v32 }
 0xaec   : > { %v1998_v46 = vpop.f32.mrf.mxu3 }
 0xaed   : > { %v2002_v3 = vpack.c.bf16 %v1998_v46, %v1998_v46  ;;  %v3294_v46 = vld [vmem:[%s4857_s4] ss:$0 sm:$0xff]  ;;  %s4865_s4 = sld [smem:[#allocation62_spill]] }
 0xaef   : > { %2940 = vmatmul.msk.bf16.vlgmr.msra.gmra.mxu1 %vm1669_vm14, %v2002_v3 }
 0xaf0   : > { %2266 = vmatpush.bf16.msra.mxu1 %v3019_v27 }
 0xaf4   : > { %v2000_v6 = vpop.f32.mrf.mxu3  ;;  %2267 = vmatpush.bf16.msra.mxu1 %v3018_v28 }
 0xafc   : > { %v2086_v63 = vpop.f32.mrf.mxu3 }
 0xafd   : > { %v2087_v9 = vadd.f32 %v2086_v63, %v2075_v47  ;;  %v3021_v63 = vld [vmem:[#allocation27 + $0x8] sm:$0xff] }
 0xaff   : > { %v2123_v17 = vpack.c.bf16 %v2087_v9, %v2087_v9  ;;  %2944 = vmatmul.msk.bf16.vlgmr.msrb.gmra.mxu1 %vm1669_vm14, %v2090_v48  ;;  %v4022_v48 = vmov 0.0  }
 0xb00   : > { %2294 = vst.msk [vmem:[#allocation2] sm:$0x1] %vm2293_vm3, %v4022_v48 }
 0xb01   : > { %v2128_v11 = vsel %vm1705_vm13, %v2123_v17, 0  ;;  %v3020_v17 = vld [vmem:[#allocation27] sm:$0xff]  ;;  %2295 = vst.msk [vmem:[#allocation2 + $0x9] sm:$0x1] %vm2293_vm3, %v4022_v48 }
 0xb02   : > { %2137 = vmatpush.bf16.msra.mxu0 %v2128_v11 }
 0xb04   : > { %v2088_v49 = vpop.f32.mrf.mxu3 }
 0xb06   : > { %2404 = vmatpush.bf16.msrb.mxu0 %v3021_v63 }
 0xb0a   : > { %2405 = vmatpush.bf16.msrb.mxu0 %v3020_v17 }
 0xb6c   : > { %v2019_v32 = vpop.f32.mrf.mxu1 }
 0xb6d   : > { %v2023_v50 = vadd.f32 %v2019_v32, %v1880_v33  ;;  %v2328_v33 = vld [vmem:[%s4858_s11] sm:$0x1]  ;;  %s4866_s11 = sld [smem:[#allocation63_spill]] }
 0xb74   : > { %v2021_v51 = vpop.f32.mrf.mxu1 }
 0xb7c   : > { %v2107_v52 = vpop.f32.mrf.mxu1 }
 0xb7d   : > { %v2111_v53 = vsel %vm1669_vm14, %v2107_v52, -inf }
 0xb7e   : > { %2112 = vmax.xlane.f32.xlu0 %v2111_v53 }
 0xb84   : > { %v2109_v54 = vpop.f32.mrf.mxu1 }
 0xbf1   : > { %v2113_v55 = vpop.xlane.xlu0 %2112 }
 0xbf2   : > { %v2114_v56 = vsub.f32 %v2107_v52, %v2113_v55 }
 0xbf4   : > { %v2115_v57 = vmul.f32 1.442695, %v2114_v56 }
 0xbf6   : > { %3330 = vpow2.f32 %v2115_v57 }
 0xbfc   : > { %v3331_v58 = vpop.eup %3330 }
 0xbfd   : > { %v2117_v59 = vsel %vm1669_vm14, %v3331_v58, 0.0 }
 0xbfe   : > { %2118 = vadd.xlane.f32.xlu2 %v2117_v59  ;;  %v3295_v59 = vld [vmem:[#allocation24] ss:$0 sm:$0xff] }
 0xc71   : > { %v2119_v42 = vpop.xlane.xlu2 %2118 }
 0xc72   : > { %3332 = vrcp.f32 %v2119_v42 }
 0xc78   : > { %v3333_v0 = vpop.eup %3332 }
 0xc79   : > { %v2121_v2 = vmul.f32 %v3333_v0, %v3331_v58 }
 0xc7b   : > { %v2122_v4 = vpack.c.bf16 %v2121_v2, %v2121_v2 }
 0xc7d   : > { %2945 = vmatmul.msk.bf16.vlgmr.msra.gmra.mxu0 %vm1669_vm14, %v2122_v4 }
 0xcfa   : > { %v2139_v5 = vpop.f32.mrf.mxu0 }
 0xcfb   : > { %v2143_v7 = vpack.c.bf16 %v2139_v5, %v2139_v5 }
 0xcfd   : > { %2946 = vmatmul.msk.bf16.vlgmr.msra.gmra.mxu2 %vm1669_vm14, %v2143_v7 }
 0xd02   : > { %v2141_v10 = vpop.f32.mrf.mxu0 }
 0xd80   : > { %v2160_v14 = vpop.f32.mrf.mxu2 }
 0xd81   : > { %v2164_v15 = vadd.f32 %v2160_v14, %v2023_v50  ;;  %v2329_v50 = vadd.f32 1e-05, %v2328_v33  ;;  %v3303_v33 = vld [vmem:[%s4864_s9] ss:$0 sm:$0xff] }
 0xd83   : > { %v2169_v16 = vadd.f32 %v3291_v12, %v2164_v15  ;;  %v3296_v15 = vld [vmem:[%s4859_s2] ss:$0 sm:$0xff]  ;;  %vm2336_vm8 = vweird.f32 %v2329_v50 }
 0xd85   : > { %v4698_v18 = vadd.f32 %v2169_v16, %v4535_v60  ;;  %v3016_v60 = vld [vmem:[%s4856_s5] sm:$0xff] }
 0xd86   : > { %2234 = vmatpush.bf16.msra.mxu3 %v3016_v60  ;;  %v3297_v16 = vld [vmem:[%s4859_s2 + $0x1] ss:$0 sm:$0xff]  ;;  %v3299_v60 = vld [vmem:[%s4860_s22] ss:$0 sm:$0xff]  ;;  %s4867_s22 = sld [smem:[#allocation65_spill]] }
 0xd87   : > { %v2173_v19 = vsel %vm1381_vm0, %v4698_v18, 0.0 }
 0xd88   : > { %2174 = vadd.xlane.f32.xlu1 %v2173_v19  ;;  %v2162_v20 = vpop.f32.mrf.mxu2  ;;  %v3298_v19 = vld [vmem:[%s4859_s2 + $0x2] ss:$0 sm:$0xff] }
 0xdfb   : > { %v2175_v21 = vpop.xlane.xlu1 %2174 }
 0xdfc   : > { %v2176_v22 = vmul.f32 %v2175_v21, %v4520_v8 }
 0xdfe   : > { %v2177_v23 = vsub.f32 %v4698_v18, %v2176_v22 }
 0xe00   : > { %v2178_v24 = vmul.f32 %v2177_v23, %v2177_v23 }
 0xe02   : > { %v2179_v25 = vsel %vm1381_vm0, %v2178_v24, 0.0 }
 0xe03   : > { %2180 = vadd.xlane.f32.xlu0 %v2179_v25 }
 0xe76   : > { %v2181_v29 = vpop.xlane.xlu0 %2180 }
 0xe77   : > { %v2182_v1 = vmul.f32 %v2181_v29, %v4520_v8 }
 0xe79   : > { %v2183_v30 = vadd.f32 1e-05, %v2182_v1  ;;  %v3300_v1 = vld [vmem:[%s4861_s7] ss:$0 sm:$0xff]  ;;  %s4868_s7 = sld [smem:[#allocation66_spill]] }
 0xe7b   : > { %3334 = vrsqrt.f32 %v2183_v30  ;;  %vm2190_vm1 = vweird.f32 %v2183_v30 }
 0xe81   : > { %v3335_v31 = vpop.eup %3334 }
 0xe82   : > { %v2185_v34 = vmul.f32 %v3335_v31, %v2183_v30  ;;  %vm2191_vm15 = vweird.f32 %v3335_v31 }
 0xe83   : > { %vm2192_vm2 = vmor %vm2190_vm1, %vm2191_vm15 }
 0xe84   : > { %v2186_v36 = vmul.f32 %v3335_v31, %v2185_v34 }
 0xe86   : > { %v2187_v37 = vmul.f32 0.5, %v2186_v36  ;;  %v3301_v36 = vld [vmem:[%s4862_s15] ss:$0 sm:$0xff]  ;;  %s1370_s15 = sand.u32 1, %s3952_s10  }
 0xe87   : > { %s2871_s9 = sshll.u32 %s1370_s15, 3  ;;  %s2558_s8 = scalar_lea.sflag [#allocation5], %s1370_s15 }
 0xe88   : > { %v2188_v35 = vsub.f32 1.5, %v2187_v37  ;;  %s1372_s2 = scalar_lea.vmem [#allocation30], %s2871_s9 }
 0xe89   : > { %s2570_s3 = sshll.u32 %s1372_s2, 4  ;;  %s2571_s3 = int_to_ptr.vmem [resolvable:$true] %s2570_s3 }
 0xe8a   : > { %v2189_v38 = vmul.f32 %v3335_v31, %v2188_v35  ;;  %v3302_v35 = vld [vmem:[%s4863_s6] ss:$0 sm:$0xff]  ;;  %s4869_s6 = smov %s4868_s7 }
 0xe8c   : > { %v2193_v40 = vsel %vm2192_vm2, %v3335_v31, %v2189_v38 }
 0xe8d   : > { %v2194_v41 = vmul.f32 %v2193_v40, %v2177_v23 }
 0xe8f   : > { %v2198_v43 = vmul.f32 %v3292_v39, %v2194_v41 }
 0xe91   : > { %v2202_v44 = vadd.f32 %v3293_v13, %v2198_v43 }
 0xe93   : > { %v2203_v45 = vpack.c.bf16 %v2202_v44, %v2202_v44 }
 0xe95   : > { %2955 = vmatmul.msk.bf16.vlgmr.msra.gmra.mxu3 %vm1381_vm0, %v2203_v45  ;;  %2964 = vmatmul.msk.bf16.vlgmr.msra.gmra.mxu1 %vm1381_vm0, %v2203_v45 }
 0xf12   : > { %v2269_v3 = vpop.f32.mrf.mxu1 }
 0xf13   : > { %v2270_v6 = vadd.f32 %v3294_v46, %v2269_v3 }
 0xf15   : > { %v2273_v47 = vsub.f32 0.0, %v2270_v6 }
 0xf17   : > { %v2274_v9 = vmul.f32 1.442695, %v2273_v47 }
 0xf18   : > { %v2236_v11 = vpop.f32.mrf.mxu3 }
 0xf19   : > { %3336 = vpow2.f32 %v2274_v9  ;;  %v2237_v4 = vadd.f32 %v3295_v59, %v2236_v11  ;;  %v3023_v59 = vld [vmem:[#allocation29 + $0x8] sm:$0xff] }
 0xf1a   : > { %v2271_v49 = vpop.f32.mrf.mxu1  ;;  %2474 = vmatpush.bf16.msrb.mxu2 %v3023_v59 }
 0xf1f   : > { %v3337_v32 = vpop.eup %3336 }
 0xf20   : > { %v2276_v51 = vadd.f32 1.0, %v3337_v32  ;;  %v2238_v52 = vpop.f32.mrf.mxu3 }
 0xf22   : > { %3338 = vrcp.f32 %v2276_v51  ;;  %v2288_v57 = vand.u32 2147483648, %v2276_v51  ;;  %v2286_v62 = vand.u32 2147483647, %v2276_v51  ;;  %vm2282_vm5 = vweird.f32 %v2276_v51 }
 0xf23   : > { %3340 = vrsqrt.f32 %v2329_v50 }
 0xf24   : > { %v2289_v0 = vor.u32 1.1754944e-38, %v2288_v57  ;;  %vm2287_vm7 = vcmp.eq.f32.partialorder %v2286_v62, 8.507059e+37 }
 0xf28   : > { %v3339_v53 = vpop.eup %3338 }
 0xf29   : > { %v3341_v54 = vpop.eup %3340  ;;  %v2278_v55 = vmul.f32 %v3339_v53, %v2276_v51  ;;  %vm2283_vm4 = vweird.f32 %v3339_v53 }
 0xf2a   : > { %v2331_v58 = vmul.f32 %v3341_v54, %v2329_v50  ;;  %vm2284_vm6 = vmor %vm2282_vm5, %vm2283_vm4  ;;  %vm2337_vm10 = vweird.f32 %v3341_v54 }
 0xf2b   : > { %v2279_v56 = vsub.f32 1.0, %v2278_v55  ;;  %vm2338_vm11 = vmor %vm2336_vm8, %vm2337_vm10 }
 0xf2c   : > { %v2332_v2 = vmul.f32 %v3341_v54, %v2331_v58 }
 0xf2d   : > { %v2280_v61 = vmul.f32 %v3339_v53, %v2279_v56 }
 0xf2e   : > { %v2333_v12 = vmul.f32 0.5, %v2332_v2 }
 0xf2f   : > { %v2281_v42 = vadd.f32 %v3339_v53, %v2280_v61  ;;  %v3022_v61 = vld [vmem:[#allocation29] sm:$0xff] }
 0xf30   : > { %v2334_v14 = vsub.f32 1.5, %v2333_v12  ;;  %2475 = vmatpush.bf16.msrb.mxu2 %v3022_v61  ;;  %v3304_v12 = vld [vmem:[%s4865_s4] ss:$0 sm:$0xff]  ;;  %s3001_s4 = sshll.u32 %s4239_s0, 3 }
 0xf31   : > { %v2285_v5 = vsel %vm2284_vm6, %v3339_v53, %v2281_v42 }
 0xf32   : > { %v2290_v7 = vsel %vm2287_vm7, %v2289_v0, %v2285_v5  ;;  %v2335_v23 = vmul.f32 %v3341_v54, %v2334_v14 }
 0xf33   : > { %v2292_v10 = vmul.f32 %v2290_v7, %v2237_v4 }
 0xf34   : > { %v2339_v28 = vsel %vm2338_vm11, %v3341_v54, %v2335_v23  ;;  %v3306_v23 = vld [vmem:[%s4201_s17] ss:$0 sm:$0xff] }
 0xf35   : > { %2296 = vst.msk [vmem:[#allocation2 + $0x1] sm:$0xff] %vm1381_vm0, %v2292_v10  ;;  %v2341_v31 = vperm.slane %v2339_v28, 0 }
 0xf3c   : > { %v2300_v20 = vld [vmem:[#allocation2] sm:$0xff] }
 0xf3d   : > { %v2306_v21 = vld [vmem:[#allocation2 + $0x1] sm:$0xff]  ;;  %v2304_v24 = vmul.f32 %v3296_v15, %v2300_v20 }
 0xf3e   : > { %v2312_v22 = vld [vmem:[#allocation2 + $0x2] sm:$0xff]  ;;  %v2310_v25 = vmul.f32 %v3297_v16, %v2306_v21  ;;  %v3027_v21 = vld [vmem:[%s4206_s24 + $0x18] sm:$0xff] }
 0xf3f   : > { %v2316_v27 = vmul.f32 %v3298_v19, %v2312_v22  ;;  %2545 = vmatpush.bf16.msrb.mxu3 %v3027_v21  ;;  %v3026_v22 = vld [vmem:[%s4206_s24 + $0x10] sm:$0xff] }
 0xf40   : > { %v2311_v26 = vadd.f32 %v2310_v25, %v2304_v24  ;;  %v3025_v24 = vld [vmem:[%s4206_s24 + $0x8] sm:$0xff] }
 0xf42   : > { %v2317_v29 = vadd.f32 %v2316_v27, %v2311_v26  ;;  %v3024_v27 = vld [vmem:[%s4206_s24] sm:$0xff] }
 0xf43   : > { %2546 = vmatpush.bf16.msrb.mxu3 %v3026_v22 }
 0xf44   : > { %v2322_v30 = vadd.f32 %v3299_v60, %v2317_v29 }
 0xf46   : > { %v2327_v34 = vsub.f32 %v2322_v30, %v3300_v1 }
 0xf47   : > { %2547 = vmatpush.bf16.msrb.mxu3 %v3025_v24 }
 0xf48   : > { %v2343_v37 = vmul.f32 %v2341_v31, %v2327_v34 }
 0xf4a   : > { %v2348_v38 = vmul.f32 %v3301_v36, %v2343_v37 }
 0xf4b   : > { %2548 = vmatpush.bf16.msrb.mxu3 %v3024_v27 }
 0xf4c   : > { %v2353_v39 = vadd.f32 %v3302_v35, %v2348_v38 }
 0xf4e   : > { %v2354_v40 = vsub.f32 0.0, %v2353_v39 }
 0xf50   : > { %v2355_v41 = vmul.f32 1.442695, %v2354_v40 }
 0xf52   : > { %3342 = vpow2.f32 %v2355_v41 }
 0xf58   : > { %v3343_v13 = vpop.eup %3342 }
 0xf59   : > { %v2357_v43 = vadd.f32 1.0, %v3343_v13 }
 0xf5b   : > { %3344 = vrcp.f32 %v2357_v43  ;;  %v2369_v3 = vand.u32 2147483648, %v2357_v43  ;;  %v2367_v47 = vand.u32 2147483647, %v2357_v43  ;;  %vm2363_vm13 = vweird.f32 %v2357_v43 }
 0xf5d   : > { %v2370_v48 = vor.u32 1.1754944e-38, %v2369_v3  ;;  %vm2368_vm15 = vcmp.eq.f32.partialorder %v2367_v47, 8.507059e+37 }
 0xf61   : > { %v3345_v44 = vpop.eup %3344 }
 0xf62   : > { %v2359_v45 = vmul.f32 %v3345_v44, %v2357_v43  ;;  %vm2364_vm12 = vweird.f32 %v3345_v44 }
 0xf63   : > { %vm2365_vm14 = vmor %vm2363_vm13, %vm2364_vm12 }
 0xf64   : > { %v2360_v46 = vsub.f32 1.0, %v2359_v45  ;;  %v3307_v45 = vld [vmem:[%s4867_s22] ss:$0 sm:$0xff] }
 0xf66   : > { %v2361_v6 = vmul.f32 %v3345_v44, %v2360_v46 }
 0xf68   : > { %v2362_v63 = vadd.f32 %v3345_v44, %v2361_v6 }
 0xf6a   : > { %v2366_v9 = vsel %vm2365_vm14, %v3345_v44, %v2362_v63 }
 0xf6b   : > { %v2371_v17 = vsel %vm2368_vm15, %v2370_v48, %v2366_v9 }
 0xf6c   : > { %v2373_v11 = vmul.f32 %v2371_v17, %v2353_v39 }
 0xf6e   : > { %v2374_v49 = vpack.c.bf16 %v2373_v11, %v2373_v11 }
 0xf70   : > { %2973 = vmatmul.msk.bf16.vlgmr.msrb.gmra.mxu0 %vm1381_vm0, %v2374_v49 }
 0xfed   : > { %v2407_v32 = vpop.f32.mrf.mxu0 }
 0xfee   : > { %v2408_v50 = vadd.f32 %v3303_v33, %v2407_v32 }
 0xff0   : > { %v4723_v51 = vadd.f32 %v2408_v50, %v4698_v18 }
 0xff2   : > { %v2414_v52 = vsel %vm1381_vm0, %v4723_v51, 0.0 }
 0xff3   : > { %2415 = vadd.xlane.f32.xlu2 %v2414_v52 }
 0xff5   : > { %v2409_v53 = vpop.f32.mrf.mxu0 }
0x1066   : > { %v2416_v54 = vpop.xlane.xlu2 %2415 }
0x1067   : > { %v2417_v55 = vmul.f32 %v2416_v54, %v4520_v8 }
0x1069   : > { %v2418_v56 = vsub.f32 %v4723_v51, %v2417_v55 }
0x106b   : > { %v2419_v57 = vmul.f32 %v2418_v56, %v2418_v56 }
0x106d   : > { %v2420_v58 = vsel %vm1381_vm0, %v2419_v57, 0.0 }
0x106e   : > { %2421 = vadd.xlane.f32.xlu0 %v2420_v58 }
0x10e1   : > { %v2422_v18 = vpop.xlane.xlu0 %2421 }
0x10e2   : > { %v2423_v62 = vmul.f32 %v2422_v18, %v4520_v8  ;;  %v3305_v8 = vld [vmem:[%s4866_s11] ss:$0 sm:$0xff]  ;;  %s2568_s11 = scalar_lea.hbm %s4868_s7, %s3001_s4  ;;  %s3882_s7 = scalar_lea.hbm %s4869_s6, 16 }
0x10e3   : > { %s2572_s5 = sshll.u32 %s2568_s11, 4  ;;  %s2573_s5 = int_to_ptr.hbm [resolvable:$true] %s2572_s5 }
0x10e4   : > { %v2424_v42 = vadd.f32 1e-05, %v2423_v62  ;;  %s3876_s0 = sshra.s32 %s2573_s5, 4  ;;  %s3877_s0 = int_to_ptr.hbm [resolvable:$true] %s3876_s0 }
0x10e5   : > { %s3878_s22 = scalar_lea.hbm %s3877_s0, 8  ;;  %p3883_p11 = scmp.lt.s32.totalorder %s3877_s0, %s4869_s6 }
0x10e6   : > { %3346 = vrsqrt.f32 %v2424_v42  ;;  %vm2431_vm2 = vweird.f32 %v2424_v42  ;;  %p3879_p9 = scmp.ne.s32.totalorder %s3877_s0, %s3878_s22  ;;  %p3884_p13 = scmp.lt.s32.totalorder %s3882_s7, %s3878_s22 }
0x10e8   : > { %p3880_p12 = pnand %p3879_p9, %p4256_p5  ;;  %p3885_p1 = por %p3884_p13, %p3883_p11 }
0x10ea   : > { %p3881_p0 = pneg %p3880_p12 }
0x10ec   : > { %v3347_v0 = vpop.eup %3346  ;;  %p3886_p2 = pnand %p3885_p1, %p3881_p0 }
0x10ed   : > { %v2426_v2 = vmul.f32 %v3347_v0, %v2424_v42  ;;  %vm2432_vm1 = vweird.f32 %v3347_v0 }
0x10ee   : > { %vm2433_vm3 = vmor %vm2431_vm2, %vm2432_vm1 }
0x10ef   : > { %v2427_v4 = vmul.f32 %v3347_v0, %v2426_v2 }
0x10f1   : > { %v2428_v5 = vmul.f32 0.5, %v2427_v4 }
0x10f3   : > { %v2429_v7 = vsub.f32 1.5, %v2428_v5 }
0x10f5   : > { %v2430_v10 = vmul.f32 %v3347_v0, %v2429_v7 }
0x10f7   : > { %v2434_v14 = vsel %vm2433_vm3, %v3347_v0, %v2430_v10 }
0x10f8   : > { %v2435_v15 = vmul.f32 %v2434_v14, %v2418_v56 }
0x10fa   : > { %v2439_v16 = vmul.f32 %v3304_v12, %v2435_v15 }
0x10fc   : > { %v2443_v19 = vadd.f32 %v3305_v8, %v2439_v16 }
0x10fe   : > { %v2444_v20 = vpack.c.bf16 %v2443_v19, %v2443_v19 }
0x1100   : > { %2982 = vmatmul.msk.bf16.vlgmr.msrb.gmra.mxu2 %vm1381_vm0, %v2444_v20 }
0x1183   : > { %v2477_v25 = vpop.f32.mrf.mxu2 }
0x1184   : > { %v2478_v26 = vadd.f32 %v3306_v23, %v2477_v25 }
0x1186   : > { %v2481_v60 = vsub.f32 0.0, %v2478_v26 }
0x1188   : > { %v2482_v28 = vmul.f32 1.442695, %v2481_v60 }
0x118a   : > { %3348 = vpow2.f32 %v2482_v28 }
0x118b   : > { %v2479_v29 = vpop.f32.mrf.mxu2 }
0x1190   : > { %v3349_v1 = vpop.eup %3348 }
0x1191   : > { %v2484_v30 = vadd.f32 1.0, %v3349_v1 }
0x1193   : > { %3350 = vrcp.f32 %v2484_v30  ;;  %v2496_v37 = vand.u32 2147483648, %v2484_v30  ;;  %v2494_v38 = vand.u32 2147483647, %v2484_v30  ;;  %vm2490_vm5 = vweird.f32 %v2484_v30 }
0x1195   : > { %v2497_v40 = vor.u32 1.1754944e-38, %v2496_v37  ;;  %vm2495_vm7 = vcmp.eq.f32.partialorder %v2494_v38, 8.507059e+37 }
0x1199   : > { %v3351_v31 = vpop.eup %3350 }
0x119a   : > { %v2486_v34 = vmul.f32 %v3351_v31, %v2484_v30  ;;  %vm2491_vm4 = vweird.f32 %v3351_v31 }
0x119b   : > { %vm2492_vm6 = vmor %vm2490_vm5, %vm2491_vm4 }
0x119c   : > { %v2487_v36 = vsub.f32 1.0, %v2486_v34 }
0x119e   : > { %v2488_v35 = vmul.f32 %v3351_v31, %v2487_v36 }
0x11a0   : > { %v2489_v39 = vadd.f32 %v3351_v31, %v2488_v35 }
0x11a2   : > { %v2493_v41 = vsel %vm2492_vm6, %v3351_v31, %v2489_v39 }
0x11a3   : > { %v2498_v13 = vsel %vm2495_vm7, %v2497_v40, %v2493_v41 }
0x11a4   : > { %v2500_v43 = vmul.f32 %v2498_v13, %v2478_v26 }
0x11a6   : > { %v2501_v44 = vpack.c.bf16 %v2500_v43, %v2500_v43 }
0x11a8   : > { %2999 = vmatmul.msk.bf16.vlgmr.msrb.gmra.mxu3 %vm1513_vm9, %v2501_v44 }
0x122b   : > { %v2550_v46 = vpop.f32.mrf.mxu3 }
0x122c   : > { %v2551_v3 = vadd.f32 %v3307_v45, %v2550_v46 }
0x122e   : > { %v2554_v6 = vmul.f32 0.5, %v2551_v3 }
0x1230   : > { %v2555_v47 = vadd.f32 %v2554_v6, %v4723_v51 }
0x1232   : > { %2556 = vst.msk [vmem:[%s1372_s2] sm:$0xff] %vm1381_vm0, %v2555_v47 }
0x1233   : > { %v2552_v63 = vpop.f32.mrf.mxu3 }
0x1234   : > { %3889 = shalt.err (!%p3886_p2)
}
0x1235   : > { %3096 = dma.vmem_to_hbm [thread:$0]  (%p4256_p5), %s2571_s3, 128, %s2573_s5, %s2558_s8  }
0x1236 PF: > { %s4871_s2 = sld [smem:[#allocation69_spill]] }
0x1237   : > { %s4872_s9 = sld [smem:[#allocation67_spill]] }
0x123c   : > { %p3188_p3 = scmp.ge.s32.totalorder %s4871_s2, 2 }
0x123d   : > { %s2584_s4 = sand.u32 1, %s4872_s9  }
0x123e   : > { %p3151_p4 = pnand %p3188_p3, %p4260_p6  ;;  %s2585_s11 = scalar_lea.sflag [#allocation5], %s2584_s4 }
0x1240   : > { %p3152_p7 = pneg %p3151_p4 }
0x1242   : > { %3943 = dma.done.wait (%p3152_p7), %s2585_s11, 128  }
0x1243   : > { %3945 = vsyncadd (%p3152_p7), %s2585_s11, 4294967168  ;;  %s4874_s15 = sld [smem:[#allocation70_spill]]  ;;  %s4877_s7 = smov %s3952_s10 }
0x1244   : > { %s4875_s0 = sld [smem:[#allocation68_spill]] }
0x1245   : > { %s4876_s11 = sld [smem:[#allocation71_spill]] }
0x1249   : > { %p94_p8 = scmp.ge.s32.totalorder %s4874_s15, 4  }
0x124a   : > { %s4878_s10 = smov %s4875_s0 }
0x124b   :  { %96 = sbr.rel (!%p94_p8) target bundleno = 82 (0x52), region = 309 }
0x1250   :  { %2591 = vsyncpa [#allocation4], 1 }
0x1251   :  { %2593 = vsyncpa [#allocation4 + $0x1], 1 }
0x1252   :  { %2594 = vsyncpa [#allocation7], 1 }
0x1253   :  { %2595 = vsyncpa [#allocation10], 1 }
0x1254   :  { %2596 = vsyncpa [#allocation13], 1 }
0x1255   :  { %2597 = vsyncpa [#allocation16], 1 }
0x1256   :  { %2598 = vsyncpa [#allocation19], 1 }
0x1257   :  { %2599 = vsyncpa [#allocation22], 1 }
0x1258   :  { %2600 = vsyncpa [#allocation25], 1 }
0x1259   :  { %2601 = vsyncpa [#allocation28], 1 }
0x125a   :  { %2602 = vsyncpa [#allocation5], 1 }
0x125b   :  { %2604 = vsyncpa [#allocation5 + $0x1], 1 }

// kernel: tpu_custom_call.1
= control target key start
LH: loop header
LB: loop body
LE: loop exit
PB: predicated region body
PF: predicated region fallthrough
CT: control target
= control target key end

     0   :  { %s3962_s6 = smov 1   ;;  %s3963_s10 = smov 2   ;;  %s4769_s0 = inlined_call_operand.smem [shape: u32[38], index: -1, kind: input, shape index: {}] }
   0x1   :  { %s4031_s5 = sld [smem:[%s4769_s0]]   ;;  %s3964_s14 = smov 3  }
   0x2   :  { %s4036_s9 = sld [smem:[%s4769_s0 + %s3962_s6]]   ;;  %s3965_s18 = smov 4  }
   0x3   :  { %s4041_s13 = sld [smem:[%s4769_s0 + %s3963_s10]]   ;;  %s3966_s22 = smov 5  }
   0x4   :  { %s4046_s17 = sld [smem:[%s4769_s0 + %s3964_s14]]   ;;  %s3967_s26 = smov 6  }
   0x5   :  { %s4051_s21 = sld [smem:[%s4769_s0 + %s3965_s18]]   ;;  %s3968_s30 = smov 7  }
   0x6   :  { %s4056_s25 = sld [smem:[%s4769_s0 + %s3966_s22]]   ;;  %s3969_s4 = smov 8  }
   0x7   :  { %4802 = sst [smem:[#allocation41_spill]] %s4031_s5  ;;  %s3970_s10 = smov 9  }
   0x8   :  { %4803 = sst [smem:[#allocation42_spill]] %s4036_s9  ;;  %s3971_s15 = smov 10  }
   0x9   :  { %s4061_s29 = sld [smem:[%s4769_s0 + %s3967_s26]]   ;;  %s3972_s20 = smov 11  }
   0xa   :  { %4804 = sst [smem:[#allocation43_spill]] %s4046_s17  ;;  %s3973_s26 = smov 12  }
   0xb   :  { %s4066_s3 = sld [smem:[%s4769_s0 + %s3968_s30]]   ;;  %s3974_s1 = smov 13  }
   0xc   :  { %4805 = sst [smem:[#allocation44_spill]] %s4056_s25  ;;  %s3975_s7 = smov 14  }
   0xd   :  { %s4071_s8 = sld [smem:[%s4769_s0 + %s3969_s4]]   ;;  %s3977_s22 = smov 16  }
   0xe   :  { %s4076_s14 = sld [smem:[%s4769_s0 + %s3970_s10]]   ;;  %s3978_s28 = smov 17  }
   0xf   :  { %s4081_s19 = sld [smem:[%s4769_s0 + %s3971_s15]]   ;;  %s3976_s15 = smov 15  }
  0x10   :  { %s4086_s24 = sld [smem:[%s4769_s0 + %s3972_s20]]  }
  0x11   :  { %4806 = sst [smem:[#allocation45_spill]] %s4066_s3 }
  0x12   :  { %s4091_s30 = sld [smem:[%s4769_s0 + %s3973_s26]]  }
  0x13   :  { %4807 = sst [smem:[#allocation46_spill]] %s4071_s8 }
  0x14   :  { %4808 = sst [smem:[#allocation47_spill]] %s4076_s14 }
  0x15   :  { %s4096_s6 = sld [smem:[%s4769_s0 + %s3974_s1]]  }
  0x16   :  { %4809 = sst [smem:[#allocation48_spill]] %s4086_s24 }
  0x17   :  { %s4101_s12 = sld [smem:[%s4769_s0 + %s3975_s7]]   ;;  %s3979_s7 = smov 18  }
  0x18   :  { %s4106_s20 = sld [smem:[%s4769_s0 + %s3976_s15]]   ;;  %s3980_s15 = smov 19  }
  0x19   :  { %s4111_s27 = sld [smem:[%s4769_s0 + %s3977_s22]]   ;;  %s3981_s22 = smov 20  }
  0x1a   :  { %s4116_s4 = sld [smem:[%s4769_s0 + %s3978_s28]]   ;;  %s3982_s28 = smov 21  }
  0x1b   :  { %4810 = sst [smem:[#allocation49_spill]] %s4096_s6 }
  0x1c   :  { %s4121_s6 = sld [smem:[%s4769_s0 + %s3979_s7]]   ;;  %s3983_s7 = smov 22  }
  0x1d   :  { %s4126_s24 = sld [smem:[%s4769_s0 + %s3980_s15]]   ;;  %s3984_s15 = smov 23  }
  0x1e   :  { %s4131_s14 = sld [smem:[%s4769_s0 + %s3981_s22]]   ;;  %s3985_s22 = smov 24  }
  0x1f   :  { %s4136_s25 = sld [smem:[%s4769_s0 + %s3982_s28]]   ;;  %s3986_s28 = smov 25  }
  0x20   :  { %4811 = sst [smem:[#allocation50_spill]] %s4116_s4 }
  0x21   :  { %s4141_s17 = sld [smem:[%s4769_s0 + %s3983_s7]]   ;;  %s3987_s7 = smov 26  }
  0x22   :  { %4812 = sst [smem:[#allocation51_spill]] %s4121_s6 }
  0x23   :  { %4813 = sst [smem:[#allocation52_spill]] %s4126_s24 }
  0x24   :  { %s4146_s24 = sld [smem:[%s4769_s0 + %s3984_s15]]   ;;  %s3988_s15 = smov 27  }
  0x25   :  { %4814 = sst [smem:[#allocation53_spill]] %s4136_s25 }
  0x26   :  { %s4151_s5 = sld [smem:[%s4769_s0 + %s3985_s22]]   ;;  %s3989_s22 = smov 28  }
  0x27   :  { %4815 = sst [smem:[#allocation54_spill]] %s4141_s17 }
  0x28   :  { %s4156_s25 = sld [smem:[%s4769_s0 + %s3986_s28]]   ;;  %s3990_s28 = smov 29  }
  0x29   :  { %s4161_s17 = sld [smem:[%s4769_s0 + %s3987_s7]]   ;;  %s3991_s7 = smov 30  }
  0x2a   :  { %4816 = sst [smem:[#allocation55_spill]] %s4146_s24 }
  0x2b   :  { %s4166_s24 = sld [smem:[%s4769_s0 + %s3988_s15]]   ;;  %s3992_s15 = smov 31  }
  0x2c   :  { %4817 = sst [smem:[#allocation56_spill]] %s4151_s5 }
  0x2d   :  { %s4171_s5 = sld [smem:[%s4769_s0 + %s3989_s22]]   ;;  %s3993_s22 = smov 32  }
  0x2e   :  { %4818 = sst [smem:[#allocation57_spill]] %s4156_s25 }
  0x2f   :  { %4819 = sst [smem:[#allocation58_spill]] %s4161_s17 }
  0x30   :  { %s4176_s25 = sld [smem:[%s4769_s0 + %s3990_s28]]   ;;  %s3994_s28 = smov 33  }
  0x31   :  { %4820 = sst [smem:[#allocation59_spill]] %s4166_s24 }
  0x32   :  { %s4181_s17 = sld [smem:[%s4769_s0 + %s3991_s7]]   ;;  %s3995_s7 = smov 34  }
  0x33   :  { %4821 = sst [smem:[#allocation60_spill]] %s4171_s5 }
  0x34   :  { %s4186_s24 = sld [smem:[%s4769_s0 + %s3992_s15]]   ;;  %s3996_s15 = smov 35  }
  0x35   :  { %s4191_s5 = sld [smem:[%s4769_s0 + %s3993_s22]]   ;;  %s3997_s22 = smov 36  }
  0x36   :  { %s4196_s6 = sld [smem:[%s4769_s0 + %s3994_s28]]   ;;  %s3998_s28 = smov 37  }
  0x38   :  { %4822 = sst [smem:[#allocation61_spill]] %s4181_s17 }
  0x39   :  { %s4201_s17 = sld [smem:[%s4769_s0 + %s3995_s7]]  }
  0x3a   :  { %4823 = sst [smem:[#allocation62_spill]] %s4186_s24 }
  0x3b   :  { %4824 = sst [smem:[#allocation63_spill]] %s4191_s5 }
  0x3c   :  { %4825 = sst [smem:[#allocation64_spill]] %s4196_s6 }
  0x3d   :  { %s4206_s24 = sld [smem:[%s4769_s0 + %s3996_s15]]  }
  0x3e   :  { %s4211_s5 = sld [smem:[%s4769_s0 + %s3997_s22]]  }
  0x3f   :  { %s4216_s6 = sld [smem:[%s4769_s0 + %s3998_s28]]  }
  0x44   :  { %4826 = sst [smem:[#allocation65_spill]] %s4211_s5 }
  0x45   :  { %4827 = sst [smem:[#allocation66_spill]] %s4216_s6 }
  0x46   :  { %80 = vsyncpa [#allocation4], 0 }
  0x47   :  { %81 = vsyncpa [#allocation7], 0 }
  0x48   :  { %82 = vsyncpa [#allocation10], 0 }
  0x49   :  { %83 = vsyncpa [#allocation13], 0 }
  0x4a   :  { %84 = vsyncpa [#allocation16], 0 }
  0x4b   :  { %85 = vsyncpa [#allocation19], 0 }
  0x4c   :  { %86 = vsyncpa [#allocation22], 0 }
  0x4d   :  { %87 = vsyncpa [#allocation25], 0 }
  0x4e   :  { %88 = vsyncpa [#allocation28], 0 }
  0x4f   :  { %89 = vsyncpa [#allocation5], 0 }
  0x50   :  { %91 = vsyncpa [#allocation5 + $0x1], 0  ;;  %s4218_s7 = smov 0   ;;  %s4220_s10 = smov 0  }
  0x51   :  { %s4222_s11 = smov 0   ;;  %s4224_s15 = smov 0  }
  0x52 LB: > { %s4828_s9 = sld [smem:[#allocation42_spill]]  ;;  %s4239_s0 = sadd.s32 4294967295, %s3960_s15   ;;  %s3960_s15 = sphi %s4224_s15, %s4874_s15   ;;  %s3956_s11 = sphi %s4222_s11, %s4876_s11   ;;  %s3952_s10 = sphi %s4220_s10, %s4878_s10   ;;  %s3948_s7 = sphi %s4218_s7, %s4877_s7  }
  0x53   : > { %s4829_s4 = sld [smem:[#allocation50_spill]]  ;;  %s2833_s16 = sadd.s32 4294967294, %s3960_s15  }
  0x54   : > { %s4830_s3 = sld [smem:[#allocation45_spill]]  ;;  %s4243_s18 = sadd.s32 1, %s3960_s15  }
  0x55   : > { %s4831_s8 = sld [smem:[#allocation46_spill]]  ;;  %s886_s22 = sadd.s32 1, %s3956_s11 }
  0x56   : > { %4832 = sst [smem:[#allocation67_spill]] %s3948_s7  ;;  %s883_s23 = ssub.s32 %s3960_s15, %s4243_s18 }
  0x57   : > { %4833 = sst [smem:[#allocation68_spill]] %s3956_s11  ;;  %p896_p0 = scmp.ne.s32.totalorder %s3956_s11, %s3952_s10 }
  0x58   : > { %4834 = sst [smem:[#allocation69_spill]] %s3960_s15  ;;  %p884_p1 = scmp.eq.s32.totalorder %s883_s23, 0 }
  0x59   : > { %4835 = sst [smem:[#allocation70_spill]] %s4243_s18  ;;  %p897_p2 = scmp.eq.s32.totalorder %s4239_s0, 1 }
  0x5a   : > { %p902_p3 = scmp.ne.s32.totalorder %s3952_s10, %s3948_s7  ;;  %p903_p4 = scmp.eq.s32.totalorder %s2833_s16, 1 }
  0x5b   : > { %s4254_s26 = scalar_select %p884_p1, %s3956_s11, %s886_s22  }
  0x5c   : > { %p4256_p5 = por %p897_p2, %p896_p0  ;;  %p4260_p6 = por %p903_p4, %p902_p3 }
  0x5d   : > { %4836 = sst [smem:[#allocation71_spill]] %s4254_s26  ;;  %p2834_p7 = scmp.ge.s32.totalorder %s3960_s15, 1 }
  0x5e   : > { %s4837_s28 = scalar_select %p4256_p5, 1, 0 }
  0x5f   : > { %s4839_s1 = scalar_select %p4260_p6, 1, 0 }
  0x60   : > { %4838 = sst [smem:[#allocation72_spill]] %s4837_s28  ;;  %p910_p8 = scmp.lt.s32.totalorder %s3960_s15, 3 }
  0x61   : > { %4840 = sst [smem:[#allocation73_spill]] %s4839_s1  ;;  %p3154_p9 = scmp.eq.s32.totalorder %s4239_s0, 0 }
  0x62   : > { %p4267_p10 = pnand %p2834_p7, %p910_p8  ;;  %s934_s16 = sshll.u32 %s4041_s13, 4  ;;  %s935_s16 = int_to_ptr.hbm [resolvable:$true] %s934_s16 }
  0x63   : > { %s3999_s22 = smov [#allocation6]   ;;  %s964_s26 = sshll.u32 %s4061_s29, 4  ;;  %s4281_s26 = int_to_ptr.hbm [resolvable:$true] %s964_s26 }
  0x64   : > { %p3098_p11 = pneg %p4267_p10  ;;  %s936_s23 = sshll.u32 %s3999_s22, 4  ;;  %s937_s23 = int_to_ptr.vmem [resolvable:$true] %s936_s23 }
  0x65   : > { %s988_s18 = sshll.u32 %s4831_s8, 4  ;;  %s4000_s1 = smov [#allocation9]   ;;  %s4299_s18 = int_to_ptr.hbm [resolvable:$true] %s988_s18 }
  0x66   : > { %p4277_p12 = pnand %p3154_p9, %p3098_p11  ;;  %s4284_s7 = sshll.u32 %s4000_s1, 4  ;;  %s967_s7 = int_to_ptr.vmem [resolvable:$true] %s4284_s7 }
  0x67   : > { %s3352_s15 = sshra.s32 %s935_s16, 4  ;;  %s3359_s6 = scalar_lea.hbm %s4041_s13, 1  ;;  %s3353_s15 = int_to_ptr.hbm [resolvable:$true] %s3352_s15 }
  0x68   : > { %s3354_s28 = scalar_lea.hbm %s3353_s15, 1  ;;  %p4288_p0 = pneg %p4277_p12 }
  0x69   : > { %p3355_p13 = scmp.ne.s32.totalorder %s3353_s15, %s3354_s28  ;;  %p3360_p3 = scmp.lt.s32.totalorder %s3353_s15, %s4041_s13 }
  0x6a   : > { %p3361_p4 = scmp.lt.s32.totalorder %s3359_s6, %s3354_s28 }
  0x6b   : > { %p3357_p1 = pnand %p4288_p0, %p3355_p13 }
  0x6c   : > { %p3362_p7 = por %p3361_p4, %p3360_p3 }
  0x6d   : > { %p3358_p2 = pneg %p3357_p1 }
  0x6f   : > { %p3363_p8 = pnand %p3362_p7, %p3358_p2 }
  0x71   : > { %3366 = shalt.err (!%p3363_p8)
}
  0x72   : > { %3104 = dma.hbm_to_vmem [thread:$0]  (!%p4277_p12), %s935_s16, 16, %s937_s23, [#allocation7]  }
  0x73   : > { %s3382_s1 = sshra.s32 %s4281_s26, 4  ;;  %s3389_s6 = scalar_lea.hbm %s4061_s29, 1  ;;  %s3383_s1 = int_to_ptr.hbm [resolvable:$true] %s3382_s1 }
  0x74   : > { %s3384_s5 = scalar_lea.hbm %s3383_s1, 1  ;;  %p3390_p2 = scmp.lt.s32.totalorder %s3383_s1, %s4061_s29 }
  0x75   : > { %p3385_p11 = scmp.ne.s32.totalorder %s3383_s1, %s3384_s5  ;;  %p3391_p3 = scmp.lt.s32.totalorder %s3389_s6, %s3384_s5 }
  0x77   : > { %p3387_p13 = pnand %p3385_p11, %p4288_p0  ;;  %p3392_p4 = por %p3391_p3, %p3390_p2 }
  0x79   : > { %p3388_p1 = pneg %p3387_p13 }
  0x7b   : > { %p3393_p7 = pnand %p3392_p4, %p3388_p1 }
  0x7d   : > { %3396 = shalt.err (!%p3393_p7)
}
  0x7e   : > { %3110 = dma.hbm_to_vmem [thread:$0]  (!%p4277_p12), %s4281_s26, 16, %s967_s7, [#allocation10]  }
  0x7f   : > { %s1018_s15 = sshll.u32 %s4091_s30, 4  ;;  %s4001_s28 = smov [#allocation12]   ;;  %s4310_s15 = int_to_ptr.hbm [resolvable:$true] %s1018_s15 }
  0x80   : > { %s990_s16 = sshll.u32 %s4001_s28, 4  ;;  %s3412_s23 = sshra.s32 %s4299_s18, 4  ;;  %s991_s16 = int_to_ptr.vmem [resolvable:$true] %s990_s16  ;;  %s3413_s23 = int_to_ptr.hbm [resolvable:$true] %s3412_s23 }
  0x81   : > { %s3414_s5 = scalar_lea.hbm %s3413_s23, 1  ;;  %s3419_s1 = scalar_lea.hbm %s4831_s8, 1 }
  0x82   : > { %p3415_p8 = scmp.ne.s32.totalorder %s3413_s23, %s3414_s5  ;;  %p3420_p1 = scmp.lt.s32.totalorder %s3413_s23, %s4831_s8 }
  0x83   : > { %p3421_p2 = scmp.lt.s32.totalorder %s3419_s1, %s3414_s5 }
  0x84   : > { %p3417_p11 = pnand %p3415_p8, %p4288_p0 }
  0x85   : > { %p3422_p3 = por %p3421_p2, %p3420_p1 }
  0x86   : > { %p3418_p13 = pneg %p3417_p11 }
  0x88   : > { %p3423_p4 = pnand %p3422_p3, %p3418_p13 }
  0x8a   : > { %3426 = shalt.err (!%p3423_p4)
}
  0x8b   : > { %3116 = dma.hbm_to_vmem [thread:$0]  (!%p4277_p12), %s4299_s18, 16, %s991_s16, [#allocation13]  }
  0x8c   : > { %s4002_s7 = smov [#allocation15]   ;;  %s1044_s6 = sshll.u32 %s4106_s20, 4  ;;  %s4321_s6 = int_to_ptr.hbm [resolvable:$true] %s1044_s6 }
  0x8d   : > { %s1020_s26 = sshll.u32 %s4002_s7, 4  ;;  %s3442_s28 = sshra.s32 %s4310_s15, 4  ;;  %s1021_s26 = int_to_ptr.vmem [resolvable:$true] %s1020_s26  ;;  %s3443_s28 = int_to_ptr.hbm [resolvable:$true] %s3442_s28 }
  0x8e   : > { %s3444_s23 = scalar_lea.hbm %s3443_s28, 1  ;;  %s3449_s5 = scalar_lea.hbm %s4091_s30, 1 }
  0x8f   : > { %p3445_p7 = scmp.ne.s32.totalorder %s3443_s28, %s3444_s23  ;;  %p3450_p13 = scmp.lt.s32.totalorder %s3443_s28, %s4091_s30 }
  0x90   : > { %p3451_p1 = scmp.lt.s32.totalorder %s3449_s5, %s3444_s23 }
  0x91   : > { %p3447_p8 = pnand %p3445_p7, %p4288_p0 }
  0x92   : > { %p3452_p2 = por %p3451_p1, %p3450_p13 }
  0x93   : > { %p3448_p11 = pneg %p3447_p8 }
  0x95   : > { %p3453_p3 = pnand %p3452_p2, %p3448_p11 }
  0x97   : > { %3456 = shalt.err (!%p3453_p3)
}
  0x98   : > { %3122 = dma.hbm_to_vmem [thread:$0]  (!%p4277_p12), %s4310_s15, 16, %s1021_s26, [#allocation16]  }
  0x99   : > { %s4003_s18 = smov [#allocation18]   ;;  %s1071_s1 = sshll.u32 %s4829_s4, 4  ;;  %s1072_s1 = int_to_ptr.hbm [resolvable:$true] %s1071_s1 }
  0x9a   : > { %s1046_s16 = sshll.u32 %s4003_s18, 4  ;;  %s3472_s7 = sshra.s32 %s4321_s6, 4  ;;  %s1047_s16 = int_to_ptr.vmem [resolvable:$true] %s1046_s16  ;;  %s3473_s7 = int_to_ptr.hbm [resolvable:$true] %s3472_s7 }
  0x9b   : > { %s3474_s28 = scalar_lea.hbm %s3473_s7, 16  ;;  %s3479_s23 = scalar_lea.hbm %s4106_s20, 16 }
  0x9c   : > { %p3475_p4 = scmp.ne.s32.totalorder %s3473_s7, %s3474_s28  ;;  %p3480_p11 = scmp.lt.s32.totalorder %s3473_s7, %s4106_s20 }
  0x9d   : > { %p3481_p13 = scmp.lt.s32.totalorder %s3479_s23, %s3474_s28 }
  0x9e   : > { %p3477_p7 = pnand %p3475_p4, %p4288_p0 }
  0x9f   : > { %p3482_p1 = por %p3481_p13, %p3480_p11 }
  0xa0   : > { %p3478_p8 = pneg %p3477_p7 }
  0xa2   : > { %p3483_p2 = pnand %p3482_p1, %p3478_p8 }
  0xa4   : > { %3486 = shalt.err (!%p3483_p2)
}
  0xa5   : > { %s4790_s5 = smov 64   ;;  %s4792_s15 = smov 4  }
  0xa6   : > { %3128 = dma.hbm_to_vmem [thread:$0]  (!%p4277_p12), %s4321_s6, 256, %s1047_s16, [#allocation19], %s4790_s5, %s4790_s5, %s4792_s15  }
  0xa7   : > { %s4006_s26 = smov [#allocation21]   ;;  %s1098_s7 = sshll.u32 %s4131_s14, 4  ;;  %s4344_s7 = int_to_ptr.hbm [resolvable:$true] %s1098_s7 }
  0xa8   : > { %s1073_s18 = sshll.u32 %s4006_s26, 4  ;;  %s3502_s28 = sshra.s32 %s1072_s1, 4  ;;  %s1074_s18 = int_to_ptr.vmem [resolvable:$true] %s1073_s18  ;;  %s3503_s28 = int_to_ptr.hbm [resolvable:$true] %s3502_s28 }
  0xa9   : > { %s3504_s23 = scalar_lea.hbm %s3503_s28, 1  ;;  %s3509_s8 = scalar_lea.hbm %s4829_s4, 1 }
  0xaa   : > { %p3505_p3 = scmp.ne.s32.totalorder %s3503_s28, %s3504_s23  ;;  %p3510_p8 = scmp.lt.s32.totalorder %s3503_s28, %s4829_s4 }
  0xab   : > { %p3511_p11 = scmp.lt.s32.totalorder %s3509_s8, %s3504_s23 }
  0xac   : > { %p3507_p4 = pnand %p3505_p3, %p4288_p0 }
  0xad   : > { %p3512_p13 = por %p3511_p11, %p3510_p8 }
  0xae   : > { %p3508_p7 = pneg %p3507_p4 }
  0xb0   : > { %p3513_p1 = pnand %p3512_p13, %p3508_p7 }
  0xb2   : > { %3516 = shalt.err (!%p3513_p1)
}
  0xb3   : > { %3134 = dma.hbm_to_vmem [thread:$0]  (!%p4277_p12), %s1072_s1, 16, %s1074_s18, [#allocation22]  }
  0xb4   : > { %s1144_s6 = sshll.u32 %s4176_s25, 4  ;;  %s4007_s16 = smov [#allocation24]   ;;  %s4353_s6 = int_to_ptr.hbm [resolvable:$true] %s1144_s6 }
  0xb5   : > { %s1100_s26 = sshll.u32 %s4007_s16, 4  ;;  %s3532_s5 = sshra.s32 %s4344_s7, 4  ;;  %s1101_s26 = int_to_ptr.vmem [resolvable:$true] %s1100_s26  ;;  %s3533_s5 = int_to_ptr.hbm [resolvable:$true] %s3532_s5 }
  0xb6   : > { %s3534_s8 = scalar_lea.hbm %s3533_s5, 1  ;;  %s3539_s28 = scalar_lea.hbm %s4131_s14, 1 }
  0xb7   : > { %p3535_p2 = scmp.ne.s32.totalorder %s3533_s5, %s3534_s8  ;;  %p3540_p7 = scmp.lt.s32.totalorder %s3533_s5, %s4131_s14 }
  0xb8   : > { %p3541_p8 = scmp.lt.s32.totalorder %s3539_s28, %s3534_s8 }
  0xb9   : > { %p3537_p3 = pnand %p3535_p2, %p4288_p0 }
  0xba   : > { %p3542_p11 = por %p3541_p8, %p3540_p7 }
  0xbb   : > { %p3538_p4 = pneg %p3537_p3 }
  0xbd   : > { %p3543_p13 = pnand %p3542_p11, %p3538_p4 }
  0xbf   : > { %3546 = shalt.err (!%p3543_p13)
}
  0xc0   : > { %3140 = dma.hbm_to_vmem [thread:$0]  (!%p4277_p12), %s4344_s7, 16, %s1101_s26, [#allocation25]  }
  0xc1   : > { %s4008_s1 = smov [#allocation27]   ;;  %s922_s23 = sshll.u32 %s4828_s9, 4  ;;  %s4364_s23 = int_to_ptr.hbm [resolvable:$true] %s922_s23 }
  0xc2   : > { %s1146_s18 = sshll.u32 %s4008_s1, 4  ;;  %s3562_s5 = sshra.s32 %s4353_s6, 4  ;;  %s1147_s18 = int_to_ptr.vmem [resolvable:$true] %s1146_s18  ;;  %s3563_s5 = int_to_ptr.hbm [resolvable:$true] %s3562_s5 }
  0xc3   : > { %s3564_s16 = scalar_lea.hbm %s3563_s5, 16  ;;  %s3569_s8 = scalar_lea.hbm %s4176_s25, 16 }
  0xc4   : > { %p3565_p1 = scmp.ne.s32.totalorder %s3563_s5, %s3564_s16  ;;  %p3570_p4 = scmp.lt.s32.totalorder %s3563_s5, %s4176_s25 }
  0xc5   : > { %p3571_p7 = scmp.lt.s32.totalorder %s3569_s8, %s3564_s16 }
  0xc6   : > { %p3567_p2 = pnand %p3565_p1, %p4288_p0 }
  0xc7   : > { %p3572_p8 = por %p3571_p7, %p3570_p4 }
  0xc8   : > { %p3568_p3 = pneg %p3567_p2 }
  0xca   : > { %p3573_p11 = pnand %p3572_p8, %p3568_p3 }
  0xcc   : > { %3576 = shalt.err (!%p3573_p11)
}
  0xcd   : > { %s4844_s7 = smov 64   ;;  %s949_s26 = sshll.u32 %s4051_s21, 4  ;;  %s4378_s26 = int_to_ptr.hbm [resolvable:$true] %s949_s26 }
  0xce   : > { %3146 = dma.hbm_to_vmem [thread:$0]  (!%p4277_p12), %s4353_s6, 256, %s1147_s18, [#allocation28], %s4844_s7, %s4844_s7, %s4792_s15  }
  0xcf   : > { %s4009_s28 = smov [#allocation3]   ;;  %s3592_s5 = sshra.s32 %s4364_s23, 4  ;;  %s3593_s5 = int_to_ptr.hbm [resolvable:$true] %s3592_s5 }
  0xd0   : > { %s924_s1 = sshll.u32 %s4009_s28, 4  ;;  %s3594_s16 = scalar_lea.hbm %s3593_s5, 1  ;;  %s925_s1 = int_to_ptr.vmem [resolvable:$true] %s924_s1 }
  0xd1   : > { %p3595_p13 = scmp.ne.s32.totalorder %s3593_s5, %s3594_s16  ;;  %s3599_s8 = scalar_lea.hbm %s4828_s9, 1 }
  0xd2   : > { %p3600_p3 = scmp.lt.s32.totalorder %s3593_s5, %s4828_s9  ;;  %p3601_p4 = scmp.lt.s32.totalorder %s3599_s8, %s3594_s16 }
  0xd3   : > { %p3597_p1 = pnand %p3595_p13, %p4288_p0 }
  0xd4   : > { %p3602_p7 = por %p3601_p4, %p3600_p3 }
  0xd5   : > { %p3598_p2 = pneg %p3597_p1 }
  0xd7   : > { %p3603_p8 = pnand %p3602_p7, %p3598_p2 }
  0xd9   : > { %3606 = shalt.err (!%p3603_p8)
}
  0xda   : > { %3101 = dma.hbm_to_vmem [thread:$0]  (!%p4277_p12), %s4364_s23, 16, %s925_s1, [#allocation4]  }
  0xdb   : > { %s4010_s6 = smov [#allocation8]   ;;  %s976_s28 = sshll.u32 %s4830_s3, 4  ;;  %s4389_s28 = int_to_ptr.hbm [resolvable:$true] %s976_s28 }
  0xdc   : > { %s951_s18 = sshll.u32 %s4010_s6, 4  ;;  %s3622_s5 = sshra.s32 %s4378_s26, 4  ;;  %s952_s18 = int_to_ptr.vmem [resolvable:$true] %s951_s18  ;;  %s3623_s5 = int_to_ptr.hbm [resolvable:$true] %s3622_s5 }
  0xdd   : > { %s3624_s16 = scalar_lea.hbm %s3623_s5, 1  ;;  %s3629_s8 = scalar_lea.hbm %s4051_s21, 1 }
  0xde   : > { %p3625_p11 = scmp.ne.s32.totalorder %s3623_s5, %s3624_s16  ;;  %p3630_p2 = scmp.lt.s32.totalorder %s3623_s5, %s4051_s21 }
  0xdf   : > { %p3631_p3 = scmp.lt.s32.totalorder %s3629_s8, %s3624_s16 }
  0xe0   : > { %p3627_p13 = pnand %p3625_p11, %p4288_p0 }
  0xe1   : > { %p3632_p4 = por %p3631_p3, %p3630_p2 }
  0xe2   : > { %p3628_p1 = pneg %p3627_p13 }
  0xe4   : > { %p3633_p7 = pnand %p3632_p4, %p3628_p1 }
  0xe6   : > { %3636 = shalt.err (!%p3633_p7)
}
  0xe7   : > { %3107 = dma.hbm_to_vmem [thread:$0]  (!%p4277_p12), %s4378_s26, 16, %s952_s18, [#allocation7]  }
  0xe8   : > { %s1003_s23 = sshll.u32 %s4081_s19, 4  ;;  %s4011_s1 = smov [#allocation11]   ;;  %s4400_s23 = int_to_ptr.hbm [resolvable:$true] %s1003_s23 }
  0xe9   : > { %s978_s6 = sshll.u32 %s4011_s1, 4  ;;  %s3652_s5 = sshra.s32 %s4389_s28, 4  ;;  %s979_s6 = int_to_ptr.vmem [resolvable:$true] %s978_s6  ;;  %s3653_s5 = int_to_ptr.hbm [resolvable:$true] %s3652_s5 }
  0xea   : > { %s3654_s16 = scalar_lea.hbm %s3653_s5, 1  ;;  %s3659_s8 = scalar_lea.hbm %s4830_s3, 1 }
  0xeb   : > { %p3655_p8 = scmp.ne.s32.totalorder %s3653_s5, %s3654_s16  ;;  %p3660_p1 = scmp.lt.s32.totalorder %s3653_s5, %s4830_s3 }
  0xec   : > { %p3661_p2 = scmp.lt.s32.totalorder %s3659_s8, %s3654_s16 }
  0xed   : > { %p3657_p11 = pnand %p3655_p8, %p4288_p0 }
  0xee   : > { %p3662_p3 = por %p3661_p2, %p3660_p1 }
  0xef   : > { %p3658_p13 = pneg %p3657_p11 }
  0xf1   : > { %p3663_p4 = pnand %p3662_p3, %p3658_p13 }
  0xf3   : > { %3666 = shalt.err (!%p3663_p4)
}
  0xf4   : > { %3113 = dma.hbm_to_vmem [thread:$0]  (!%p4277_p12), %s4389_s28, 16, %s979_s6, [#allocation10]  }
  0xf5   : > { %s4012_s26 = smov [#allocation14]   ;;  %s1033_s1 = sshll.u32 %s4101_s12, 4  ;;  %s4411_s1 = int_to_ptr.hbm [resolvable:$true] %s1033_s1 }
  0xf6   : > { %s1005_s18 = sshll.u32 %s4012_s26, 4  ;;  %s3682_s5 = sshra.s32 %s4400_s23, 4  ;;  %s1006_s18 = int_to_ptr.vmem [resolvable:$true] %s1005_s18  ;;  %s3683_s5 = int_to_ptr.hbm [resolvable:$true] %s3682_s5 }
  0xf7   : > { %s3684_s16 = scalar_lea.hbm %s3683_s5, 1  ;;  %s3689_s8 = scalar_lea.hbm %s4081_s19, 1 }
  0xf8   : > { %p3685_p7 = scmp.ne.s32.totalorder %s3683_s5, %s3684_s16  ;;  %p3690_p13 = scmp.lt.s32.totalorder %s3683_s5, %s4081_s19 }
  0xf9   : > { %p3691_p1 = scmp.lt.s32.totalorder %s3689_s8, %s3684_s16 }
  0xfa   : > { %p3687_p8 = pnand %p3685_p7, %p4288_p0 }
  0xfb   : > { %p3692_p2 = por %p3691_p1, %p3690_p13 }
  0xfc   : > { %p3688_p11 = pneg %p3687_p8 }
  0xfe   : > { %p3693_p3 = pnand %p3692_p2, %p3688_p11 }
 0x100   : > { %3696 = shalt.err (!%p3693_p3)
}
 0x101   : > { %3119 = dma.hbm_to_vmem [thread:$0]  (!%p4277_p12), %s4400_s23, 16, %s1006_s18, [#allocation13]  }
 0x102   : > { %s1059_s28 = sshll.u32 %s4111_s27, 4  ;;  %s4013_s6 = smov [#allocation17]   ;;  %s4422_s28 = int_to_ptr.hbm [resolvable:$true] %s1059_s28 }
 0x103   : > { %s1035_s26 = sshll.u32 %s4013_s6, 4  ;;  %s3712_s5 = sshra.s32 %s4411_s1, 4  ;;  %s1036_s26 = int_to_ptr.vmem [resolvable:$true] %s1035_s26  ;;  %s3713_s5 = int_to_ptr.hbm [resolvable:$true] %s3712_s5 }
 0x104   : > { %s3714_s16 = scalar_lea.hbm %s3713_s5, 1  ;;  %s3719_s8 = scalar_lea.hbm %s4101_s12, 1 }
 0x105   : > { %p3715_p4 = scmp.ne.s32.totalorder %s3713_s5, %s3714_s16  ;;  %p3720_p11 = scmp.lt.s32.totalorder %s3713_s5, %s4101_s12 }
 0x106   : > { %p3721_p13 = scmp.lt.s32.totalorder %s3719_s8, %s3714_s16 }
 0x107   : > { %p3717_p7 = pnand %p3715_p4, %p4288_p0 }
 0x108   : > { %p3722_p1 = por %p3721_p13, %p3720_p11 }
 0x109   : > { %p3718_p8 = pneg %p3717_p7 }
 0x10b   : > { %p3723_p2 = pnand %p3722_p1, %p3718_p8 }
 0x10d   : > { %3726 = shalt.err (!%p3723_p2)
}
 0x10e   : > { %s4845_s23 = sld [smem:[#allocation51_spill]]  ;;  %s4014_s18 = smov [#allocation20]  }
 0x10f   : > { %3125 = dma.hbm_to_vmem [thread:$0]  (!%p4277_p12), %s4411_s1, 16, %s1036_s26, [#allocation16]  }
 0x110   : > { %s1061_s6 = sshll.u32 %s4014_s18, 4  ;;  %s3742_s5 = sshra.s32 %s4422_s28, 4  ;;  %s1062_s6 = int_to_ptr.vmem [resolvable:$true] %s1061_s6  ;;  %s3743_s5 = int_to_ptr.hbm [resolvable:$true] %s3742_s5 }
 0x111   : > { %s3744_s16 = scalar_lea.hbm %s3743_s5, 1  ;;  %s3749_s8 = scalar_lea.hbm %s4111_s27, 1 }
 0x112   : > { %p3745_p3 = scmp.ne.s32.totalorder %s3743_s5, %s3744_s16  ;;  %p3750_p8 = scmp.lt.s32.totalorder %s3743_s5, %s4111_s27 }
 0x113   : > { %p3751_p11 = scmp.lt.s32.totalorder %s3749_s8, %s3744_s16 }
 0x114   : > { %s1083_s15 = sshll.u32 %s4845_s23, 4  ;;  %p3747_p4 = pnand %p3745_p3, %p4288_p0  ;;  %s4433_s15 = int_to_ptr.hbm [resolvable:$true] %s1083_s15 }
 0x115   : > { %p3752_p13 = por %p3751_p11, %p3750_p8 }
 0x116   : > { %p3748_p7 = pneg %p3747_p4 }
 0x118   : > { %p3753_p1 = pnand %p3752_p13, %p3748_p7 }
 0x11a   : > { %3756 = shalt.err (!%p3753_p1)
}
 0x11b   : > { %s4846_s1 = sld [smem:[#allocation53_spill]]  ;;  %s4015_s18 = smov [#allocation23]  }
 0x11c   : > { %3131 = dma.hbm_to_vmem [thread:$0]  (!%p4277_p12), %s4422_s28, 16, %s1062_s6, [#allocation19]  }
 0x11d   : > { %s1085_s3 = sshll.u32 %s4015_s18, 4  ;;  %s3772_s5 = sshra.s32 %s4433_s15, 4  ;;  %s1086_s3 = int_to_ptr.vmem [resolvable:$true] %s1085_s3  ;;  %s3773_s5 = int_to_ptr.hbm [resolvable:$true] %s3772_s5 }
 0x11e   : > { %s3774_s16 = scalar_lea.hbm %s3773_s5, 1  ;;  %s3779_s8 = scalar_lea.hbm %s4845_s23, 1 }
 0x11f   : > { %p3775_p2 = scmp.ne.s32.totalorder %s3773_s5, %s3774_s16  ;;  %p3780_p7 = scmp.lt.s32.totalorder %s3773_s5, %s4845_s23 }
 0x120   : > { %p3781_p8 = scmp.lt.s32.totalorder %s3779_s8, %s3774_s16 }
 0x121   : > { %s1109_s26 = sshll.u32 %s4846_s1, 4  ;;  %p3777_p3 = pnand %p3775_p2, %p4288_p0  ;;  %s4444_s26 = int_to_ptr.hbm [resolvable:$true] %s1109_s26 }
 0x122   : > { %p3782_p11 = por %p3781_p8, %p3780_p7 }
 0x123   : > { %p3778_p4 = pneg %p3777_p3 }
 0x125   : > { %p3783_p13 = pnand %p3782_p11, %p3778_p4 }
 0x127   : > { %3786 = shalt.err (!%p3783_p13)
}
 0x128   : > { %s4847_s28 = sld [smem:[#allocation64_spill]]  ;;  %s4016_s6 = smov [#allocation26]  }
 0x129   : > { %3137 = dma.hbm_to_vmem [thread:$0]  (!%p4277_p12), %s4433_s15, 16, %s1086_s3, [#allocation22]  }
 0x12a   : > { %s1111_s18 = sshll.u32 %s4016_s6, 4  ;;  %s3802_s9 = sshra.s32 %s4444_s26, 4  ;;  %s1112_s18 = int_to_ptr.vmem [resolvable:$true] %s1111_s18  ;;  %s3803_s9 = int_to_ptr.hbm [resolvable:$true] %s3802_s9 }
 0x12b   : > { %s3804_s5 = scalar_lea.hbm %s3803_s9, 16  ;;  %s3809_s16 = scalar_lea.hbm %s4846_s1, 16 }
 0x12c   : > { %p3805_p1 = scmp.ne.s32.totalorder %s3803_s9, %s3804_s5  ;;  %p3810_p4 = scmp.lt.s32.totalorder %s3803_s9, %s4846_s1 }
 0x12d   : > { %p3811_p7 = scmp.lt.s32.totalorder %s3809_s16, %s3804_s5 }
 0x12e   : > { %s1167_s4 = sshll.u32 %s4847_s28, 4  ;;  %p3807_p2 = pnand %p3805_p1, %p4288_p0  ;;  %s1168_s4 = int_to_ptr.hbm [resolvable:$true] %s1167_s4 }
 0x12f   : > { %p3812_p8 = por %p3811_p7, %p3810_p4 }
 0x130   : > { %p3808_p3 = pneg %p3807_p2 }
 0x132   : > { %p3813_p11 = pnand %p3812_p8, %p3808_p3 }
 0x134   : > { %3816 = shalt.err (!%p3813_p11)
}
 0x135   : > { %s4848_s3 = smov 4   ;;  %s4017_s15 = smov [#allocation29]  }
 0x136   : > { %3143 = dma.hbm_to_vmem [thread:$0]  (!%p4277_p12), %s4444_s26, 256, %s1112_s18, [#allocation25], %s4844_s7, %s4844_s7, %s4848_s3  }
 0x137   : > { %s1169_s8 = sshll.u32 %s4017_s15, 4  ;;  %s3832_s6 = sshra.s32 %s1168_s4, 4  ;;  %s1170_s8 = int_to_ptr.vmem [resolvable:$true] %s1169_s8  ;;  %s3833_s6 = int_to_ptr.hbm [resolvable:$true] %s3832_s6 }
 0x138   : > { %s3834_s9 = scalar_lea.hbm %s3833_s6, 16  ;;  %s3839_s5 = scalar_lea.hbm %s4847_s28, 16 }
 0x139   : > { %p3835_p13 = scmp.ne.s32.totalorder %s3833_s6, %s3834_s9  ;;  %p3840_p3 = scmp.lt.s32.totalorder %s3833_s6, %s4847_s28 }
 0x13a   : > { %p3841_p4 = scmp.lt.s32.totalorder %s3839_s5, %s3834_s9 }
 0x13b   : > { %p3837_p1 = pnand %p3835_p13, %p4288_p0 }
 0x13c   : > { %p3842_p7 = por %p3841_p4, %p3840_p3 }
 0x13d   : > { %p3838_p2 = pneg %p3837_p1 }
 0x13f   : > { %p3843_p8 = pnand %p3842_p7, %p3838_p2 }
 0x141   : > { %3846 = shalt.err (!%p3843_p8)
}
 0x142   : > { %3149 = dma.hbm_to_vmem [thread:$0]  (!%p4277_p12), %s1168_s4, 256, %s1170_s8, [#allocation28], %s4844_s7, %s4844_s7, %s4848_s3  }
 0x143   : > { %1201 = sbr.rel (%p4267_p10) target bundleno = 4662 (0x1236), region = 168 }
 0x148   : > { %3907 = dma.done.wait (%p3154_p9), [#allocation4], 16  }
 0x149   : > { %3909 = vsyncadd (%p3154_p9), [#allocation4], 4294967280 }
 0x14a   : > { %3911 = dma.done.wait (%p3154_p9), [#allocation7], 32  }
 0x14b   : > { %3913 = vsyncadd (%p3154_p9), [#allocation7], 4294967264 }
 0x14c   : > { %3915 = dma.done.wait (%p3154_p9), [#allocation10], 32  }
 0x14d   : > { %3917 = vsyncadd (%p3154_p9), [#allocation10], 4294967264 }
 0x14e   : > { %3919 = dma.done.wait (%p3154_p9), [#allocation13], 32  }
 0x14f   : > { %3921 = vsyncadd (%p3154_p9), [#allocation13], 4294967264 }
 0x150   : > { %3923 = dma.done.wait (%p3154_p9), [#allocation16], 32  }
 0x151   : > { %3925 = vsyncadd (%p3154_p9), [#allocation16], 4294967264 }
 0x152   : > { %3927 = dma.done.wait (%p3154_p9), [#allocation19], 272  }
 0x153   : > { %3929 = vsyncadd (%p3154_p9), [#allocation19], 4294967024 }
 0x154   : > { %3931 = dma.done.wait (%p3154_p9), [#allocation22], 32  }
 0x155   : > { %3933 = vsyncadd (%p3154_p9), [#allocation22], 4294967264 }
 0x156   : > { %3935 = dma.done.wait (%p3154_p9), [#allocation25], 272  }
 0x157   : > { %3937 = vsyncadd (%p3154_p9), [#allocation25], 4294967024 }
 0x158   : > { %3939 = dma.done.wait (%p3154_p9), [#allocation28], 512  }
 0x159   : > { %3941 = vsyncadd (%p3154_p9), [#allocation28], 4294966784  ;;  %s4849_s4 = sld [smem:[#allocation41_spill]]  ;;  %p1373_p10 = scmp.lt.s32.totalorder %s4239_s0, 1  ;;  %vm1381_vm0 = vcmask 261120   ;;  %v4018_v2 = vmov 32.0  }
 0x15a   : > { %s4850_s7 = sld [smem:[#allocation43_spill]]  ;;  %3308 = vrcp.f32 %v4018_v2  ;;  %v3282_v25 = vld [vmem:[#allocation3] ss:$0 sm:$0xff]  ;;  %v3283_v28 = vld [vmem:[#allocation6] ss:$0 sm:$0xff]  ;;  %vm1513_vm9 = vcmask 523264  }
 0x15b   : > { %s1374_s11 = scalar_select %p1373_p10, %s4239_s0, 1  ;;  %v3284_v35 = vld [vmem:[#allocation8] ss:$0 sm:$0xff]  ;;  %v3285_v56 = vld [vmem:[#allocation9] ss:$0 sm:$0xff]  ;;  %vm1705_vm13 = vcmask 1043456  }
 0x15c   : > { %s4852_s18 = sld [smem:[#allocation44_spill]]  ;;  %s4019_s15 = smov 120   ;;  %vm1669_vm14 = vcmask 64512  }
 0x15d   : > { %s2872_s2 = sshll.u32 %s1374_s11, 3  ;;  %s4853_s16 = sld [smem:[#allocation47_spill]] }
 0x15e   : > { %s4854_s3 = sld [smem:[#allocation48_spill]]  ;;  %s4020_s6 = smov 112  }
 0x15f   : > { %s1376_s22 = scalar_lea.vmem %s4849_s4, %s2872_s2  ;;  %s4855_s8 = sld [smem:[#allocation49_spill]] }
 0x160   : > { %v4516_v0 = vld [vmem:[%s1376_s22] sm:$0xff]  ;;  %s4851_s26 = smov %s4850_s7  ;;  %v3309_v3 = vpop.eup %3308  ;;  %v3005_v14 = vld [vmem:[%s4850_s7 + $0x8] sm:$0xff]  ;;  %s4021_s9 = smov 104  }
 0x161   : > { %v1382_v1 = vsel %vm1381_vm0, %v4516_v0, 0.0  ;;  %v1386_v4 = vmul.f32 32.0, %v3309_v3  ;;  %vm1390_vm1 = vweird.f32 %v3309_v3  ;;  %1449 = vmatpush.bf16.msra.mxu0 %v3005_v14  ;;  %v3004_v15 = vld [vmem:[%s4851_s26] sm:$0xff]  ;;  %s4856_s5 = sld [smem:[#allocation52_spill]] }
 0x162   : > { %1383 = vadd.xlane.f32.xlu0 %v1382_v1  ;;  %v3009_v32 = vld [vmem:[%s4852_s18 + $0x18] sm:$0xff]  ;;  %v3008_v33 = vld [vmem:[%s4852_s18 + $0x10] sm:$0xff]  ;;  %v3007_v34 = vld [vmem:[%s4852_s18 + $0x8] sm:$0xff]  ;;  %s4857_s4 = sld [smem:[#allocation54_spill]] }
 0x163   : > { %v1387_v5 = vsub.f32 1.0, %v1386_v4  ;;  %1521 = vmatpush.bf16.msra.mxu1 %v3009_v32  ;;  %v3006_v37 = vld [vmem:[%s4852_s18] sm:$0xff]  ;;  %v4540_v63 = vld [vmem:[%s4853_s16 + $0x8] sm:$0xff]  ;;  %s4858_s11 = sld [smem:[#allocation60_spill]] }
 0x164   : > { %1594 = vmatpush.bf16.msra.mxu2 %v4540_v63  ;;  %v4546_v1 = vld [vmem:[%s4853_s16] sm:$0xff]  ;;  %s4859_s2 = sld [smem:[#allocation55_spill]] }
 0x165   : > { %v1388_v6 = vmul.f32 %v3309_v3, %v1387_v5  ;;  %1450 = vmatpush.bf16.msra.mxu0 %v3004_v15  ;;  %s4860_s22 = sld [smem:[#allocation56_spill]] }
 0x166   : > { %s4861_s7 = sld [smem:[#allocation59_spill]] }
 0x167   : > { %v1389_v7 = vadd.f32 %v3309_v3, %v1388_v6  ;;  %1522 = vmatpush.bf16.msra.mxu1 %v3008_v33  ;;  %v4558_v6 = vld [vmem:[%s4854_s3] sm:$0xff] }
 0x168   : > { %1595 = vmatpush.bf16.msra.mxu2 %v4546_v1  ;;  %v4597_v33 = vld [vmem:[#allocation17] ss:$0 sm:$0xff] }
 0x169   : > { %v4520_v8 = vsel %vm1390_vm1, %v3309_v3, %v1389_v7  ;;  %v4551_v3 = vld [vmem:[%s4854_s3 + $0x8] sm:$0xff] }
 0x16a   : > { %1748 = vrot.lane.b32.xlu2 %v4551_v3, %s4019_s15  ;;  %1627 = vmatpush.bf16.msra.mxu3 %v4551_v3 }
 0x16b   : > { %1523 = vmatpush.bf16.msra.mxu1 %v3007_v34 }
 0x16e   : > { %1628 = vmatpush.bf16.msra.mxu3 %v4558_v6 }
 0x16f   : > { %1524 = vmatpush.bf16.msra.mxu1 %v3006_v37 }
 0x172   : > { %1746 = vrot.lane.b32.xlu2 %v4558_v6, %s4019_s15 }
 0x1c4   : > { %v1749_v14 = vpop.permute.xlu2 %1748 }
 0x1d5   : > { %v1384_v9 = vpop.xlane.xlu0 %1383 }
 0x1d6   : > { %v1392_v10 = vmul.f32 %v4520_v8, %v1384_v9  ;;  %v4567_v9 = vld [vmem:[%s4855_s8 + $0x8] sm:$0xff] }
 0x1d7   : > { %1660 = vmatpush.bf16.msrb.mxu0 %v4567_v9 }
 0x1d8   : > { %v1393_v11 = vsub.f32 %v4516_v0, %v1392_v10 }
 0x1da   : > { %v1394_v12 = vmul.f32 %v1393_v11, %v1393_v11 }
 0x1dc   : > { %v1395_v13 = vsel %vm1381_vm0, %v1394_v12, 0.0 }
 0x1dd   : > { %1396 = vadd.xlane.f32.xlu0 %v1395_v13  ;;  %v4574_v13 = vld [vmem:[#allocation15] ss:$0 sm:$0xff] }
 0x1f1   : > { %1726 = vrot.lane.b32.xlu0 %v4540_v63, %s4019_s15 }
 0x250   : > { %v1397_v16 = vpop.xlane.xlu0 %1396 }
 0x251   : > { %v1398_v17 = vmul.f32 %v1397_v16, %v4520_v8 }
 0x253   : > { %v1399_v18 = vadd.f32 1e-05, %v1398_v17  ;;  %v4579_v17 = vld [vmem:[#allocation14] ss:$0 sm:$0xff] }
 0x255   : > { %3310 = vrsqrt.f32 %v1399_v18  ;;  %vm1406_vm3 = vweird.f32 %v1399_v18 }
 0x25b   : > { %v3311_v19 = vpop.eup %3310 }
 0x25c   : > { %v1401_v20 = vmul.f32 %v3311_v19, %v1399_v18  ;;  %vm1407_vm2 = vweird.f32 %v3311_v19  ;;  %v1747_v18 = vpop.permute.xlu2 %1746 }
 0x25d   : > { %vm1408_vm4 = vmor %vm1406_vm3, %vm1407_vm2  ;;  %vm2293_vm3 = vcmask 253952  }
 0x25e   : > { %v1402_v21 = vmul.f32 %v3311_v19, %v1401_v20 }
 0x260   : > { %v1403_v22 = vmul.f32 0.5, %v1402_v21 }
 0x262   : > { %v1404_v23 = vsub.f32 1.5, %v1403_v22 }
 0x263   : > { %v1727_v10 = vpop.permute.xlu0 %1726 }
 0x264   : > { %v1405_v24 = vmul.f32 %v3311_v19, %v1404_v23  ;;  %1739 = vmatpush.bf16.msrb.mxu1 %v1727_v10 }
 0x266   : > { %v1409_v26 = vsel %vm1408_vm4, %v3311_v19, %v1405_v24 }
 0x267   : > { %v1410_v27 = vmul.f32 %v1409_v26, %v1393_v11  ;;  %v4571_v11 = vld [vmem:[%s4855_s8] sm:$0xff] }
 0x268   : > { %1661 = vmatpush.bf16.msrb.mxu0 %v4571_v11 }
 0x269   : > { %v1414_v29 = vmul.f32 %v3282_v25, %v1410_v27  ;;  %v3286_v25 = vld [vmem:[#allocation11] ss:$0 sm:$0xff]  ;;  %v3287_v27 = vld [vmem:[#allocation12] ss:$0 sm:$0xff] }
 0x26b   : > { %v1418_v30 = vadd.f32 %v3283_v28, %v1414_v29 }
 0x26d   : > { %v1419_v31 = vpack.c.bf16 %v1418_v30, %v1418_v30 }
 0x26f   : > { %2881 = vmatmul.msk.bf16.vlgmr.msra.gmra.mxu0 %vm1381_vm0, %v1419_v31 }
 0x270   : > { %1761 = vmatpush.bf16.msra.mxu0 %v1749_v14 }
 0x274   : > { %1762 = vmatpush.bf16.msra.mxu0 %v1747_v18 }
 0x2ec   : > { %v1452_v36 = vpop.f32.mrf.mxu0 }
 0x2ed   : > { %v1453_v38 = vadd.f32 %v3284_v35, %v1452_v36 }
 0x2ef   : > { %v1456_v39 = vsub.f32 0.0, %v1453_v38 }
 0x2f1   : > { %v1457_v40 = vmul.f32 1.442695, %v1456_v39 }
 0x2f3   : > { %3312 = vpow2.f32 %v1457_v40 }
 0x2f4   : > { %v1454_v41 = vpop.f32.mrf.mxu0 }
 0x2f9   : > { %v3313_v42 = vpop.eup %3312 }
 0x2fa   : > { %v1459_v43 = vadd.f32 1.0, %v3313_v42 }
 0x2fc   : > { %3314 = vrcp.f32 %v1459_v43  ;;  %v1471_v47 = vand.u32 2147483648, %v1459_v43  ;;  %v1469_v49 = vand.u32 2147483647, %v1459_v43  ;;  %vm1465_vm6 = vweird.f32 %v1459_v43 }
 0x2fe   : > { %v1472_v51 = vor.u32 1.1754944e-38, %v1471_v47  ;;  %vm1470_vm8 = vcmp.eq.f32.partialorder %v1469_v49, 8.507059e+37 }
 0x302   : > { %v3315_v44 = vpop.eup %3314 }
 0x303   : > { %v1461_v45 = vmul.f32 %v3315_v44, %v1459_v43  ;;  %vm1466_vm5 = vweird.f32 %v3315_v44 }
 0x304   : > { %vm1467_vm7 = vmor %vm1465_vm6, %vm1466_vm5 }
 0x305   : > { %v1462_v46 = vsub.f32 1.0, %v1461_v45 }
 0x307   : > { %v1463_v48 = vmul.f32 %v3315_v44, %v1462_v46 }
 0x309   : > { %v1464_v50 = vadd.f32 %v3315_v44, %v1463_v48 }
 0x30b   : > { %v1468_v52 = vsel %vm1467_vm7, %v3315_v44, %v1464_v50 }
 0x30c   : > { %v1473_v53 = vsel %vm1470_vm8, %v1472_v51, %v1468_v52 }
 0x30d   : > { %v1475_v54 = vmul.f32 %v1473_v53, %v1453_v38 }
 0x30f   : > { %v1476_v55 = vpack.c.bf16 %v1475_v54, %v1475_v54 }
 0x311   : > { %2898 = vmatmul.msk.bf16.vlgmr.msra.gmra.mxu1 %vm1513_vm9, %v1476_v55 }
 0x38e   : > { %v1526_v57 = vpop.f32.mrf.mxu1 }
 0x38f   : > { %v1527_v58 = vadd.f32 %v3285_v56, %v1526_v57 }
 0x391   : > { %v1530_v59 = vmul.f32 0.5, %v1527_v58 }
 0x393   : > { %v4535_v60 = vadd.f32 %v1530_v59, %v4516_v0 }
 0x395   : > { %v1534_v61 = vsel %vm1381_vm0, %v4535_v60, 0.0 }
 0x396   : > { %v1528_v62 = vpop.f32.mrf.mxu1  ;;  %1535 = vadd.xlane.f32.xlu1 %v1534_v61 }
 0x409   : > { %v1536_v0 = vpop.xlane.xlu1 %1535 }
 0x40a   : > { %v1537_v2 = vmul.f32 %v1536_v0, %v4520_v8 }
 0x40c   : > { %v1538_v4 = vsub.f32 %v4535_v60, %v1537_v2 }
 0x40e   : > { %v1539_v5 = vmul.f32 %v1538_v4, %v1538_v4 }
 0x410   : > { %v1540_v7 = vsel %vm1381_vm0, %v1539_v5, 0.0 }
 0x411   : > { %1541 = vadd.xlane.f32.xlu1 %v1540_v7 }
 0x42a   : > { %1724 = vrot.lane.b32.xlu1 %v4546_v1, %s4019_s15 }
 0x432   : > { %1752 = vrot.lane.b32.xlu1 %v4574_v13, %s4019_s15 }
 0x43a   : > { %1730 = vrot.lane.b32.xlu1 %v4579_v17, %s4019_s15 }
 0x442   : > { %1770 = vrot.lane.b32.xlu1 %v4567_v9, %s4019_s15 }
 0x484   : > { %v1542_v12 = vpop.xlane.xlu1 %1541 }
 0x485   : > { %v1543_v15 = vmul.f32 %v1542_v12, %v4520_v8 }
 0x487   : > { %v1544_v16 = vadd.f32 1e-05, %v1543_v15 }
 0x489   : > { %3316 = vrsqrt.f32 %v1544_v16  ;;  %vm1551_vm11 = vweird.f32 %v1544_v16 }
 0x48f   : > { %v3317_v19 = vpop.eup %3316 }
 0x490   : > { %v1546_v20 = vmul.f32 %v3317_v19, %v1544_v16  ;;  %vm1552_vm10 = vweird.f32 %v3317_v19 }
 0x491   : > { %vm1553_vm12 = vmor %vm1551_vm11, %vm1552_vm10 }
 0x492   : > { %v1547_v21 = vmul.f32 %v3317_v19, %v1546_v20 }
 0x494   : > { %v1548_v22 = vmul.f32 0.5, %v1547_v21 }
 0x496   : > { %v1549_v23 = vsub.f32 1.5, %v1548_v22 }
 0x498   : > { %v1550_v24 = vmul.f32 %v3317_v19, %v1549_v23 }
 0x49a   : > { %v1554_v26 = vsel %vm1553_vm12, %v3317_v19, %v1550_v24 }
 0x49b   : > { %v1555_v28 = vmul.f32 %v1554_v26, %v1538_v4 }
 0x49c   : > { %v1725_v29 = vpop.permute.xlu1 %1724 }
 0x49d   : > { %v1559_v30 = vmul.f32 %v3286_v25, %v1555_v28  ;;  %1740 = vmatpush.bf16.msrb.mxu1 %v1725_v29  ;;  %v1723_v28 = vld [vmem:[#allocation18] sm:$0xf] }
 0x49e   : > { %v1868_v29 = vsel %vm1705_vm13, %v1723_v28, 0 }
 0x49f   : > { %v1563_v31 = vadd.f32 %v3287_v27, %v1559_v30 }
 0x4a1   : > { %v4585_v32 = vpack.c.bf16 %v1563_v31, %v1563_v31 }
 0x4a3   : > { %2907 = vmatmul.msk.bf16.vlgmr.msra.gmra.mxu2 %vm1381_vm0, %v4585_v32  ;;  %2916 = vmatmul.msk.bf16.vlgmr.msra.gmra.mxu3 %vm1381_vm0, %v4585_v32 }
 0x4a4   : > { %2925 = vmatmul.msk.bf16.vlgmr.msrb.gmra.mxu0 %vm1381_vm0, %v4585_v32  ;;  %2928 = vmatmul.msk.bf16.vlgmr.msrb.gmra.mxu1 %vm1381_vm0, %v4585_v32  ;;  %v1753_v49 = vpop.permute.xlu1 %1752 }
 0x4ac   : > { %v1731_v59 = vpop.permute.xlu1 %1730 }
 0x4b4   : > { %2929 = vmatmul.msk.bf16.vlgmr.msra.gmra.mxu0 %vm1381_vm0, %v4585_v32  ;;  %v1771_v61 = vpop.permute.xlu1 %1770 }
 0x521   : > { %v1663_v34 = vpop.f32.mrf.mxu0  ;;  %v4599_v35 = vpop.f32.mrf.mxu1 }
 0x522   : > { %v1664_v36 = vadd.f32 %v4597_v33, %v1663_v34  ;;  %v1743_v25 = vadd.f32 %v4599_v35, %v1731_v59 }
 0x524   : > { %v1701_v37 = vpack.c.bf16 %v1664_v36, %v1664_v36  ;;  %v1790_v27 = vpack.c.bf16 %v1743_v25, %v1743_v25 }
 0x526   : > { %v1597_v38 = vpop.f32.mrf.mxu2  ;;  %v1630_v39 = vpop.f32.mrf.mxu3  ;;  %v1707_v40 = vsel %vm1705_vm13, %v1701_v37, 0 }
 0x527   : > { %v1631_v41 = vadd.f32 %v4574_v13, %v1630_v39  ;;  %1716 = vmatpush.bf16.msrb.mxu3 %v1707_v40  ;;  %v1598_v46 = vadd.f32 %v4579_v17, %v1597_v38 }
 0x529   : > { %v1668_v42 = vpack.c.bf16 %v1631_v41, %v1631_v41  ;;  %v1665_v43 = vpop.f32.mrf.mxu0  ;;  %v1744_v44 = vpop.f32.mrf.mxu1  ;;  %v1667_v50 = vpack.c.bf16 %v1598_v46, %v1598_v46 }
 0x52b   : > { %v1674_v45 = vsel %vm1669_vm14, %v1668_v42, 0 }
 0x52c   : > { %1683 = vmatpush.bf16.xpose.msrb.mxu2 %v1674_v45 }
 0x52e   : > { %v1599_v47 = vpop.f32.mrf.mxu2  ;;  %v1632_v48 = vpop.f32.mrf.mxu3 }
 0x531   : > { %v1764_v51 = vpop.f32.mrf.mxu0 }
 0x532   : > { %v1765_v52 = vadd.f32 %v1764_v51, %v1753_v49 }
 0x533   : > { %2926 = vmatmul.msk.bf16.vlgmr.msrb.gmra.mxu2 %vm1669_vm14, %v1667_v50 }
 0x534   : > { %v1791_v53 = vpack.c.bf16 %v1765_v52, %v1765_v52  ;;  %1783 = vmatpush.bf16.msra.mxu2 %v1771_v61 }
 0x536   : > { %v1796_v54 = vsel %vm1669_vm14, %v1791_v53, 0 }
 0x537   : > { %1805 = vmatpush.bf16.xpose.msra.mxu3 %v1796_v54 }
 0x539   : > { %v1766_v55 = vpop.f32.mrf.mxu0 }
 0x5b6   : > { %v1685_v56 = vpop.f32.mrf.mxu2 }
 0x5b7   : > { %v1689_v57 = vsel %vm1669_vm14, %v1685_v56, -inf }
 0x5b8   : > { %1690 = vmax.xlane.f32.xlu2 %v1689_v57 }
 0x5be   : > { %v1687_v58 = vpop.f32.mrf.mxu2 }
 0x5d0   : > { %1768 = vrot.lane.b32.xlu2 %v4571_v11, %s4019_s15 }
 0x5d8   : > { %1774 = vrot.lane.b32.xlu2 %v4597_v33, %s4019_s15  ;;  %s4862_s15 = sld [smem:[#allocation57_spill]] }
 0x5e0   : > { %1885 = vrot.lane.b32.xlu2 %v4540_v63, %s4020_s6 }
 0x5e8   : > { %1905 = vrot.lane.b32.xlu2 %v4558_v6, %s4020_s6 }
 0x5f0   : > { %1883 = vrot.lane.b32.xlu2 %v4546_v1, %s4020_s6 }
 0x5f8   : > { %1929 = vrot.lane.b32.xlu2 %v4567_v9, %s4020_s6 }
 0x62b   : > { %v1691_v62 = vpop.xlane.xlu2 %1690 }
 0x62c   : > { %v1692_v0 = vsub.f32 %v1685_v56, %v1691_v62 }
 0x62e   : > { %v1693_v2 = vmul.f32 1.442695, %v1692_v0 }
 0x630   : > { %3318 = vpow2.f32 %v1693_v2 }
 0x633   : > { %v1769_v4 = vpop.permute.xlu2 %1768 }
 0x634   : > { %1784 = vmatpush.bf16.msra.mxu2 %v1769_v4 }
 0x636   : > { %v3319_v5 = vpop.eup %3318 }
 0x637   : > { %2930 = vmatmul.msk.bf16.vlgmr.msra.gmra.mxu2 %vm1381_vm0, %v4585_v32  ;;  %v1695_v7 = vsel %vm1669_vm14, %v3319_v5, 0.0 }
 0x638   : > { %1696 = vadd.xlane.f32.xlu0 %v1695_v7  ;;  %1877 = vmatpush.bf16.msrb.mxu2 %v1868_v29 }
 0x63b   : > { %v1775_v10 = vpop.permute.xlu2 %1774 }
 0x643   : > { %v1886_v12 = vpop.permute.xlu2 %1885 }
 0x64b   : > { %v1906_v15 = vpop.permute.xlu2 %1905 }
 0x653   : > { %v1884_v20 = vpop.permute.xlu2 %1883 }
 0x65b   : > { %v1930_v49 = vpop.permute.xlu2 %1929 }
 0x6ab   : > { %v1697_v14 = vpop.xlane.xlu0 %1696 }
 0x6ac   : > { %3320 = vrcp.f32 %v1697_v14 }
 0x6b2   : > { %v3321_v16 = vpop.eup %3320 }
 0x6b3   : > { %v1699_v18 = vmul.f32 %v3321_v16, %v3319_v5 }
 0x6b5   : > { %v1700_v19 = vpack.c.bf16 %v1699_v18, %v1699_v18 }
 0x6b7   : > { %2927 = vmatmul.msk.bf16.vlgmr.msrb.gmra.mxu3 %vm1669_vm14, %v1700_v19 }
 0x6b8   : > { %1898 = vmatpush.bf16.msrb.mxu3 %v1886_v12 }
 0x6ba   : > { %v1786_v21 = vpop.f32.mrf.mxu2 }
 0x6bb   : > { %v1787_v22 = vadd.f32 %v1786_v21, %v1775_v10 }
 0x6bc   : > { %1899 = vmatpush.bf16.msrb.mxu3 %v1884_v20 }
 0x6bd   : > { %v1823_v23 = vpack.c.bf16 %v1787_v22, %v1787_v22 }
 0x6bf   : > { %v1828_v24 = vsel %vm1705_vm13, %v1823_v23, 0 }
 0x6c0   : > { %1837 = vmatpush.bf16.msra.mxu1 %v1828_v24 }
 0x6c2   : > { %v1788_v26 = vpop.f32.mrf.mxu2 }
 0x6c7   : > { %2931 = vmatmul.msk.bf16.vlgmr.msra.gmra.mxu3 %vm1669_vm14, %v1790_v27 }
 0x6d7   : > { %2935 = vmatmul.msk.bf16.vlgmr.msrb.gmra.mxu3 %vm1381_vm0, %v4585_v32 }
 0x73a   : > { %v1718_v30 = vpop.f32.mrf.mxu3 }
 0x73b   : > { %v1722_v31 = vpack.c.bf16 %v1718_v30, %v1718_v30  ;;  %v2003_v30 = vld [vmem:[#allocation18 + $0x8] sm:$0xf] }
 0x73d   : > { %2934 = vmatmul.msk.bf16.vlgmr.msrb.gmra.mxu2 %vm1669_vm14, %v1722_v31  ;;  %v2008_v31 = vsel %vm1705_vm13, %v2003_v30, 0 }
 0x742   : > { %v1720_v34 = vpop.f32.mrf.mxu3 }
 0x74a   : > { %v1807_v36 = vpop.f32.mrf.mxu3 }
 0x74b   : > { %v1811_v37 = vsel %vm1669_vm14, %v1807_v36, -inf }
 0x74c   : > { %1812 = vmax.xlane.f32.xlu1 %v1811_v37 }
 0x752   : > { %v1809_v35 = vpop.f32.mrf.mxu3 }
 0x75a   : > { %v1901_v38 = vpop.f32.mrf.mxu3 }
 0x762   : > { %v1903_v39 = vpop.f32.mrf.mxu3 }
 0x765   : > { %1889 = vrot.lane.b32.xlu1 %v4579_v17, %s4020_s6 }
 0x76d   : > { %1933 = vrot.lane.b32.xlu1 %v4597_v33, %s4020_s6 }
 0x775   : > { %2048 = vrot.lane.b32.xlu1 %v4551_v3, %s4021_s9 }
 0x77d   : > { %2046 = vrot.lane.b32.xlu1 %v4558_v6, %s4021_s9 }
 0x785   : > { %2026 = vrot.lane.b32.xlu1 %v4540_v63, %s4021_s9 }
 0x78d   : > { %2030 = vrot.lane.b32.xlu1 %v4579_v17, %s4021_s9 }
 0x795   : > { %2070 = vrot.lane.b32.xlu1 %v4567_v9, %s4021_s9  ;;  %v1844_v9 = vld [vmem:[#allocation18 + $0x4] sm:$0xf] }
 0x796   : > { %v1849_v17 = vsel %vm1705_vm13, %v1844_v9, 0 }
 0x797   : > { %1858 = vmatpush.bf16.msrb.mxu0 %v1849_v17 }
 0x79b   : > { %1942 = vmatpush.bf16.msra.mxu0 %v1930_v49 }
 0x79d   : > { %2068 = vrot.lane.b32.xlu1 %v4571_v11, %s4021_s9 }
 0x7a5   : > { %2074 = vrot.lane.b32.xlu1 %v4597_v33, %s4021_s9 }
 0x7bf   : > { %v1813_v40 = vpop.xlane.xlu1 %1812 }
 0x7c0   : > { %v1814_v41 = vsub.f32 %v1807_v36, %v1813_v40  ;;  %v4637_v42 = vpop.f32.mrf.mxu2 }
 0x7c2   : > { %v1815_v43 = vmul.f32 1.442695, %v1814_v41 }
 0x7c4   : > { %3322 = vpow2.f32 %v1815_v43 }
 0x7c8   : > { %v1881_v44 = vpop.f32.mrf.mxu2 }
 0x7ca   : > { %v3323_v45 = vpop.eup %3322 }
 0x7cb   : > { %v1817_v46 = vsel %vm1669_vm14, %v3323_v45, 0.0 }
 0x7cc   : > { %1818 = vadd.xlane.f32.xlu0 %v1817_v46 }
 0x7d7   : > { %v1890_v50 = vpop.permute.xlu1 %1889 }
 0x7d8   : > { %v1902_v61 = vadd.f32 %v1901_v38, %v1890_v50 }
 0x7da   : > { %v1949_v2 = vpack.c.bf16 %v1902_v61, %v1902_v61  ;;  %v2144_v61 = vld [vmem:[#allocation18 + $0xc] sm:$0xf] }
 0x7df   : > { %v1934_v53 = vpop.permute.xlu1 %1933 }
 0x7e0   : > { %1907 = vrot.lane.b32.xlu0 %v4551_v3, %s4020_s6 }
 0x7e7   : > { %v2049_v55 = vpop.permute.xlu1 %2048 }
 0x7e8   : > { %1911 = vrot.lane.b32.xlu0 %v4574_v13, %s4020_s6 }
 0x7ef   : > { %v2047_v0 = vpop.permute.xlu1 %2046 }
 0x7f0   : > { %1927 = vrot.lane.b32.xlu0 %v4571_v11, %s4020_s6  ;;  %s4863_s6 = sld [smem:[#allocation58_spill]] }
 0x7f7   : > { %v2027_v22 = vpop.permute.xlu1 %2026 }
 0x7ff   : > { %v2031_v29 = vpop.permute.xlu1 %2030 }
 0x83f   : > { %v1819_v3 = vpop.xlane.xlu0 %1818 }
 0x840   : > { %3324 = vrcp.f32 %v1819_v3 }
 0x846   : > { %v3325_v6 = vpop.eup %3324 }
 0x847   : > { %v1821_v47 = vmul.f32 %v3325_v6, %v3323_v45 }
 0x849   : > { %v1822_v63 = vpack.c.bf16 %v1821_v47, %v1821_v47 }
 0x84b   : > { %2932 = vmatmul.msk.bf16.vlgmr.msra.gmra.mxu1 %vm1669_vm14, %v1822_v63 }
 0x852   : > { %v1908_v48 = vpop.permute.xlu0 %1907 }
 0x853   : > { %1920 = vmatpush.bf16.msrb.mxu1 %v1908_v48 }
 0x857   : > { %1921 = vmatpush.bf16.msrb.mxu1 %v1906_v15 }
 0x85a   : > { %v1912_v11 = vpop.permute.xlu0 %1911 }
 0x85b   : > { %2936 = vmatmul.msk.bf16.vlgmr.msrb.gmra.mxu1 %vm1381_vm0, %v4585_v32 }
 0x85c   : > { %2017 = vmatpush.bf16.msra.mxu1 %v2008_v31 }
 0x862   : > { %v1928_v33 = vpop.permute.xlu0 %1927 }
 0x863   : > { %1943 = vmatpush.bf16.msra.mxu0 %v1928_v33 }
 0x8c8   : > { %v1839_v51 = vpop.f32.mrf.mxu1 }
 0x8c9   : > { %v1843_v52 = vpack.c.bf16 %v1839_v51, %v1839_v51 }
 0x8cb   : > { %2933 = vmatmul.msk.bf16.vlgmr.msrb.gmra.mxu0 %vm1669_vm14, %v1843_v52 }
 0x8cc   : > { %2039 = vmatpush.bf16.msrb.mxu0 %v2027_v22 }
 0x8d0   : > { %v1841_v54 = vpop.f32.mrf.mxu1 }
 0x8d8   : > { %v1923_v56 = vpop.f32.mrf.mxu1 }
 0x8d9   : > { %v1924_v57 = vadd.f32 %v1923_v56, %v1912_v11 }
 0x8db   : > { %v1950_v58 = vpack.c.bf16 %v1924_v57, %v1924_v57  ;;  %2937 = vmatmul.msk.bf16.vlgmr.msra.gmra.mxu0 %vm1381_vm0, %v4585_v32 }
 0x8dd   : > { %v1955_v59 = vsel %vm1669_vm14, %v1950_v58, 0 }
 0x8de   : > { %1964 = vmatpush.bf16.xpose.msra.mxu2 %v1955_v59 }
 0x8e0   : > { %v1925_v62 = vpop.f32.mrf.mxu1 }
 0x8e1   : > { %v2149_v62 = vsel %vm1705_vm13, %v2144_v61, 0 }
 0x8e5   : > { %2938 = vmatmul.msk.bf16.vlgmr.msra.gmra.mxu2 %vm1669_vm14, %v1949_v2 }
 0x8e6   : > { %2061 = vmatpush.bf16.msrb.mxu2 %v2049_v55 }
 0x8ea   : > { %2062 = vmatpush.bf16.msrb.mxu2 %v2047_v0 }
 0x8ee   : > { %2158 = vmatpush.bf16.msra.mxu2 %v2149_v62 }
 0x8f5   : > { %2942 = vmatmul.msk.bf16.vlgmr.msrb.gmra.mxu2 %vm1381_vm0, %v4585_v32 }
 0x948   : > { %v4671_v4 = vpop.f32.mrf.mxu0 }
 0x949   : > { %v1880_v33 = vadd.f32 %v4637_v42, %v4671_v4 }
 0x950   : > { %v1862_v5 = vpop.f32.mrf.mxu0 }
 0x958   : > { %v1945_v7 = vpop.f32.mrf.mxu0 }
 0x959   : > { %v1946_v10 = vadd.f32 %v1945_v7, %v1934_v53 }
 0x95b   : > { %v1982_v12 = vpack.c.bf16 %v1946_v10, %v1946_v10 }
 0x95d   : > { %v1987_v14 = vsel %vm1705_vm13, %v1982_v12, 0  ;;  %v3291_v12 = vld [vmem:[#allocation20] ss:$0 sm:$0xff] }
 0x95e   : > { %1996 = vmatpush.bf16.msra.mxu3 %v1987_v14 }
 0x960   : > { %v1947_v15 = vpop.f32.mrf.mxu0 }
 0x968   : > { %v1966_v16 = vpop.f32.mrf.mxu2 }
 0x969   : > { %v1970_v18 = vsel %vm1669_vm14, %v1966_v16, -inf }
 0x96a   : > { %1971 = vmax.xlane.f32.xlu2 %v1970_v18 }
 0x970   : > { %v1968_v19 = vpop.f32.mrf.mxu2 }
 0x978   : > { %v2064_v20 = vpop.f32.mrf.mxu2 }
 0x980   : > { %v2066_v21 = vpop.f32.mrf.mxu2 }
 0x982   : > { %2024 = vrot.lane.b32.xlu2 %v4546_v1, %s4021_s9  ;;  %v2071_v1 = vpop.permute.xlu1 %2070 }
 0x983   : > { %2083 = vmatpush.bf16.msrb.mxu3 %v2071_v1 }
 0x98a   : > { %v2069_v34 = vpop.permute.xlu1 %2068 }
 0x98b   : > { %2084 = vmatpush.bf16.msrb.mxu3 %v2069_v34 }
 0x992   : > { %v2075_v47 = vpop.permute.xlu1 %2074 }
 0x9dd   : > { %v1972_v23 = vpop.xlane.xlu2 %1971 }
 0x9de   : > { %v1973_v24 = vsub.f32 %v1966_v16, %v1972_v23 }
 0x9e0   : > { %v1974_v25 = vmul.f32 1.442695, %v1973_v24 }
 0x9e2   : > { %3326 = vpow2.f32 %v1974_v25 }
 0x9e5   : > { %v2025_v26 = vpop.permute.xlu2 %2024 }
 0x9e6   : > { %2040 = vmatpush.bf16.msrb.mxu0 %v2025_v26  ;;  %v3017_v26 = vld [vmem:[%s4856_s5 + $0x8] sm:$0xff] }
 0x9e8   : > { %v3327_v27 = vpop.eup %3326 }
 0x9e9   : > { %2941 = vmatmul.msk.bf16.vlgmr.msrb.gmra.mxu0 %vm1381_vm0, %v4585_v32  ;;  %v1976_v28 = vsel %vm1669_vm14, %v3327_v27, 0.0 }
 0x9ea   : > { %1977 = vadd.xlane.f32.xlu0 %v1976_v28  ;;  %v3018_v28 = vld [vmem:[#allocation26] sm:$0xff] }
 0x9fe   : > { %2052 = vrot.lane.b32.xlu0 %v4574_v13, %s4021_s9  ;;  %s4864_s9 = sld [smem:[#allocation61_spill]] }
 0xa5d   : > { %v1978_v36 = vpop.xlane.xlu0 %1977 }
 0xa5e   : > { %3328 = vrcp.f32 %v1978_v36 }
 0xa64   : > { %v3329_v37 = vpop.eup %3328 }
 0xa65   : > { %v1980_v35 = vmul.f32 %v3329_v37, %v3327_v27  ;;  %v3019_v27 = vld [vmem:[#allocation26 + $0x8] sm:$0xff] }
 0xa66   : > { %v2042_v38 = vpop.f32.mrf.mxu0 }
 0xa67   : > { %v1981_v39 = vpack.c.bf16 %v1980_v35, %v1980_v35  ;;  %v2043_v40 = vadd.f32 %v2042_v38, %v2031_v29 }
 0xa69   : > { %2939 = vmatmul.msk.bf16.vlgmr.msra.gmra.mxu3 %vm1669_vm14, %v1981_v39  ;;  %v2090_v48 = vpack.c.bf16 %v2043_v40, %v2043_v40  ;;  %v3292_v39 = vld [vmem:[#allocation21] ss:$0 sm:$0xff] }
 0xa6a   : > { %2233 = vmatpush.bf16.msra.mxu3 %v3017_v26 }
 0xa6e   : > { %v2044_v41 = vpop.f32.mrf.mxu0 }
 0xa70   : > { %v2053_v13 = vpop.permute.xlu0 %2052 }
 0xa71   : > { %v2065_v43 = vadd.f32 %v2064_v20, %v2053_v13  ;;  %v3293_v13 = vld [vmem:[#allocation23] ss:$0 sm:$0xff] }
 0xa73   : > { %v2091_v44 = vpack.c.bf16 %v2065_v43, %v2065_v43 }
 0xa75   : > { %v2096_v45 = vsel %vm1669_vm14, %v2091_v44, 0 }
 0xa76   : > { %2105 = vmatpush.bf16.xpose.msrb.mxu1 %v2096_v45 }
 0xa79   : > { %2943 = vmatmul.msk.bf16.vlgmr.msrb.gmra.mxu3 %vm1381_vm0, %v4585_v32 }
 0xaec   : > { %v1998_v46 = vpop.f32.mrf.mxu3 }
 0xaed   : > { %v2002_v3 = vpack.c.bf16 %v1998_v46, %v1998_v46  ;;  %v3294_v46 = vld [vmem:[%s4857_s4] ss:$0 sm:$0xff]  ;;  %s4865_s4 = sld [smem:[#allocation62_spill]] }
 0xaef   : > { %2940 = vmatmul.msk.bf16.vlgmr.msra.gmra.mxu1 %vm1669_vm14, %v2002_v3 }
 0xaf0   : > { %2266 = vmatpush.bf16.msra.mxu1 %v3019_v27 }
 0xaf4   : > { %v2000_v6 = vpop.f32.mrf.mxu3  ;;  %2267 = vmatpush.bf16.msra.mxu1 %v3018_v28 }
 0xafc   : > { %v2086_v63 = vpop.f32.mrf.mxu3 }
 0xafd   : > { %v2087_v9 = vadd.f32 %v2086_v63, %v2075_v47  ;;  %v3021_v63 = vld [vmem:[#allocation27 + $0x8] sm:$0xff] }
 0xaff   : > { %v2123_v17 = vpack.c.bf16 %v2087_v9, %v2087_v9  ;;  %2944 = vmatmul.msk.bf16.vlgmr.msrb.gmra.mxu1 %vm1669_vm14, %v2090_v48  ;;  %v4022_v48 = vmov 0.0  }
 0xb00   : > { %2294 = vst.msk [vmem:[#allocation2] sm:$0x1] %vm2293_vm3, %v4022_v48 }
 0xb01   : > { %v2128_v11 = vsel %vm1705_vm13, %v2123_v17, 0  ;;  %v3020_v17 = vld [vmem:[#allocation27] sm:$0xff]  ;;  %2295 = vst.msk [vmem:[#allocation2 + $0x9] sm:$0x1] %vm2293_vm3, %v4022_v48 }
 0xb02   : > { %2137 = vmatpush.bf16.msra.mxu0 %v2128_v11 }
 0xb04   : > { %v2088_v49 = vpop.f32.mrf.mxu3 }
 0xb06   : > { %2404 = vmatpush.bf16.msrb.mxu0 %v3021_v63 }
 0xb0a   : > { %2405 = vmatpush.bf16.msrb.mxu0 %v3020_v17 }
 0xb6c   : > { %v2019_v32 = vpop.f32.mrf.mxu1 }
 0xb6d   : > { %v2023_v50 = vadd.f32 %v2019_v32, %v1880_v33  ;;  %v2328_v33 = vld [vmem:[%s4858_s11] sm:$0x1]  ;;  %s4866_s11 = sld [smem:[#allocation63_spill]] }
 0xb74   : > { %v2021_v51 = vpop.f32.mrf.mxu1 }
 0xb7c   : > { %v2107_v52 = vpop.f32.mrf.mxu1 }
 0xb7d   : > { %v2111_v53 = vsel %vm1669_vm14, %v2107_v52, -inf }
 0xb7e   : > { %2112 = vmax.xlane.f32.xlu0 %v2111_v53 }
 0xb84   : > { %v2109_v54 = vpop.f32.mrf.mxu1 }
 0xbf1   : > { %v2113_v55 = vpop.xlane.xlu0 %2112 }
 0xbf2   : > { %v2114_v56 = vsub.f32 %v2107_v52, %v2113_v55 }
 0xbf4   : > { %v2115_v57 = vmul.f32 1.442695, %v2114_v56 }
 0xbf6   : > { %3330 = vpow2.f32 %v2115_v57 }
 0xbfc   : > { %v3331_v58 = vpop.eup %3330 }
 0xbfd   : > { %v2117_v59 = vsel %vm1669_vm14, %v3331_v58, 0.0 }
 0xbfe   : > { %2118 = vadd.xlane.f32.xlu2 %v2117_v59  ;;  %v3295_v59 = vld [vmem:[#allocation24] ss:$0 sm:$0xff] }
 0xc71   : > { %v2119_v42 = vpop.xlane.xlu2 %2118 }
 0xc72   : > { %3332 = vrcp.f32 %v2119_v42 }
 0xc78   : > { %v3333_v0 = vpop.eup %3332 }
 0xc79   : > { %v2121_v2 = vmul.f32 %v3333_v0, %v3331_v58 }
 0xc7b   : > { %v2122_v4 = vpack.c.bf16 %v2121_v2, %v2121_v2 }
 0xc7d   : > { %2945 = vmatmul.msk.bf16.vlgmr.msra.gmra.mxu0 %vm1669_vm14, %v2122_v4 }
 0xcfa   : > { %v2139_v5 = vpop.f32.mrf.mxu0 }
 0xcfb   : > { %v2143_v7 = vpack.c.bf16 %v2139_v5, %v2139_v5 }
 0xcfd   : > { %2946 = vmatmul.msk.bf16.vlgmr.msra.gmra.mxu2 %vm1669_vm14, %v2143_v7 }
 0xd02   : > { %v2141_v10 = vpop.f32.mrf.mxu0 }
 0xd80   : > { %v2160_v14 = vpop.f32.mrf.mxu2 }
 0xd81   : > { %v2164_v15 = vadd.f32 %v2160_v14, %v2023_v50  ;;  %v2329_v50 = vadd.f32 1e-05, %v2328_v33  ;;  %v3303_v33 = vld [vmem:[%s4864_s9] ss:$0 sm:$0xff] }
 0xd83   : > { %v2169_v16 = vadd.f32 %v3291_v12, %v2164_v15  ;;  %v3296_v15 = vld [vmem:[%s4859_s2] ss:$0 sm:$0xff]  ;;  %vm2336_vm8 = vweird.f32 %v2329_v50 }
 0xd85   : > { %v4698_v18 = vadd.f32 %v2169_v16, %v4535_v60  ;;  %v3016_v60 = vld [vmem:[%s4856_s5] sm:$0xff] }
 0xd86   : > { %2234 = vmatpush.bf16.msra.mxu3 %v3016_v60  ;;  %v3297_v16 = vld [vmem:[%s4859_s2 + $0x1] ss:$0 sm:$0xff]  ;;  %v3299_v60 = vld [vmem:[%s4860_s22] ss:$0 sm:$0xff]  ;;  %s4867_s22 = sld [smem:[#allocation65_spill]] }
 0xd87   : > { %v2173_v19 = vsel %vm1381_vm0, %v4698_v18, 0.0 }
 0xd88   : > { %2174 = vadd.xlane.f32.xlu1 %v2173_v19  ;;  %v2162_v20 = vpop.f32.mrf.mxu2  ;;  %v3298_v19 = vld [vmem:[%s4859_s2 + $0x2] ss:$0 sm:$0xff] }
 0xdfb   : > { %v2175_v21 = vpop.xlane.xlu1 %2174 }
 0xdfc   : > { %v2176_v22 = vmul.f32 %v2175_v21, %v4520_v8 }
 0xdfe   : > { %v2177_v23 = vsub.f32 %v4698_v18, %v2176_v22 }
 0xe00   : > { %v2178_v24 = vmul.f32 %v2177_v23, %v2177_v23 }
 0xe02   : > { %v2179_v25 = vsel %vm1381_vm0, %v2178_v24, 0.0 }
 0xe03   : > { %2180 = vadd.xlane.f32.xlu0 %v2179_v25 }
 0xe76   : > { %v2181_v29 = vpop.xlane.xlu0 %2180 }
 0xe77   : > { %v2182_v1 = vmul.f32 %v2181_v29, %v4520_v8 }
 0xe79   : > { %v2183_v30 = vadd.f32 1e-05, %v2182_v1  ;;  %v3300_v1 = vld [vmem:[%s4861_s7] ss:$0 sm:$0xff]  ;;  %s4868_s7 = sld [smem:[#allocation66_spill]] }
 0xe7b   : > { %3334 = vrsqrt.f32 %v2183_v30  ;;  %vm2190_vm1 = vweird.f32 %v2183_v30 }
 0xe81   : > { %v3335_v31 = vpop.eup %3334 }
 0xe82   : > { %v2185_v34 = vmul.f32 %v3335_v31, %v2183_v30  ;;  %vm2191_vm15 = vweird.f32 %v3335_v31 }
 0xe83   : > { %vm2192_vm2 = vmor %vm2190_vm1, %vm2191_vm15 }
 0xe84   : > { %v2186_v36 = vmul.f32 %v3335_v31, %v2185_v34 }
 0xe86   : > { %v2187_v37 = vmul.f32 0.5, %v2186_v36  ;;  %v3301_v36 = vld [vmem:[%s4862_s15] ss:$0 sm:$0xff]  ;;  %s1370_s15 = sand.u32 1, %s3952_s10  }
 0xe87   : > { %s2871_s9 = sshll.u32 %s1370_s15, 3  ;;  %s2558_s8 = scalar_lea.sflag [#allocation5], %s1370_s15 }
 0xe88   : > { %v2188_v35 = vsub.f32 1.5, %v2187_v37  ;;  %s1372_s2 = scalar_lea.vmem [#allocation30], %s2871_s9 }
 0xe89   : > { %s2570_s3 = sshll.u32 %s1372_s2, 4  ;;  %s2571_s3 = int_to_ptr.vmem [resolvable:$true] %s2570_s3 }
 0xe8a   : > { %v2189_v38 = vmul.f32 %v3335_v31, %v2188_v35  ;;  %v3302_v35 = vld [vmem:[%s4863_s6] ss:$0 sm:$0xff]  ;;  %s4869_s6 = smov %s4868_s7 }
 0xe8c   : > { %v2193_v40 = vsel %vm2192_vm2, %v3335_v31, %v2189_v38 }
 0xe8d   : > { %v2194_v41 = vmul.f32 %v2193_v40, %v2177_v23 }
 0xe8f   : > { %v2198_v43 = vmul.f32 %v3292_v39, %v2194_v41 }
 0xe91   : > { %v2202_v44 = vadd.f32 %v3293_v13, %v2198_v43 }
 0xe93   : > { %v2203_v45 = vpack.c.bf16 %v2202_v44, %v2202_v44 }
 0xe95   : > { %2955 = vmatmul.msk.bf16.vlgmr.msra.gmra.mxu3 %vm1381_vm0, %v2203_v45  ;;  %2964 = vmatmul.msk.bf16.vlgmr.msra.gmra.mxu1 %vm1381_vm0, %v2203_v45 }
 0xf12   : > { %v2269_v3 = vpop.f32.mrf.mxu1 }
 0xf13   : > { %v2270_v6 = vadd.f32 %v3294_v46, %v2269_v3 }
 0xf15   : > { %v2273_v47 = vsub.f32 0.0, %v2270_v6 }
 0xf17   : > { %v2274_v9 = vmul.f32 1.442695, %v2273_v47 }
 0xf18   : > { %v2236_v11 = vpop.f32.mrf.mxu3 }
 0xf19   : > { %3336 = vpow2.f32 %v2274_v9  ;;  %v2237_v4 = vadd.f32 %v3295_v59, %v2236_v11  ;;  %v3023_v59 = vld [vmem:[#allocation29 + $0x8] sm:$0xff] }
 0xf1a   : > { %v2271_v49 = vpop.f32.mrf.mxu1  ;;  %2474 = vmatpush.bf16.msrb.mxu2 %v3023_v59 }
 0xf1f   : > { %v3337_v32 = vpop.eup %3336 }
 0xf20   : > { %v2276_v51 = vadd.f32 1.0, %v3337_v32  ;;  %v2238_v52 = vpop.f32.mrf.mxu3 }
 0xf22   : > { %3338 = vrcp.f32 %v2276_v51  ;;  %v2288_v57 = vand.u32 2147483648, %v2276_v51  ;;  %v2286_v62 = vand.u32 2147483647, %v2276_v51  ;;  %vm2282_vm5 = vweird.f32 %v2276_v51 }
 0xf23   : > { %3340 = vrsqrt.f32 %v2329_v50 }
 0xf24   : > { %v2289_v0 = vor.u32 1.1754944e-38, %v2288_v57  ;;  %vm2287_vm7 = vcmp.eq.f32.partialorder %v2286_v62, 8.507059e+37 }
 0xf28   : > { %v3339_v53 = vpop.eup %3338 }
 0xf29   : > { %v3341_v54 = vpop.eup %3340  ;;  %v2278_v55 = vmul.f32 %v3339_v53, %v2276_v51  ;;  %vm2283_vm4 = vweird.f32 %v3339_v53 }
 0xf2a   : > { %v2331_v58 = vmul.f32 %v3341_v54, %v2329_v50  ;;  %vm2284_vm6 = vmor %vm2282_vm5, %vm2283_vm4  ;;  %vm2337_vm10 = vweird.f32 %v3341_v54 }
 0xf2b   : > { %v2279_v56 = vsub.f32 1.0, %v2278_v55  ;;  %vm2338_vm11 = vmor %vm2336_vm8, %vm2337_vm10 }
 0xf2c   : > { %v2332_v2 = vmul.f32 %v3341_v54, %v2331_v58 }
 0xf2d   : > { %v2280_v61 = vmul.f32 %v3339_v53, %v2279_v56 }
 0xf2e   : > { %v2333_v12 = vmul.f32 0.5, %v2332_v2 }
 0xf2f   : > { %v2281_v42 = vadd.f32 %v3339_v53, %v2280_v61  ;;  %v3022_v61 = vld [vmem:[#allocation29] sm:$0xff] }
 0xf30   : > { %v2334_v14 = vsub.f32 1.5, %v2333_v12  ;;  %2475 = vmatpush.bf16.msrb.mxu2 %v3022_v61  ;;  %v3304_v12 = vld [vmem:[%s4865_s4] ss:$0 sm:$0xff]  ;;  %s3001_s4 = sshll.u32 %s4239_s0, 3 }
 0xf31   : > { %v2285_v5 = vsel %vm2284_vm6, %v3339_v53, %v2281_v42 }
 0xf32   : > { %v2290_v7 = vsel %vm2287_vm7, %v2289_v0, %v2285_v5  ;;  %v2335_v23 = vmul.f32 %v3341_v54, %v2334_v14 }
 0xf33   : > { %v2292_v10 = vmul.f32 %v2290_v7, %v2237_v4 }
 0xf34   : > { %v2339_v28 = vsel %vm2338_vm11, %v3341_v54, %v2335_v23  ;;  %v3306_v23 = vld [vmem:[%s4201_s17] ss:$0 sm:$0xff] }
 0xf35   : > { %2296 = vst.msk [vmem:[#allocation2 + $0x1] sm:$0xff] %vm1381_vm0, %v2292_v10  ;;  %v2341_v31 = vperm.slane %v2339_v28, 0 }
 0xf3c   : > { %v2300_v20 = vld [vmem:[#allocation2] sm:$0xff] }
 0xf3d   : > { %v2306_v21 = vld [vmem:[#allocation2 + $0x1] sm:$0xff]  ;;  %v2304_v24 = vmul.f32 %v3296_v15, %v2300_v20 }
 0xf3e   : > { %v2312_v22 = vld [vmem:[#allocation2 + $0x2] sm:$0xff]  ;;  %v2310_v25 = vmul.f32 %v3297_v16, %v2306_v21  ;;  %v3027_v21 = vld [vmem:[%s4206_s24 + $0x18] sm:$0xff] }
 0xf3f   : > { %v2316_v27 = vmul.f32 %v3298_v19, %v2312_v22  ;;  %2545 = vmatpush.bf16.msrb.mxu3 %v3027_v21  ;;  %v3026_v22 = vld [vmem:[%s4206_s24 + $0x10] sm:$0xff] }
 0xf40   : > { %v2311_v26 = vadd.f32 %v2310_v25, %v2304_v24  ;;  %v3025_v24 = vld [vmem:[%s4206_s24 + $0x8] sm:$0xff] }
 0xf42   : > { %v2317_v29 = vadd.f32 %v2316_v27, %v2311_v26  ;;  %v3024_v27 = vld [vmem:[%s4206_s24] sm:$0xff] }
 0xf43   : > { %2546 = vmatpush.bf16.msrb.mxu3 %v3026_v22 }
 0xf44   : > { %v2322_v30 = vadd.f32 %v3299_v60, %v2317_v29 }
 0xf46   : > { %v2327_v34 = vsub.f32 %v2322_v30, %v3300_v1 }
 0xf47   : > { %2547 = vmatpush.bf16.msrb.mxu3 %v3025_v24 }
 0xf48   : > { %v2343_v37 = vmul.f32 %v2341_v31, %v2327_v34 }
 0xf4a   : > { %v2348_v38 = vmul.f32 %v3301_v36, %v2343_v37 }
 0xf4b   : > { %2548 = vmatpush.bf16.msrb.mxu3 %v3024_v27 }
 0xf4c   : > { %v2353_v39 = vadd.f32 %v3302_v35, %v2348_v38 }
 0xf4e   : > { %v2354_v40 = vsub.f32 0.0, %v2353_v39 }
 0xf50   : > { %v2355_v41 = vmul.f32 1.442695, %v2354_v40 }
 0xf52   : > { %3342 = vpow2.f32 %v2355_v41 }
 0xf58   : > { %v3343_v13 = vpop.eup %3342 }
 0xf59   : > { %v2357_v43 = vadd.f32 1.0, %v3343_v13 }
 0xf5b   : > { %3344 = vrcp.f32 %v2357_v43  ;;  %v2369_v3 = vand.u32 2147483648, %v2357_v43  ;;  %v2367_v47 = vand.u32 2147483647, %v2357_v43  ;;  %vm2363_vm13 = vweird.f32 %v2357_v43 }
 0xf5d   : > { %v2370_v48 = vor.u32 1.1754944e-38, %v2369_v3  ;;  %vm2368_vm15 = vcmp.eq.f32.partialorder %v2367_v47, 8.507059e+37 }
 0xf61   : > { %v3345_v44 = vpop.eup %3344 }
 0xf62   : > { %v2359_v45 = vmul.f32 %v3345_v44, %v2357_v43  ;;  %vm2364_vm12 = vweird.f32 %v3345_v44 }
 0xf63   : > { %vm2365_vm14 = vmor %vm2363_vm13, %vm2364_vm12 }
 0xf64   : > { %v2360_v46 = vsub.f32 1.0, %v2359_v45  ;;  %v3307_v45 = vld [vmem:[%s4867_s22] ss:$0 sm:$0xff] }
 0xf66   : > { %v2361_v6 = vmul.f32 %v3345_v44, %v2360_v46 }
 0xf68   : > { %v2362_v63 = vadd.f32 %v3345_v44, %v2361_v6 }
 0xf6a   : > { %v2366_v9 = vsel %vm2365_vm14, %v3345_v44, %v2362_v63 }
 0xf6b   : > { %v2371_v17 = vsel %vm2368_vm15, %v2370_v48, %v2366_v9 }
 0xf6c   : > { %v2373_v11 = vmul.f32 %v2371_v17, %v2353_v39 }
 0xf6e   : > { %v2374_v49 = vpack.c.bf16 %v2373_v11, %v2373_v11 }
 0xf70   : > { %2973 = vmatmul.msk.bf16.vlgmr.msrb.gmra.mxu0 %vm1381_vm0, %v2374_v49 }
 0xfed   : > { %v2407_v32 = vpop.f32.mrf.mxu0 }
 0xfee   : > { %v2408_v50 = vadd.f32 %v3303_v33, %v2407_v32 }
 0xff0   : > { %v4723_v51 = vadd.f32 %v2408_v50, %v4698_v18 }
 0xff2   : > { %v2414_v52 = vsel %vm1381_vm0, %v4723_v51, 0.0 }
 0xff3   : > { %2415 = vadd.xlane.f32.xlu2 %v2414_v52 }
 0xff5   : > { %v2409_v53 = vpop.f32.mrf.mxu0 }
0x1066   : > { %v2416_v54 = vpop.xlane.xlu2 %2415 }
0x1067   : > { %v2417_v55 = vmul.f32 %v2416_v54, %v4520_v8 }
0x1069   : > { %v2418_v56 = vsub.f32 %v4723_v51, %v2417_v55 }
0x106b   : > { %v2419_v57 = vmul.f32 %v2418_v56, %v2418_v56 }
0x106d   : > { %v2420_v58 = vsel %vm1381_vm0, %v2419_v57, 0.0 }
0x106e   : > { %2421 = vadd.xlane.f32.xlu0 %v2420_v58 }
0x10e1   : > { %v2422_v18 = vpop.xlane.xlu0 %2421 }
0x10e2   : > { %v2423_v62 = vmul.f32 %v2422_v18, %v4520_v8  ;;  %v3305_v8 = vld [vmem:[%s4866_s11] ss:$0 sm:$0xff]  ;;  %s2568_s11 = scalar_lea.hbm %s4868_s7, %s3001_s4  ;;  %s3882_s7 = scalar_lea.hbm %s4869_s6, 16 }
0x10e3   : > { %s2572_s5 = sshll.u32 %s2568_s11, 4  ;;  %s2573_s5 = int_to_ptr.hbm [resolvable:$true] %s2572_s5 }
0x10e4   : > { %v2424_v42 = vadd.f32 1e-05, %v2423_v62  ;;  %s3876_s0 = sshra.s32 %s2573_s5, 4  ;;  %s3877_s0 = int_to_ptr.hbm [resolvable:$true] %s3876_s0 }
0x10e5   : > { %s3878_s22 = scalar_lea.hbm %s3877_s0, 8  ;;  %p3883_p11 = scmp.lt.s32.totalorder %s3877_s0, %s4869_s6 }
0x10e6   : > { %3346 = vrsqrt.f32 %v2424_v42  ;;  %vm2431_vm2 = vweird.f32 %v2424_v42  ;;  %p3879_p9 = scmp.ne.s32.totalorder %s3877_s0, %s3878_s22  ;;  %p3884_p13 = scmp.lt.s32.totalorder %s3882_s7, %s3878_s22 }
0x10e8   : > { %p3880_p12 = pnand %p3879_p9, %p4256_p5  ;;  %p3885_p1 = por %p3884_p13, %p3883_p11 }
0x10ea   : > { %p3881_p0 = pneg %p3880_p12 }
0x10ec   : > { %v3347_v0 = vpop.eup %3346  ;;  %p3886_p2 = pnand %p3885_p1, %p3881_p0 }
0x10ed   : > { %v2426_v2 = vmul.f32 %v3347_v0, %v2424_v42  ;;  %vm2432_vm1 = vweird.f32 %v3347_v0 }
0x10ee   : > { %vm2433_vm3 = vmor %vm2431_vm2, %vm2432_vm1 }
0x10ef   : > { %v2427_v4 = vmul.f32 %v3347_v0, %v2426_v2 }
0x10f1   : > { %v2428_v5 = vmul.f32 0.5, %v2427_v4 }
0x10f3   : > { %v2429_v7 = vsub.f32 1.5, %v2428_v5 }
0x10f5   : > { %v2430_v10 = vmul.f32 %v3347_v0, %v2429_v7 }
0x10f7   : > { %v2434_v14 = vsel %vm2433_vm3, %v3347_v0, %v2430_v10 }
0x10f8   : > { %v2435_v15 = vmul.f32 %v2434_v14, %v2418_v56 }
0x10fa   : > { %v2439_v16 = vmul.f32 %v3304_v12, %v2435_v15 }
0x10fc   : > { %v2443_v19 = vadd.f32 %v3305_v8, %v2439_v16 }
0x10fe   : > { %v2444_v20 = vpack.c.bf16 %v2443_v19, %v2443_v19 }
0x1100   : > { %2982 = vmatmul.msk.bf16.vlgmr.msrb.gmra.mxu2 %vm1381_vm0, %v2444_v20 }
0x1183   : > { %v2477_v25 = vpop.f32.mrf.mxu2 }
0x1184   : > { %v2478_v26 = vadd.f32 %v3306_v23, %v2477_v25 }
0x1186   : > { %v2481_v60 = vsub.f32 0.0, %v2478_v26 }
0x1188   : > { %v2482_v28 = vmul.f32 1.442695, %v2481_v60 }
0x118a   : > { %3348 = vpow2.f32 %v2482_v28 }
0x118b   : > { %v2479_v29 = vpop.f32.mrf.mxu2 }
0x1190   : > { %v3349_v1 = vpop.eup %3348 }
0x1191   : > { %v2484_v30 = vadd.f32 1.0, %v3349_v1 }
0x1193   : > { %3350 = vrcp.f32 %v2484_v30  ;;  %v2496_v37 = vand.u32 2147483648, %v2484_v30  ;;  %v2494_v38 = vand.u32 2147483647, %v2484_v30  ;;  %vm2490_vm5 = vweird.f32 %v2484_v30 }
0x1195   : > { %v2497_v40 = vor.u32 1.1754944e-38, %v2496_v37  ;;  %vm2495_vm7 = vcmp.eq.f32.partialorder %v2494_v38, 8.507059e+37 }
0x1199   : > { %v3351_v31 = vpop.eup %3350 }
0x119a   : > { %v2486_v34 = vmul.f32 %v3351_v31, %v2484_v30  ;;  %vm2491_vm4 = vweird.f32 %v3351_v31 }
0x119b   : > { %vm2492_vm6 = vmor %vm2490_vm5, %vm2491_vm4 }
0x119c   : > { %v2487_v36 = vsub.f32 1.0, %v2486_v34 }
0x119e   : > { %v2488_v35 = vmul.f32 %v3351_v31, %v2487_v36 }
0x11a0   : > { %v2489_v39 = vadd.f32 %v3351_v31, %v2488_v35 }
0x11a2   : > { %v2493_v41 = vsel %vm2492_vm6, %v3351_v31, %v2489_v39 }
0x11a3   : > { %v2498_v13 = vsel %vm2495_vm7, %v2497_v40, %v2493_v41 }
0x11a4   : > { %v2500_v43 = vmul.f32 %v2498_v13, %v2478_v26 }
0x11a6   : > { %v2501_v44 = vpack.c.bf16 %v2500_v43, %v2500_v43 }
0x11a8   : > { %2999 = vmatmul.msk.bf16.vlgmr.msrb.gmra.mxu3 %vm1513_vm9, %v2501_v44 }
0x122b   : > { %v2550_v46 = vpop.f32.mrf.mxu3 }
0x122c   : > { %v2551_v3 = vadd.f32 %v3307_v45, %v2550_v46 }
0x122e   : > { %v2554_v6 = vmul.f32 0.5, %v2551_v3 }
0x1230   : > { %v2555_v47 = vadd.f32 %v2554_v6, %v4723_v51 }
0x1232   : > { %2556 = vst.msk [vmem:[%s1372_s2] sm:$0xff] %vm1381_vm0, %v2555_v47 }
0x1233   : > { %v2552_v63 = vpop.f32.mrf.mxu3 }
0x1234   : > { %3889 = shalt.err (!%p3886_p2)
}
0x1235   : > { %3096 = dma.vmem_to_hbm [thread:$0]  (%p4256_p5), %s2571_s3, 128, %s2573_s5, %s2558_s8  }
0x1236 PF: > { %s4871_s2 = sld [smem:[#allocation69_spill]] }
0x1237   : > { %s4872_s9 = sld [smem:[#allocation67_spill]] }
0x123c   : > { %p3188_p3 = scmp.ge.s32.totalorder %s4871_s2, 2 }
0x123d   : > { %s2584_s4 = sand.u32 1, %s4872_s9  }
0x123e   : > { %p3151_p4 = pnand %p3188_p3, %p4260_p6  ;;  %s2585_s11 = scalar_lea.sflag [#allocation5], %s2584_s4 }
0x1240   : > { %p3152_p7 = pneg %p3151_p4 }
0x1242   : > { %3943 = dma.done.wait (%p3152_p7), %s2585_s11, 128  }
0x1243   : > { %3945 = vsyncadd (%p3152_p7), %s2585_s11, 4294967168  ;;  %s4874_s15 = sld [smem:[#allocation70_spill]]  ;;  %s4877_s7 = smov %s3952_s10 }
0x1244   : > { %s4875_s0 = sld [smem:[#allocation68_spill]] }
0x1245   : > { %s4876_s11 = sld [smem:[#allocation71_spill]] }
0x1249   : > { %p94_p8 = scmp.ge.s32.totalorder %s4874_s15, 4  }
0x124a   : > { %s4878_s10 = smov %s4875_s0 }
0x124b   :  { %96 = sbr.rel (!%p94_p8) target bundleno = 82 (0x52), region = 309 }
0x1250   :  { %2591 = vsyncpa [#allocation4], 1 }
0x1251   :  { %2593 = vsyncpa [#allocation4 + $0x1], 1 }
0x1252   :  { %2594 = vsyncpa [#allocation7], 1 }
0x1253   :  { %2595 = vsyncpa [#allocation10], 1 }
0x1254   :  { %2596 = vsyncpa [#allocation13], 1 }
0x1255   :  { %2597 = vsyncpa [#allocation16], 1 }
0x1256   :  { %2598 = vsyncpa [#allocation19], 1 }
0x1257   :  { %2599 = vsyncpa [#allocation22], 1 }
0x1258   :  { %2600 = vsyncpa [#allocation25], 1 }
0x1259   :  { %2601 = vsyncpa [#allocation28], 1 }
0x125a   :  { %2602 = vsyncpa [#allocation5], 1 }
0x125b   :  { %2604 = vsyncpa [#allocation5 + $0x1], 1 }

</bundles_post_ra>
